<compile_context>
chip_gen: v7x
topology: tpu7x:2x2x1
jax: 0.10.0
libtpu: 0.0.40
codegen_flags: <defaults>
</compile_context>

<pallas_src>
import functools

import jax
import jax.numpy as jnp
from jax.experimental import pallas as pl
from jax.experimental.pallas import tpu as pltpu

HEAD_PAD = 128  # lane-dense combined (critic | actor) head width
HID_PAD = 128   # lane-padded width of the second hidden layer (logical 64)


def _policy_kernel(num_players, action_dim, feature_dim, batch_valid,
                   x_ref, w1_ref, w2_ref, wh_ref, vec_ref, out_ref):
    eps = jnp.float32(1e-5)
    slope = jnp.float32(0.01)
    neg = jnp.float32(-1e30)
    b_pad = x_ref.shape[0]
    inv_n = jnp.float32(1.0 / batch_valid)

    # Row-validity mask (only needed when the batch was padded to 8 sublanes).
    if batch_valid == b_pad:
        row_mask = None
    else:
        rows = jax.lax.broadcasted_iota(jnp.int32, (b_pad, 1), 0)
        row_mask = rows < batch_valid

    # Packed (1, C) parameter rows from the lane-dense parameter slab.
    g1 = vec_ref[0:1, 0:feature_dim]
    be1 = vec_ref[1:2, 0:feature_dim]
    b1 = vec_ref[2:3, 0:128]
    g2 = vec_ref[3:4, 0:128]
    be2 = vec_ref[4:5, 0:128]
    b2 = vec_ref[5:6, 0:HID_PAD]
    g3 = vec_ref[6:7, 0:HID_PAD]
    be3 = vec_ref[7:8, 0:HID_PAD]
    bh = vec_ref[8:9, 0:HEAD_PAD]

    def batchnorm(v, gamma, beta):
        # training-mode BatchNorm1d, one-pass stats: the two sublane reductions
        # (sum, sum-of-squares) are independent and interleave on the XLU.
        if row_mask is None:
            s1 = jnp.sum(v, axis=0, keepdims=True)
            s2 = jnp.sum(v * v, axis=0, keepdims=True)
        else:
            vm = jnp.where(row_mask, v, 0.0)
            s1 = jnp.sum(vm, axis=0, keepdims=True)
            s2 = jnp.sum(vm * vm, axis=0, keepdims=True)
        mean = s1 * inv_n
        var = jnp.maximum(s2 * inv_n - mean * mean, 0.0)  # guard cancellation
        scale = jax.lax.rsqrt(var + eps) * gamma          # (1, C) work only
        return (v - mean) * scale + beta

    def leaky_relu(v):
        return jnp.where(v >= 0, v, slope * v)

    x = x_ref[...]

    # shared trunk (hidden-2 lane-padded 64 -> 128 with zero columns)
    h = batchnorm(x, g1, be1)
    h = jnp.dot(h, w1_ref[...], preferred_element_type=jnp.float32) + b1
    h = leaky_relu(h)
    h = batchnorm(h, g2, be2)
    h = jnp.dot(h, w2_ref[...], preferred_element_type=jnp.float32) + b2
    h = leaky_relu(h)
    head = batchnorm(h, g3, be3)

    # fused critic|actor head: one lane-dense (128, 128) matmul
    logits = jnp.dot(head, wh_ref[...], preferred_element_type=jnp.float32) + bh

    # fused dual softmax: single exp pass over the (B, 128) slab
    col = jax.lax.broadcasted_iota(jnp.int32, (1, HEAD_PAD), 1)
    critic_mask = col < num_players
    valid_mask = col < (num_players + action_dim)
    actor_mask = jnp.logical_and(valid_mask, jnp.logical_not(critic_mask))

    m_c = jnp.max(jnp.where(critic_mask, logits, neg), axis=1, keepdims=True)
    m_a = jnp.max(jnp.where(actor_mask, logits, neg), axis=1, keepdims=True)
    m_col = jnp.where(critic_mask, m_c, m_a)                       # (B, 128)
    # exp(-1e30) underflows to exactly 0.0 in f32, so no post-exp mask needed.
    e = jnp.exp(jnp.where(valid_mask, logits - m_col, neg))
    s_c = jnp.sum(jnp.where(critic_mask, e, 0.0), axis=1, keepdims=True)
    s_a = jnp.sum(jnp.where(actor_mask, e, 0.0), axis=1, keepdims=True)

    def refined_recip(s):
        r = pl.reciprocal(s, approx=True)   # EUP slot (otherwise idle)
        return r * (2.0 - s * r)            # one Newton step -> full precision

    r_col = jnp.where(critic_mask, refined_recip(s_c), refined_recip(s_a))
    out_ref[...] = e * r_col


def policy_forward(features, params):
    """features: (B, feature_dim) float32.  Returns (critic, actor)."""
    num_players = params["num_players"]
    action_dim = params["action_dim"]
    feature_dim = params["feature_dim"]
    assert num_players > 0 and action_dim > 0
    # critic lanes [0, np) and actor lanes [np, np+ad) are disjoint by
    # construction; this guards against falling off the 128-lane pad.
    assert num_players + action_dim <= HEAD_PAD, "fused head exceeds 128 lanes"

    B, F = features.shape
    assert F == feature_dim

    # Pad batch to a sublane multiple of 8.  On v6e/v7x, callers should supply
    # >=256 rows per call to fill the 256-tall MXU and amortize launch cost.
    B_pad = max(8, ((B + 7) // 8) * 8)
    if B_pad != B:
        features = jnp.pad(features, ((0, B_pad - B), (0, 0)))

    args = (features, params["w1"], params["w2p"], params["w_head"],
            params["vec"])

    # Advisory cost estimate (single-exp fused softmax).
    flops = 2 * B_pad * (F * 128 + 128 * HID_PAD + HID_PAD * HEAD_PAD)
    bytes_accessed = sum(int(a.size) * 4 for a in args) + B_pad * HEAD_PAD * 4
    transcendentals = B_pad * (HEAD_PAD + 2) + F + 2 * 128  # exp + recip + rsqrt

    # VMEM budget: params + a handful of live (B, 128) f32 temps, with 4x
    # headroom; capped at v7x's 64 MiB physical VMEM.
    param_bytes = sum(int(a.size) * 4 for a in args[1:])
    live_bytes = 4 * B_pad * (F + 12 * HEAD_PAD)
    vmem_limit = int(min(64 << 20, max(16 << 20, 4 * (param_bytes + live_bytes))))

    vmem_spec = pl.BlockSpec(memory_space=pltpu.MemorySpace.VMEM)
    kernel = functools.partial(_policy_kernel, num_players, action_dim, F, B)

    # TODO(synk): for very large B (v7x whole-batch residency exceeds 64 MiB
    # VMEM around ~10-20k rows), switch to a batch grid with a BN-statistics
    # prepass and dimension_semantics=("parallel",) to use both TensorCores.
    out = pl.pallas_call(
        kernel,
        out_shape=jax.ShapeDtypeStruct((B_pad, HEAD_PAD), jnp.float32),
        in_specs=[vmem_spec] * len(args),
        out_specs=vmem_spec,
        compiler_params=pltpu.CompilerParams(vmem_limit_bytes=vmem_limit),
        cost_estimate=pl.CostEstimate(flops=flops,
                                      transcendentals=transcendentals,
                                      bytes_accessed=bytes_accessed),
    )(*args)

    critic = out[:B, :num_players]
    actor = out[:B, num_players:num_players + action_dim]
    return critic, actor


def init_params(key, feature_dim, action_dim, num_players):
    """Deterministic synthetic init (PyTorch-style uniform +-1/sqrt(fan_in))."""
    assert num_players + action_dim <= HEAD_PAD
    ks = jax.random.split(key, 8)

    def linear(kw, kb, fan_in, fan_out):
        bound = 1.0 / jnp.sqrt(jnp.float32(fan_in))
        w = jax.random.uniform(kw, (fan_in, fan_out), jnp.float32, -bound, bound)
        b = jax.random.uniform(kb, (1, fan_out), jnp.float32, -bound, bound)
        return w, b

    w1, b1 = linear(ks[0], ks[1], feature_dim, 128)
    w2, b2 = linear(ks[2], ks[3], 128, 64)
    wc, bc = linear(ks[4], ks[5], 64, num_players)
    wa, ba = linear(ks[6], ks[7], 64, action_dim)

    # Second linear padded to 128 output lanes (zero columns).
    w2p = jnp.zeros((128, HID_PAD), jnp.float32).at[:, :64].set(w2)

    # Fused critic|actor head, K padded to 128 rows, lane-dense output.
    w_head = jnp.zeros((HID_PAD, HEAD_PAD), jnp.float32)
    w_head = w_head.at[:64, :num_players].set(wc)
    w_head = w_head.at[:64, num_players:num_players + action_dim].set(wa)

    # Pack all (1, C) BN gamma/beta and bias vectors into one lane-dense slab.
    P = max(HEAD_PAD, ((feature_dim + 127) // 128) * 128)
    vec = jnp.zeros((16, P), jnp.float32)
    vec = vec.at[0, :feature_dim].set(1.0)                      # g1 (BN default 1)
    # row 1: be1 = 0
    vec = vec.at[2, :128].set(b1[0])                            # b1
    vec = vec.at[3, :128].set(1.0)                              # g2
    # row 4: be2 = 0
    vec = vec.at[5, :64].set(b2[0])                             # b2 (pad cols 0)
    vec = vec.at[6, :HID_PAD].set(1.0)                          # g3 (pad cols 1)
    # row 7: be3 = 0
    vec = vec.at[8, :num_players].set(bc[0])                    # fused head bias
    vec = vec.at[8, num_players:num_players + action_dim].set(ba[0])

    return {
        "num_players": num_players,
        "action_dim": action_dim,
        "feature_dim": feature_dim,
        "w1": w1, "w2p": w2p, "w_head": w_head, "vec": vec,
        # unfused / unpadded copies kept only for the pure-JAX reference check
        "ref": {
            "w1": w1, "b1": b1, "w2": w2, "b2": b2,
            "wc": wc, "bc": bc, "wa": wa, "ba": ba,
            "g1": jnp.ones((1, feature_dim), jnp.float32),
            "be1": jnp.zeros((1, feature_dim), jnp.float32),
            "g2": jnp.ones((1, 128), jnp.float32),
            "be2": jnp.zeros((1, 128), jnp.float32),
            "g3": jnp.ones((1, 64), jnp.float32),
            "be3": jnp.zeros((1, 64), jnp.float32),
        },
    }


def _reference_forward(features, params):
    """Pure-JAX reference for correctness checking."""
    p = params["ref"]
    eps = 1e-5

    def bn(v, g, b):
        m = jnp.mean(v, axis=0, keepdims=True)
        var = jnp.mean((v - m) ** 2, axis=0, keepdims=True)
        return (v - m) / jnp.sqrt(var + eps) * g + b

    lrelu = lambda v: jnp.where(v >= 0, v, 0.01 * v)
    h = bn(features, p["g1"], p["be1"])
    h = lrelu(h @ p["w1"] + p["b1"])
    h = bn(h, p["g2"], p["be2"])
    h = lrelu(h @ p["w2"] + p["b2"])
    head = bn(h, p["g3"], p["be3"])
    critic = jax.nn.softmax(head @ p["wc"] + p["bc"], axis=1)
    actor = jax.nn.softmax(head @ p["wa"] + p["ba"], axis=1)
    return critic, actor


if __name__ == "__main__":
    key = jax.random.PRNGKey(0)
    k_x, k_p, k_x2 = jax.random.split(key, 3)

    feature_dim = 32
    action_dim = 16
    num_players = 4
    batch = 256  # fills the 256-tall v6e/v7x MXU; amortizes launch overhead

    params = init_params(k_p, feature_dim, action_dim, num_players)

    features = jax.random.normal(k_x, (batch, feature_dim), jnp.float32)
    critic, actor = policy_forward(features, params)
    jax.block_until_ready((critic, actor))

    ref_c, ref_a = _reference_forward(features, params)
    assert critic.shape == (batch, num_players) and actor.shape == (batch, action_dim)
    assert jnp.allclose(critic, ref_c, atol=1e-4, rtol=1e-4)
    assert jnp.allclose(actor, ref_a, atol=1e-4, rtol=1e-4)
    assert jnp.allclose(jnp.sum(critic, axis=1), 1.0, atol=1e-5)
    assert jnp.allclose(jnp.sum(actor, axis=1), 1.0, atol=1e-5)

    # also exercise the padded-batch path (B not a multiple of 8)
    features_small = jax.random.normal(k_x2, (10, feature_dim), jnp.float32)
    c2, a2 = policy_forward(features_small, params)
    jax.block_until_ready((c2, a2))
    rc2, ra2 = _reference_forward(features_small, params)
    assert jnp.allclose(c2, rc2, atol=1e-4, rtol=1e-4)
    assert jnp.allclose(a2, ra2, atol=1e-4, rtol=1e-4)

    print("KERNEL_OK")
</pallas_src>

<mosaic_0001>
module attributes {stable_mosaic.version = 11 : i64} {
  func.func @_policy_kernel(%arg0: memref<256x32xf32, #tpu.memory_space<vmem>>, %arg1: memref<32x128xf32, #tpu.memory_space<vmem>>, %arg2: memref<128x128xf32, #tpu.memory_space<vmem>>, %arg3: memref<128x128xf32, #tpu.memory_space<vmem>>, %arg4: memref<16x128xf32, #tpu.memory_space<vmem>>, %arg5: memref<256x128xf32, #tpu.memory_space<vmem>>) attributes {dimension_semantics = [], scalar_prefetch = 0 : i64, scratch_operands = 0 : i64, tpu.core_type = #tpu.core_type<tc>} {
    %c0 = arith.constant 0 : index
    %c0_0 = arith.constant 0 : index
    %0 = vector.load %arg4[%c0, %c0_0] : memref<16x128xf32, #tpu.memory_space<vmem>>, vector<1x32xf32>
    %c1 = arith.constant 1 : index
    %c0_1 = arith.constant 0 : index
    %1 = vector.load %arg4[%c1, %c0_1] : memref<16x128xf32, #tpu.memory_space<vmem>>, vector<1x32xf32>
    %c2 = arith.constant 2 : index
    %c0_2 = arith.constant 0 : index
    %2 = vector.load %arg4[%c2, %c0_2] : memref<16x128xf32, #tpu.memory_space<vmem>>, vector<1x128xf32>
    %c3 = arith.constant 3 : index
    %c0_3 = arith.constant 0 : index
    %3 = vector.load %arg4[%c3, %c0_3] : memref<16x128xf32, #tpu.memory_space<vmem>>, vector<1x128xf32>
    %c4 = arith.constant 4 : index
    %c0_4 = arith.constant 0 : index
    %4 = vector.load %arg4[%c4, %c0_4] : memref<16x128xf32, #tpu.memory_space<vmem>>, vector<1x128xf32>
    %c5 = arith.constant 5 : index
    %c0_5 = arith.constant 0 : index
    %5 = vector.load %arg4[%c5, %c0_5] : memref<16x128xf32, #tpu.memory_space<vmem>>, vector<1x128xf32>
    %c6 = arith.constant 6 : index
    %c0_6 = arith.constant 0 : index
    %6 = vector.load %arg4[%c6, %c0_6] : memref<16x128xf32, #tpu.memory_space<vmem>>, vector<1x128xf32>
    %c7 = arith.constant 7 : index
    %c0_7 = arith.constant 0 : index
    %7 = vector.load %arg4[%c7, %c0_7] : memref<16x128xf32, #tpu.memory_space<vmem>>, vector<1x128xf32>
    %c8 = arith.constant 8 : index
    %c0_8 = arith.constant 0 : index
    %8 = vector.load %arg4[%c8, %c0_8] : memref<16x128xf32, #tpu.memory_space<vmem>>, vector<1x128xf32>
    %c0_9 = arith.constant 0 : index
    %c0_10 = arith.constant 0 : index
    %9 = vector.load %arg0[%c0_9, %c0_10] : memref<256x32xf32, #tpu.memory_space<vmem>>, vector<256x32xf32>
    %cst = arith.constant dense<0.000000e+00> : vector<32xf32>
    %10 = vector.multi_reduction <add>, %9, %cst [0] : vector<256x32xf32> to vector<32xf32>
    %11 = vector.shape_cast %10 : vector<32xf32> to vector<1x32xf32>
    %12 = arith.mulf %9, %9 : vector<256x32xf32>
    %cst_11 = arith.constant dense<0.000000e+00> : vector<32xf32>
    %13 = vector.multi_reduction <add>, %12, %cst_11 [0] : vector<256x32xf32> to vector<32xf32>
    %14 = vector.shape_cast %13 : vector<32xf32> to vector<1x32xf32>
    %cst_12 = arith.constant 3.906250e-03 : f32
    %15 = vector.broadcast %cst_12 : f32 to vector<1x32xf32>
    %16 = arith.mulf %11, %15 : vector<1x32xf32>
    %cst_13 = arith.constant 3.906250e-03 : f32
    %17 = vector.broadcast %cst_13 : f32 to vector<1x32xf32>
    %18 = arith.mulf %14, %17 : vector<1x32xf32>
    %19 = arith.mulf %16, %16 : vector<1x32xf32>
    %20 = arith.subf %18, %19 : vector<1x32xf32>
    %cst_14 = arith.constant 0.000000e+00 : f32
    %21 = vector.broadcast %cst_14 : f32 to vector<1x32xf32>
    %22 = arith.maximumf %20, %21 : vector<1x32xf32>
    %cst_15 = arith.constant 9.99999974E-6 : f32
    %23 = vector.broadcast %cst_15 : f32 to vector<1x32xf32>
    %24 = arith.addf %22, %23 : vector<1x32xf32>
    %25 = math.rsqrt %24 : vector<1x32xf32>
    %26 = arith.mulf %25, %0 : vector<1x32xf32>
    %27 = vector.broadcast %16 : vector<1x32xf32> to vector<256x32xf32>
    %28 = arith.subf %9, %27 : vector<256x32xf32>
    %29 = vector.broadcast %26 : vector<1x32xf32> to vector<256x32xf32>
    %30 = arith.mulf %28, %29 : vector<256x32xf32>
    %31 = vector.broadcast %1 : vector<1x32xf32> to vector<256x32xf32>
    %32 = arith.addf %30, %31 : vector<256x32xf32>
    %c0_16 = arith.constant 0 : index
    %c0_17 = arith.constant 0 : index
    %33 = vector.load %arg1[%c0_16, %c0_17] : memref<32x128xf32, #tpu.memory_space<vmem>>, vector<32x128xf32>
    %cst_18 = arith.constant dense<0.000000e+00> : vector<256x128xf32>
    %34 = tpu.matmul %32, %33, %cst_18 {dimension_numbers = #tpu.dot_dimension_numbers<[1], [0], [0], [1], [0, 0, 1, 1], [], []>} : vector<256x32xf32>, vector<32x128xf32>, vector<256x128xf32> -> vector<256x128xf32>
    %35 = vector.broadcast %2 : vector<1x128xf32> to vector<256x128xf32>
    %36 = arith.addf %34, %35 : vector<256x128xf32>
    %cst_19 = arith.constant 0.000000e+00 : f32
    %37 = vector.broadcast %cst_19 : f32 to vector<256x128xf32>
    %38 = arith.cmpf oge, %36, %37 : vector<256x128xf32>
    %cst_20 = arith.constant 0.00999999977 : f32
    %39 = vector.broadcast %cst_20 : f32 to vector<256x128xf32>
    %40 = arith.mulf %39, %36 : vector<256x128xf32>
    %41 = arith.select %38, %36, %40 : vector<256x128xi1>, vector<256x128xf32>
    %cst_21 = arith.constant dense<0.000000e+00> : vector<128xf32>
    %42 = vector.multi_reduction <add>, %41, %cst_21 [0] : vector<256x128xf32> to vector<128xf32>
    %43 = vector.shape_cast %42 : vector<128xf32> to vector<1x128xf32>
    %44 = arith.mulf %41, %41 : vector<256x128xf32>
    %cst_22 = arith.constant dense<0.000000e+00> : vector<128xf32>
    %45 = vector.multi_reduction <add>, %44, %cst_22 [0] : vector<256x128xf32> to vector<128xf32>
    %46 = vector.shape_cast %45 : vector<128xf32> to vector<1x128xf32>
    %cst_23 = arith.constant 3.906250e-03 : f32
    %47 = vector.broadcast %cst_23 : f32 to vector<1x128xf32>
    %48 = arith.mulf %43, %47 : vector<1x128xf32>
    %cst_24 = arith.constant 3.906250e-03 : f32
    %49 = vector.broadcast %cst_24 : f32 to vector<1x128xf32>
    %50 = arith.mulf %46, %49 : vector<1x128xf32>
    %51 = arith.mulf %48, %48 : vector<1x128xf32>
    %52 = arith.subf %50, %51 : vector<1x128xf32>
    %cst_25 = arith.constant 0.000000e+00 : f32
    %53 = vector.broadcast %cst_25 : f32 to vector<1x128xf32>
    %54 = arith.maximumf %52, %53 : vector<1x128xf32>
    %cst_26 = arith.constant 9.99999974E-6 : f32
    %55 = vector.broadcast %cst_26 : f32 to vector<1x128xf32>
    %56 = arith.addf %54, %55 : vector<1x128xf32>
    %57 = math.rsqrt %56 : vector<1x128xf32>
    %58 = arith.mulf %57, %3 : vector<1x128xf32>
    %59 = vector.broadcast %48 : vector<1x128xf32> to vector<256x128xf32>
    %60 = arith.subf %41, %59 : vector<256x128xf32>
    %61 = vector.broadcast %58 : vector<1x128xf32> to vector<256x128xf32>
    %62 = arith.mulf %60, %61 : vector<256x128xf32>
    %63 = vector.broadcast %4 : vector<1x128xf32> to vector<256x128xf32>
    %64 = arith.addf %62, %63 : vector<256x128xf32>
    %c0_27 = arith.constant 0 : index
    %c0_28 = arith.constant 0 : index
    %65 = vector.load %arg2[%c0_27, %c0_28] : memref<128x128xf32, #tpu.memory_space<vmem>>, vector<128x128xf32>
    %cst_29 = arith.constant dense<0.000000e+00> : vector<256x128xf32>
    %66 = tpu.matmul %64, %65, %cst_29 {dimension_numbers = #tpu.dot_dimension_numbers<[1], [0], [0], [1], [0, 0, 1, 1], [], []>} : vector<256x128xf32>, vector<128x128xf32>, vector<256x128xf32> -> vector<256x128xf32>
    %67 = vector.broadcast %5 : vector<1x128xf32> to vector<256x128xf32>
    %68 = arith.addf %66, %67 : vector<256x128xf32>
    %cst_30 = arith.constant 0.000000e+00 : f32
    %69 = vector.broadcast %cst_30 : f32 to vector<256x128xf32>
    %70 = arith.cmpf oge, %68, %69 : vector<256x128xf32>
    %cst_31 = arith.constant 0.00999999977 : f32
    %71 = vector.broadcast %cst_31 : f32 to vector<256x128xf32>
    %72 = arith.mulf %71, %68 : vector<256x128xf32>
    %73 = arith.select %70, %68, %72 : vector<256x128xi1>, vector<256x128xf32>
    %cst_32 = arith.constant dense<0.000000e+00> : vector<128xf32>
    %74 = vector.multi_reduction <add>, %73, %cst_32 [0] : vector<256x128xf32> to vector<128xf32>
    %75 = vector.shape_cast %74 : vector<128xf32> to vector<1x128xf32>
    %76 = arith.mulf %73, %73 : vector<256x128xf32>
    %cst_33 = arith.constant dense<0.000000e+00> : vector<128xf32>
    %77 = vector.multi_reduction <add>, %76, %cst_33 [0] : vector<256x128xf32> to vector<128xf32>
    %78 = vector.shape_cast %77 : vector<128xf32> to vector<1x128xf32>
    %cst_34 = arith.constant 3.906250e-03 : f32
    %79 = vector.broadcast %cst_34 : f32 to vector<1x128xf32>
    %80 = arith.mulf %75, %79 : vector<1x128xf32>
    %cst_35 = arith.constant 3.906250e-03 : f32
    %81 = vector.broadcast %cst_35 : f32 to vector<1x128xf32>
    %82 = arith.mulf %78, %81 : vector<1x128xf32>
    %83 = arith.mulf %80, %80 : vector<1x128xf32>
    %84 = arith.subf %82, %83 : vector<1x128xf32>
    %cst_36 = arith.constant 0.000000e+00 : f32
    %85 = vector.broadcast %cst_36 : f32 to vector<1x128xf32>
    %86 = arith.maximumf %84, %85 : vector<1x128xf32>
    %cst_37 = arith.constant 9.99999974E-6 : f32
    %87 = vector.broadcast %cst_37 : f32 to vector<1x128xf32>
    %88 = arith.addf %86, %87 : vector<1x128xf32>
    %89 = math.rsqrt %88 : vector<1x128xf32>
    %90 = arith.mulf %89, %6 : vector<1x128xf32>
    %91 = vector.broadcast %80 : vector<1x128xf32> to vector<256x128xf32>
    %92 = arith.subf %73, %91 : vector<256x128xf32>
    %93 = vector.broadcast %90 : vector<1x128xf32> to vector<256x128xf32>
    %94 = arith.mulf %92, %93 : vector<256x128xf32>
    %95 = vector.broadcast %7 : vector<1x128xf32> to vector<256x128xf32>
    %96 = arith.addf %94, %95 : vector<256x128xf32>
    %c0_38 = arith.constant 0 : index
    %c0_39 = arith.constant 0 : index
    %97 = vector.load %arg3[%c0_38, %c0_39] : memref<128x128xf32, #tpu.memory_space<vmem>>, vector<128x128xf32>
    %cst_40 = arith.constant dense<0.000000e+00> : vector<256x128xf32>
    %98 = tpu.matmul %96, %97, %cst_40 {dimension_numbers = #tpu.dot_dimension_numbers<[1], [0], [0], [1], [0, 0, 1, 1], [], []>} : vector<256x128xf32>, vector<128x128xf32>, vector<256x128xf32> -> vector<256x128xf32>
    %99 = vector.broadcast %8 : vector<1x128xf32> to vector<256x128xf32>
    %100 = arith.addf %98, %99 : vector<256x128xf32>
    %101 = tpu.iota {dimensions = array<i32: 1>} : vector<1x128xi32>
    %c4_i32 = arith.constant 4 : i32
    %102 = vector.broadcast %c4_i32 : i32 to vector<1x128xi32>
    %103 = arith.cmpi slt, %101, %102 : vector<1x128xi32>
    %c20_i32 = arith.constant 20 : i32
    %104 = vector.broadcast %c20_i32 : i32 to vector<1x128xi32>
    %105 = arith.cmpi slt, %101, %104 : vector<1x128xi32>
    %cst_41 = arith.constant dense<true> : vector<1x128xi1>
    %106 = arith.xori %103, %cst_41 : vector<1x128xi1>
    %107 = arith.andi %105, %106 : vector<1x128xi1>
    %cst_42 = arith.constant -1.000000e+30 : f32
    %108 = vector.shape_cast %103 : vector<1x128xi1> to vector<1x128xi1>
    %109 = vector.broadcast %108 : vector<1x128xi1> to vector<256x128xi1>
    %110 = vector.broadcast %cst_42 : f32 to vector<256x128xf32>
    %111 = arith.select %109, %100, %110 : vector<256x128xi1>, vector<256x128xf32>
    %cst_43 = arith.constant dense<0xFF800000> : vector<256xf32>
    %112 = vector.multi_reduction <maximumf>, %111, %cst_43 [1] : vector<256x128xf32> to vector<256xf32>
    %113 = vector.shape_cast %112 : vector<256xf32> to vector<256x1xf32>
    %cst_44 = arith.constant -1.000000e+30 : f32
    %114 = vector.shape_cast %107 : vector<1x128xi1> to vector<1x128xi1>
    %115 = vector.broadcast %114 : vector<1x128xi1> to vector<256x128xi1>
    %116 = vector.broadcast %cst_44 : f32 to vector<256x128xf32>
    %117 = arith.select %115, %100, %116 : vector<256x128xi1>, vector<256x128xf32>
    %cst_45 = arith.constant dense<0xFF800000> : vector<256xf32>
    %118 = vector.multi_reduction <maximumf>, %117, %cst_45 [1] : vector<256x128xf32> to vector<256xf32>
    %119 = vector.shape_cast %118 : vector<256xf32> to vector<256x1xf32>
    %120 = vector.shape_cast %103 : vector<1x128xi1> to vector<1x128xi1>
    %121 = vector.broadcast %120 : vector<1x128xi1> to vector<256x128xi1>
    %122 = vector.shape_cast %113 : vector<256x1xf32> to vector<256x1xf32>
    %123 = vector.broadcast %122 : vector<256x1xf32> to vector<256x128xf32>
    %124 = vector.shape_cast %119 : vector<256x1xf32> to vector<256x1xf32>
    %125 = vector.broadcast %124 : vector<256x1xf32> to vector<256x128xf32>
    %126 = arith.select %121, %123, %125 : vector<256x128xi1>, vector<256x128xf32>
    %127 = arith.subf %100, %126 : vector<256x128xf32>
    %cst_46 = arith.constant -1.000000e+30 : f32
    %128 = vector.shape_cast %105 : vector<1x128xi1> to vector<1x128xi1>
    %129 = vector.broadcast %128 : vector<1x128xi1> to vector<256x128xi1>
    %130 = vector.broadcast %cst_46 : f32 to vector<256x128xf32>
    %131 = arith.select %129, %127, %130 : vector<256x128xi1>, vector<256x128xf32>
    %132 = math.exp %131 : vector<256x128xf32>
    %cst_47 = arith.constant 0.000000e+00 : f32
    %133 = vector.shape_cast %103 : vector<1x128xi1> to vector<1x128xi1>
    %134 = vector.broadcast %133 : vector<1x128xi1> to vector<256x128xi1>
    %135 = vector.broadcast %cst_47 : f32 to vector<256x128xf32>
    %136 = arith.select %134, %132, %135 : vector<256x128xi1>, vector<256x128xf32>
    %cst_48 = arith.constant dense<0.000000e+00> : vector<256xf32>
    %137 = vector.multi_reduction <add>, %136, %cst_48 [1] : vector<256x128xf32> to vector<256xf32>
    %138 = vector.shape_cast %137 : vector<256xf32> to vector<256x1xf32>
    %cst_49 = arith.constant 0.000000e+00 : f32
    %139 = vector.shape_cast %107 : vector<1x128xi1> to vector<1x128xi1>
    %140 = vector.broadcast %139 : vector<1x128xi1> to vector<256x128xi1>
    %141 = vector.broadcast %cst_49 : f32 to vector<256x128xf32>
    %142 = arith.select %140, %132, %141 : vector<256x128xi1>, vector<256x128xf32>
    %cst_50 = arith.constant dense<0.000000e+00> : vector<256xf32>
    %143 = vector.multi_reduction <add>, %142, %cst_50 [1] : vector<256x128xf32> to vector<256xf32>
    %144 = vector.shape_cast %143 : vector<256xf32> to vector<256x1xf32>
    %145 = tpu.reciprocal %138 {approx = true} : vector<256x1xf32> -> vector<256x1xf32>
    %146 = arith.mulf %138, %145 : vector<256x1xf32>
    %cst_51 = arith.constant 2.000000e+00 : f32
    %147 = vector.broadcast %cst_51 : f32 to vector<256x1xf32>
    %148 = arith.subf %147, %146 : vector<256x1xf32>
    %149 = arith.mulf %145, %148 : vector<256x1xf32>
    %150 = tpu.reciprocal %144 {approx = true} : vector<256x1xf32> -> vector<256x1xf32>
    %151 = arith.mulf %144, %150 : vector<256x1xf32>
    %cst_52 = arith.constant 2.000000e+00 : f32
    %152 = vector.broadcast %cst_52 : f32 to vector<256x1xf32>
    %153 = arith.subf %152, %151 : vector<256x1xf32>
    %154 = arith.mulf %150, %153 : vector<256x1xf32>
    %155 = vector.shape_cast %103 : vector<1x128xi1> to vector<1x128xi1>
    %156 = vector.broadcast %155 : vector<1x128xi1> to vector<256x128xi1>
    %157 = vector.shape_cast %149 : vector<256x1xf32> to vector<256x1xf32>
    %158 = vector.broadcast %157 : vector<256x1xf32> to vector<256x128xf32>
    %159 = vector.shape_cast %154 : vector<256x1xf32> to vector<256x1xf32>
    %160 = vector.broadcast %159 : vector<256x1xf32> to vector<256x128xf32>
    %161 = arith.select %156, %158, %160 : vector<256x128xi1>, vector<256x128xf32>
    %162 = arith.mulf %132, %161 : vector<256x128xf32>
    %c0_53 = arith.constant 0 : index
    %c0_54 = arith.constant 0 : index
    %163 = vector.load %arg5[%c0_53, %c0_54] : memref<256x128xf32, #tpu.memory_space<vmem>>, vector<256x128xf32>
    tpu.vector_store %arg5[%c0_53, %c0_54], %162 {strides = array<i32>} : memref<256x128xf32, #tpu.memory_space<vmem>>, vector<256x128xf32>,
    return
  }
}

</mosaic_0001>

<bundles_post_ra>
// kernel: tpu_custom_call.1
= control target key start
LH: loop header
LB: loop body
LE: loop exit
PB: predicated region body
PF: predicated region fallthrough
CT: control target
= control target key end

     0   :  { %vm62_vm0 = vcmask 261120   ;;  %s5541_s0 = inlined_call_operand.vmem [shape: f32[256,32], index: 0, kind: input, shape index: {}]   ;;  %s5542_s1 = inlined_call_operand.vmem [shape: f32[32,128], index: 1, kind: input, shape index: {}]   ;;  %s5543_s2 = inlined_call_operand.vmem [shape: f32[128,128], index: 2, kind: input, shape index: {}]   ;;  %s5544_s3 = inlined_call_operand.vmem [shape: f32[128,128], index: 3, kind: input, shape index: {}]   ;;  %s5545_s4 = inlined_call_operand.vmem [shape: f32[16,128], index: 4, kind: input, shape index: {}]   ;;  %s5546_s5 = inlined_call_operand.hbm [shape: f32[256,128], index: 5, kind: output, shape index: {}]  }
   0x1   :  { %v345_v0 = vld [vmem:[%s5542_s1] sm:$0xff]  ;;  %v346_v1 = vld [vmem:[%s5542_s1 + $0x8] sm:$0xff]  ;;  %v347_v2 = vld [vmem:[%s5542_s1 + $0x10] sm:$0xff] }
   0x2   :  { %v3102_v3 = vpack.c.bf16 %v346_v1, %v345_v0  ;;  %v348_v4 = vld [vmem:[%s5542_s1 + $0x18] sm:$0xff]  ;;  %v3453_v6 = vld [vmem:[%s5541_s0] sm:$0xff]  ;;  %v3458_v7 = vld [vmem:[%s5541_s0 + $0x8] sm:$0xff] }
   0x3   :  { %v3106_v5 = vpack.c.bf16 %v348_v4, %v347_v2  ;;  %v3463_v8 = vld [vmem:[%s5541_s0 + $0x10] sm:$0xff]  ;;  %v3468_v9 = vld [vmem:[%s5541_s0 + $0x18] sm:$0xff]  ;;  %v63_v10 = vsel %vm62_vm0, %v3453_v6, 0.0  ;;  %v64_v11 = vsel %vm62_vm0, %v3458_v7, 0.0  ;;  %v3479_v13 = vld [vmem:[%s5541_s0 + $0x20] sm:$0xff] }
   0x4   :  { %3103 = vmatprep.subr.bf16.mxu0 %v3102_v3  ;;  %v66_v12 = vsel %vm62_vm0, %v3463_v8, 0.0  ;;  %3174 = vmatprep.subr.bf16.mxu1 %v3102_v3  ;;  %v65_v14 = vadd.f32 %v64_v11, %v63_v10  ;;  %v68_v15 = vsel %vm62_vm0, %v3468_v9, 0.0  ;;  %v3486_v16 = vld [vmem:[%s5541_s0 + $0x28] sm:$0xff]  ;;  %v70_v18 = vsel %vm62_vm0, %v3479_v13, 0.0  ;;  %v3493_v19 = vld [vmem:[%s5541_s0 + $0x30] sm:$0xff]  ;;  %v3500_v22 = vld [vmem:[%s5541_s0 + $0x38] sm:$0xff] }
   0x5   :  { %3105 = vmatpush3.bf16.msra.mxu0 %v3102_v3  ;;  %3176 = vmatpush3.bf16.msra.mxu1 %v3102_v3  ;;  %v72_v21 = vsel %vm62_vm0, %v3486_v16, 0.0  ;;  %v74_v24 = vsel %vm62_vm0, %v3493_v19, 0.0  ;;  %v3507_v25 = vld [vmem:[%s5541_s0 + $0x40] sm:$0xff]  ;;  %v76_v27 = vsel %vm62_vm0, %v3500_v22, 0.0 }
   0x6   :  { %3107 = vmatprep.subr.bf16.mxu0 %v3106_v5  ;;  %3175 = vmatprep.subr.bf16.mxu1 %v3106_v5  ;;  %v67_v17 = vadd.f32 %v66_v12, %v65_v14 }
   0x8   :  { %v69_v20 = vadd.f32 %v68_v15, %v67_v17 }
   0x9   :  { %3109 = vmatpush3.bf16.msra.mxu0 %v3106_v5  ;;  %3177 = vmatpush3.bf16.msra.mxu1 %v3106_v5 }
   0xa   :  { %v71_v23 = vadd.f32 %v70_v18, %v69_v20 }
   0xc   :  { %v73_v26 = vadd.f32 %v72_v21, %v71_v23 }
   0xd   :  { %10 = vsyncpa [#allocation3], 0  ;;  %v3514_v28 = vld [vmem:[%s5541_s0 + $0x48] sm:$0xff]  ;;  %v78_v30 = vsel %vm62_vm0, %v3507_v25, 0.0  ;;  %v3521_v31 = vld [vmem:[%s5541_s0 + $0x50] sm:$0xff]  ;;  %v132_v35 = vmul.f32 %v3453_v6, %v3453_v6  ;;  %v133_v36 = vmul.f32 %v3458_v7, %v3458_v7  ;;  %v134_v37 = vmul.f32 %v3463_v8, %v3463_v8 }
   0xe   :  { %v75_v29 = vadd.f32 %v74_v24, %v73_v26  ;;  %v3526_v33 = vld [vmem:[%s5541_s0 + $0x58] sm:$0xff]  ;;  %v80_v34 = vsel %vm62_vm0, %v3514_v28, 0.0  ;;  %v82_v39 = vsel %vm62_vm0, %v3521_v31, 0.0  ;;  %v135_v40 = vmul.f32 %v3468_v9, %v3468_v9  ;;  %v3543_v41 = vld [vmem:[%s5541_s0 + $0x60] sm:$0xff]  ;;  %v3555_v48 = vld [vmem:[%s5541_s0 + $0x68] sm:$0xff] }
   0xf   :  { %v84_v43 = vsel %vm62_vm0, %v3526_v33, 0.0  ;;  %v136_v44 = vmul.f32 %v3479_v13, %v3479_v13  ;;  %v164_v45 = vsel %vm62_vm0, %v132_v35, 0.0  ;;  %v165_v46 = vsel %vm62_vm0, %v133_v36, 0.0  ;;  %v3565_v54 = vld [vmem:[%s5541_s0 + $0x70] sm:$0xff]  ;;  %v3575_v60 = vld [vmem:[%s5541_s0 + $0x78] sm:$0xff]  ;;  %v3585_v2 = vld [vmem:[%s5541_s0 + $0x80] sm:$0xff] }
  0x10   :  { %v77_v32 = vadd.f32 %v76_v27, %v75_v29  ;;  %v167_v47 = vsel %vm62_vm0, %v134_v37, 0.0  ;;  %v166_v50 = vadd.f32 %v165_v46, %v164_v45  ;;  %v86_v51 = vsel %vm62_vm0, %v3543_v41, 0.0  ;;  %v3595_v12 = vld [vmem:[%s5541_s0 + $0x88] sm:$0xff]  ;;  %v3605_v21 = vld [vmem:[%s5541_s0 + $0x90] sm:$0xff] }
  0x11   :  { %v137_v52 = vmul.f32 %v3486_v16, %v3486_v16  ;;  %v169_v53 = vsel %vm62_vm0, %v135_v40, 0.0  ;;  %v88_v57 = vsel %vm62_vm0, %v3555_v48, 0.0  ;;  %v138_v58 = vmul.f32 %v3493_v19, %v3493_v19  ;;  %v3635_v45 = vld [vmem:[%s5541_s0 + $0xa8] sm:$0xff] }
  0x12   :  { %v79_v38 = vadd.f32 %v78_v30, %v77_v32  ;;  %v168_v56 = vadd.f32 %v167_v47, %v166_v50  ;;  %v171_v59 = vsel %vm62_vm0, %v136_v44, 0.0  ;;  %v90_v63 = vsel %vm62_vm0, %v3565_v54, 0.0  ;;  %v3615_v30 = vld [vmem:[%s5541_s0 + $0x98] sm:$0xff] }
  0x13   :  { %v139_v0 = vmul.f32 %v3500_v22, %v3500_v22  ;;  %v173_v1 = vsel %vm62_vm0, %v137_v52, 0.0  ;;  %v92_v5 = vsel %vm62_vm0, %v3575_v60, 0.0  ;;  %v140_v10 = vmul.f32 %v3507_v25, %v3507_v25  ;;  %v3645_v52 = vld [vmem:[%s5541_s0 + $0xb0] sm:$0xff] }
  0x14   :  { %v81_v42 = vadd.f32 %v80_v34, %v79_v38  ;;  %v170_v62 = vadd.f32 %v169_v53, %v168_v56  ;;  %v175_v11 = vsel %vm62_vm0, %v138_v58, 0.0  ;;  %v94_v17 = vsel %vm62_vm0, %v3585_v2, 0.0  ;;  %v3625_v38 = vld [vmem:[%s5541_s0 + $0xa0] sm:$0xff] }
  0x15   :  { %v141_v18 = vmul.f32 %v3514_v28, %v3514_v28  ;;  %v177_v20 = vsel %vm62_vm0, %v139_v0, 0.0  ;;  %v96_v26 = vsel %vm62_vm0, %v3595_v12, 0.0  ;;  %v142_v27 = vmul.f32 %v3521_v31, %v3521_v31 }
  0x16   :  { %v83_v49 = vadd.f32 %v82_v39, %v81_v42  ;;  %v172_v4 = vadd.f32 %v171_v59, %v170_v62  ;;  %v179_v29 = vsel %vm62_vm0, %v140_v10, 0.0  ;;  %v98_v35 = vsel %vm62_vm0, %v3605_v21, 0.0  ;;  %v3655_v59 = vld [vmem:[%s5541_s0 + $0xb8] sm:$0xff] }
  0x17   :  { %v143_v36 = vmul.f32 %v3526_v33, %v3526_v33  ;;  %v181_v37 = vsel %vm62_vm0, %v141_v18, 0.0  ;;  %v100_v42 = vsel %vm62_vm0, %v3615_v30, 0.0  ;;  %v183_v44 = vsel %vm62_vm0, %v142_v27, 0.0 }
  0x18   :  { %v85_v55 = vadd.f32 %v84_v43, %v83_v49  ;;  %v174_v15 = vadd.f32 %v173_v1, %v172_v4  ;;  %v144_v43 = vmul.f32 %v3543_v41, %v3543_v41  ;;  %v102_v49 = vsel %vm62_vm0, %v3625_v38, 0.0 }
  0x19   :  { %v145_v50 = vmul.f32 %v3555_v48, %v3555_v48  ;;  %v104_v56 = vsel %vm62_vm0, %v3635_v45, 0.0  ;;  %v147_v0 = vmul.f32 %v3575_v60, %v3575_v60  ;;  %v108_v10 = vsel %vm62_vm0, %v3655_v59, 0.0 }
  0x1a   :  { %v87_v61 = vadd.f32 %v86_v51, %v85_v55  ;;  %v176_v24 = vadd.f32 %v175_v11, %v174_v15  ;;  %v185_v51 = vsel %vm62_vm0, %v143_v36, 0.0  ;;  %v187_v58 = vsel %vm62_vm0, %v144_v43, 0.0  ;;  %v3675_v15 = vld [vmem:[%s5541_s0 + $0xc8] sm:$0xff]  ;;  %v3695_v36 = vld [vmem:[%s5541_s0 + $0xd8] sm:$0xff] }
  0x1b   :  { %v189_v1 = vsel %vm62_vm0, %v145_v50, 0.0  ;;  %v148_v11 = vmul.f32 %v3585_v2, %v3585_v2  ;;  %v152_v50 = vmul.f32 %v3625_v38, %v3625_v38 }
  0x1c   :  { %v89_v3 = vadd.f32 %v88_v57, %v87_v61  ;;  %v178_v34 = vadd.f32 %v177_v20, %v176_v24  ;;  %v146_v57 = vmul.f32 %v3565_v54, %v3565_v54  ;;  %v193_v24 = vsel %vm62_vm0, %v147_v0, 0.0 }
  0x1e   :  { %v91_v14 = vadd.f32 %v90_v63, %v89_v3  ;;  %v180_v40 = vadd.f32 %v179_v29, %v178_v34  ;;  %v106_v63 = vsel %vm62_vm0, %v3645_v52, 0.0  ;;  %v3665_v3 = vld [vmem:[%s5541_s0 + $0xc0] sm:$0xff]  ;;  %v150_v34 = vmul.f32 %v3605_v21, %v3605_v21 }
  0x1f   :  { %v110_v20 = vsel %vm62_vm0, %v3665_v3, 0.0 }
  0x20   :  { %v93_v23 = vadd.f32 %v92_v5, %v91_v14  ;;  %v182_v47 = vadd.f32 %v181_v37, %v180_v40  ;;  %v191_v14 = vsel %vm62_vm0, %v146_v57, 0.0 }
  0x22   :  { %v95_v32 = vadd.f32 %v94_v17, %v93_v23  ;;  %v184_v55 = vadd.f32 %v183_v44, %v182_v47  ;;  %v149_v23 = vmul.f32 %v3595_v12, %v3595_v12  ;;  %v3705_v44 = vld [vmem:[%s5541_s0 + $0xe0] sm:$0xff] }
  0x23   :  { %v118_v57 = vsel %vm62_vm0, %v3705_v44, 0.0 }
  0x24   :  { %v97_v39 = vadd.f32 %v96_v26, %v95_v32  ;;  %v186_v62 = vadd.f32 %v185_v51, %v184_v55  ;;  %v3685_v26 = vld [vmem:[%s5541_s0 + $0xd0] sm:$0xff]  ;;  %v112_v32 = vsel %vm62_vm0, %v3675_v15, 0.0  ;;  %v197_v43 = vsel %vm62_vm0, %v149_v23, 0.0 }
  0x25   :  { %v114_v40 = vsel %vm62_vm0, %v3685_v26, 0.0  ;;  %v199_v51 = vsel %vm62_vm0, %v150_v34, 0.0 }
  0x26   :  { %v99_v46 = vadd.f32 %v98_v35, %v97_v39  ;;  %v188_v5 = vadd.f32 %v187_v58, %v186_v62  ;;  %v195_v35 = vsel %vm62_vm0, %v148_v11, 0.0  ;;  %v153_v58 = vmul.f32 %v3635_v45, %v3635_v45  ;;  %v3725_v62 = vld [vmem:[%s5541_s0 + $0xf0] sm:$0xff] }
  0x28   :  { %v101_v53 = vadd.f32 %v100_v42, %v99_v46  ;;  %v190_v18 = vadd.f32 %v189_v1, %v188_v5  ;;  %v151_v42 = vmul.f32 %v3615_v30, %v3615_v30  ;;  %v203_v5 = vsel %vm62_vm0, %v152_v50, 0.0 }
  0x29   :  { %v159_v50 = vmul.f32 %v3695_v36, %v3695_v36 }
  0x2a   :  { %v103_v61 = vadd.f32 %v102_v49, %v101_v53  ;;  %v192_v29 = vadd.f32 %v191_v14, %v190_v18  ;;  %v116_v49 = vsel %vm62_vm0, %v3695_v36, 0.0  ;;  %v3715_v53 = vld [vmem:[%s5541_s0 + $0xe8] sm:$0xff]  ;;  %v155_v18 = vmul.f32 %v3655_v59, %v3655_v59 }
  0x2b   :  { %v120_v1 = vsel %vm62_vm0, %v3715_v53, 0.0 }
  0x2c   :  { %v105_v4 = vadd.f32 %v104_v56, %v103_v61  ;;  %v194_v39 = vadd.f32 %v193_v24, %v192_v29  ;;  %v201_v61 = vsel %vm62_vm0, %v151_v42, 0.0  ;;  %v156_v29 = vmul.f32 %v3665_v3, %v3665_v3 }
  0x2e   :  { %v107_v17 = vadd.f32 %v106_v63, %v105_v4  ;;  %v196_v47 = vadd.f32 %v195_v35, %v194_v39  ;;  %v154_v4 = vmul.f32 %v3645_v52, %v3645_v52  ;;  %v209_v39 = vsel %vm62_vm0, %v155_v18, 0.0 }
  0x30   :  { %v109_v27 = vadd.f32 %v108_v10, %v107_v17  ;;  %v198_v56 = vadd.f32 %v197_v43, %v196_v47  ;;  %v3735_v10 = vld [vmem:[%s5541_s0 + $0xf8] sm:$0xff]  ;;  %v122_v17 = vsel %vm62_vm0, %v3725_v62, 0.0  ;;  %v158_v43 = vmul.f32 %v3685_v26, %v3685_v26 }
  0x32   :  { %v111_v37 = vadd.f32 %v110_v20, %v109_v27  ;;  %v200_v0 = vadd.f32 %v199_v51, %v198_v56  ;;  %v205_v20 = vsel %vm62_vm0, %v153_v58, 0.0  ;;  %v124_v27 = vsel %vm62_vm0, %v3735_v10, 0.0 }
  0x33   :  { %v160_v56 = vmul.f32 %v3705_v44, %v3705_v44 }
  0x34   :  { %v113_v46 = vadd.f32 %v112_v32, %v111_v37  ;;  %v202_v14 = vadd.f32 %v201_v61, %v200_v0  ;;  %v207_v32 = vsel %vm62_vm0, %v154_v4, 0.0  ;;  %v157_v37 = vmul.f32 %v3675_v15, %v3675_v15 }
  0x35   :  { %v217_v0 = vsel %vm62_vm0, %v159_v50, 0.0  ;;  %v162_v4 = vmul.f32 %v3725_v62, %v3725_v62 }
  0x36   :  { %v115_v55 = vadd.f32 %v114_v40, %v113_v46  ;;  %v204_v24 = vadd.f32 %v203_v5, %v202_v14  ;;  %v211_v46 = vsel %vm62_vm0, %v156_v29, 0.0  ;;  %v213_v51 = vsel %vm62_vm0, %v157_v37, 0.0 }
  0x37   :  { %v219_v5 = vsel %vm62_vm0, %v160_v56, 0.0 }
  0x38   :  { %v117_v63 = vadd.f32 %v116_v49, %v115_v55  ;;  %v206_v35 = vadd.f32 %v205_v20, %v204_v24 }
  0x3a   :  { %v119_v11 = vadd.f32 %v118_v57, %v117_v63  ;;  %v208_v42 = vadd.f32 %v207_v32, %v206_v35  ;;  %v215_v57 = vsel %vm62_vm0, %v158_v43, 0.0  ;;  %v161_v63 = vmul.f32 %v3715_v53, %v3715_v53 }
  0x3c   :  { %v121_v23 = vadd.f32 %v120_v1, %v119_v11  ;;  %v210_v49 = vadd.f32 %v209_v39, %v208_v42  ;;  %v221_v18 = vsel %vm62_vm0, %v161_v63, 0.0  ;;  %v21_v63 = vld [vmem:[%s5545_s4] sm:$0x1] }
  0x3e   :  { %v123_v34 = vadd.f32 %v122_v17, %v121_v23  ;;  %v212_v55 = vadd.f32 %v211_v46, %v210_v49  ;;  %v163_v17 = vmul.f32 %v3735_v10, %v3735_v10  ;;  %v223_v23 = vsel %vm62_vm0, %v162_v4, 0.0 }
  0x40   :  { %v125_v40 = vadd.f32 %v124_v27, %v123_v34  ;;  %v214_v61 = vadd.f32 %v213_v51, %v212_v55  ;;  %v225_v29 = vsel %vm62_vm0, %v163_v17, 0.0 }
  0x42   :  { %v126_v47 = vrot.slane %v125_v40, 4  ;;  %v216_v1 = vadd.f32 %v215_v57, %v214_v61 }
  0x44   :  { %v127_v58 = vadd.f32 %v126_v47, %v125_v40  ;;  %v218_v14 = vadd.f32 %v217_v0, %v216_v1 }
  0x46   :  { %v128_v11 = vrot.slane %v127_v58, 2  ;;  %v220_v20 = vadd.f32 %v219_v5, %v218_v14 }
  0x48   :  { %v129_v24 = vadd.f32 %v128_v11, %v127_v58  ;;  %v222_v27 = vadd.f32 %v221_v18, %v220_v20  ;;  %v273_v58 = vlaneseq }
  0x4a   :  { %v224_v32 = vadd.f32 %v223_v23, %v222_v27  ;;  %v130_v34 = vrot.slane %v129_v24, 1  ;;  %v274_v61 = vshrl.u32 %v273_v58, 7  ;;  %v3796_v23 = vld [vmem:[%s5545_s4 + $0x1] ss:$0 sm:$0xff] }
  0x4c   :  { %v226_v35 = vadd.f32 %v225_v29, %v224_v32  ;;  %v131_v39 = vadd.f32 %v130_v34, %v129_v24  ;;  %v3778_v0 = vsub.s32 0, %v274_v61 }
  0x4e   :  { %v227_v37 = vrot.slane %v226_v35, 4  ;;  %v3770_v46 = vmul.f32 0.00390625, %v131_v39 }
  0x50   :  { %v228_v40 = vadd.f32 %v227_v37, %v226_v35  ;;  %v235_v50 = vmul.f32 %v3770_v46, %v3770_v46  ;;  %v241_v5 = vsub.f32 %v3453_v6, %v3770_v46  ;;  %v242_v11 = vsub.f32 %v3458_v7, %v3770_v46 }
  0x51   :  { %v243_v14 = vsub.f32 %v3463_v8, %v3770_v46  ;;  %v244_v17 = vsub.f32 %v3468_v9, %v3770_v46  ;;  %v245_v20 = vsub.f32 %v3479_v13, %v3770_v46  ;;  %v246_v9 = vsub.f32 %v3486_v16, %v3770_v46 }
  0x52   :  { %v229_v42 = vrot.slane %v228_v40, 2  ;;  %v247_v27 = vsub.f32 %v3493_v19, %v3770_v46  ;;  %v248_v35 = vsub.f32 %v3500_v22, %v3770_v46  ;;  %v249_v37 = vsub.f32 %v3507_v25, %v3770_v46 }
  0x53   :  { %v257_v16 = vsub.f32 %v3585_v2, %v3770_v46  ;;  %v258_v19 = vsub.f32 %v3595_v12, %v3770_v46  ;;  %v259_v39 = vsub.f32 %v3605_v21, %v3770_v46  ;;  %v260_v25 = vsub.f32 %v3615_v30, %v3770_v46 }
  0x54   :  { %v230_v43 = vadd.f32 %v229_v42, %v228_v40  ;;  %v261_v12 = vsub.f32 %v3625_v38, %v3770_v46  ;;  %v250_v21 = vsub.f32 %v3514_v28, %v3770_v46 }
  0x56   :  { %v231_v47 = vrot.slane %v230_v43, 1 }
  0x58   :  { %v232_v49 = vadd.f32 %v231_v47, %v230_v43  ;;  %v251_v43 = vsub.f32 %v3521_v31, %v3770_v46  ;;  %v262_v47 = vsub.f32 %v3635_v45, %v3770_v46 }
  0x5a   :  { %v234_v51 = vmul.f32 0.00390625, %v232_v49  ;;  %v263_v49 = vsub.f32 %v3645_v52, %v3770_v46 }
  0x5c   :  { %v236_v55 = vsub.f32 %v234_v51, %v235_v50 }
  0x5e   :  { %v237_v56 = vmax.f32 %v236_v55, 0.0 }
  0x60   :  { %v238_v57 = vadd.f32 1e-05, %v237_v56 }
  0x62   :  { %3182 = vrsqrt.f32 %v238_v57 }
  0x6c   :  { %v3183_v1 = vpop.eup %3182 }
  0x6d   :  { %v240_v4 = vmul.f32 %v3183_v1, %v21_v63  ;;  %v252_v63 = vsub.f32 %v3526_v33, %v3770_v46  ;;  %v253_v1 = vsub.f32 %v3543_v41, %v3770_v46 }
  0x6f   :  { %v3789_v18 = vrot.slane %v240_v4, %v3778_v0 }
  0x71   :  { %v277_v6 = vmul.f32 %v3789_v18, %v241_v5  ;;  %v278_v7 = vmul.f32 %v3789_v18, %v242_v11  ;;  %v279_v8 = vmul.f32 %v3789_v18, %v243_v14  ;;  %v280_v24 = vmul.f32 %v3789_v18, %v244_v17 }
  0x72   :  { %v281_v34 = vmul.f32 %v3789_v18, %v245_v20  ;;  %v282_v22 = vmul.f32 %v3789_v18, %v246_v9  ;;  %v283_v42 = vmul.f32 %v3789_v18, %v247_v27  ;;  %v284_v30 = vmul.f32 %v3789_v18, %v248_v35 }
  0x73   :  { %v313_v13 = vadd.f32 %v3796_v23, %v277_v6  ;;  %v314_v29 = vadd.f32 %v3796_v23, %v278_v7  ;;  %v315_v32 = vadd.f32 %v3796_v23, %v279_v8  ;;  %v316_v40 = vadd.f32 %v3796_v23, %v280_v24 }
  0x74   :  { %v317_v2 = vadd.f32 %v3796_v23, %v281_v34  ;;  %v293_v50 = vmul.f32 %v3789_v18, %v257_v16  ;;  %v294_v51 = vmul.f32 %v3789_v18, %v258_v19  ;;  %v295_v38 = vmul.f32 %v3789_v18, %v259_v39 }
  0x75   :  { %2894 = vmatprep.mubr.msk.f32.mxu0 %vm62_vm0, %v313_v13  ;;  %v318_v28 = vadd.f32 %v3796_v23, %v282_v22  ;;  %v319_v31 = vadd.f32 %v3796_v23, %v283_v42  ;;  %v285_v55 = vmul.f32 %v3789_v18, %v249_v37  ;;  %v296_v45 = vmul.f32 %v3789_v18, %v260_v25 }
  0x76   :  { %2895 = vmatmul.mubr.msk.f32.vlgmr.msra.gmra.mrb[0].mxu0 %vm62_vm0, %v314_v29  ;;  %v329_v52 = vadd.f32 %v3796_v23, %v293_v50  ;;  %v330_v56 = vadd.f32 %v3796_v23, %v294_v51  ;;  %v331_v57 = vadd.f32 %v3796_v23, %v295_v38  ;;  %v297_v61 = vmul.f32 %v3789_v18, %v261_v12 }
  0x77   :  { %2897 = vmatprep.mubr.msk.f32.mxu0 %vm62_vm0, %v315_v32  ;;  %v320_v4 = vadd.f32 %v3796_v23, %v284_v30  ;;  %v286_v5 = vmul.f32 %v3789_v18, %v250_v21  ;;  %v264_v11 = vsub.f32 %v3655_v59, %v3770_v46  ;;  %v265_v14 = vsub.f32 %v3665_v3, %v3770_v46 }
  0x78   :  { %2918 = vmatprep.mubr.msk.f32.mxu1 %vm62_vm0, %v329_v52  ;;  %v287_v17 = vmul.f32 %v3789_v18, %v251_v43  ;;  %v332_v33 = vadd.f32 %v3796_v23, %v296_v45  ;;  %v298_v41 = vmul.f32 %v3789_v18, %v262_v47  ;;  %v321_v20 = vadd.f32 %v3796_v23, %v285_v55  ;;  %v988_v55 = vld [vmem:[%s5543_s2] sm:$0xff]  ;;  %v990_v52 = vld [vmem:[%s5543_s2 + $0x10] sm:$0xff] }
  0x79   :  { %2919 = vmatmul.mubr.msk.f32.vlgmr.msra.gmra.mrb[0].mxu1 %vm62_vm0, %v330_v56  ;;  %v333_v59 = vadd.f32 %v3796_v23, %v297_v61  ;;  %v299_v3 = vmul.f32 %v3789_v18, %v263_v49  ;;  %v254_v6 = vsub.f32 %v3555_v48, %v3770_v46  ;;  %v255_v7 = vsub.f32 %v3565_v54, %v3770_v46  ;;  %v993_v61 = vld [vmem:[%s5543_s2 + $0x28] sm:$0xff] }
  0x7a   :  { %2898 = vmatmul.mubr.msk.f32.gmra.mrb[2].mxu0 %vm62_vm0, %v316_v40  ;;  %2921 = vmatprep.mubr.msk.f32.mxu1 %vm62_vm0, %v331_v57  ;;  %v288_v8 = vmul.f32 %v3789_v18, %v252_v63  ;;  %v289_v24 = vmul.f32 %v3789_v18, %v253_v1  ;;  %v266_v9 = vsub.f32 %v3675_v15, %v3770_v46  ;;  %v992_v57 = vld [vmem:[%s5543_s2 + $0x20] sm:$0xff]  ;;  %v994_v1 = vld [vmem:[%s5543_s2 + $0x30] sm:$0xff] }
  0x7b   :  { %2900 = vmatprep.mubr.msk.f32.mxu0 %vm62_vm0, %v317_v2  ;;  %v267_v27 = vsub.f32 %v3685_v26, %v3770_v46  ;;  %v322_v13 = vadd.f32 %v3796_v23, %v286_v5  ;;  %v334_v48 = vadd.f32 %v3796_v23, %v298_v41  ;;  %v300_v54 = vmul.f32 %v3789_v18, %v264_v11  ;;  %v996_v11 = vld [vmem:[%s5543_s2 + $0x40] sm:$0xff]  ;;  %v999_v41 = vld [vmem:[%s5543_s2 + $0x58] sm:$0xff] }
  0x7c   :  { %v323_v29 = vadd.f32 %v3796_v23, %v287_v17  ;;  %v335_v15 = vadd.f32 %v3796_v23, %v299_v3  ;;  %v301_v26 = vmul.f32 %v3789_v18, %v265_v14  ;;  %v256_v32 = vsub.f32 %v3575_v60, %v3770_v46  ;;  %v997_v14 = vld [vmem:[%s5543_s2 + $0x48] sm:$0xff] }
  0x7d   :  { %2922 = vmatmul.mubr.msk.f32.gmra.mrb[2].mxu1 %vm62_vm0, %v332_v33  ;;  %v290_v34 = vmul.f32 %v3789_v18, %v254_v6  ;;  %v291_v35 = vmul.f32 %v3789_v18, %v255_v7  ;;  %v268_v37 = vsub.f32 %v3695_v36, %v3770_v46  ;;  %v269_v16 = vsub.f32 %v3705_v44, %v3770_v46  ;;  %v998_v33 = vld [vmem:[%s5543_s2 + $0x50] sm:$0xff]  ;;  %v1001_v3 = vld [vmem:[%s5543_s2 + $0x68] sm:$0xff] }
  0x7e   :  { %2901 = vmatmul.mubr.msk.f32.gmra.mrb[4].mxu0 %vm62_vm0, %v318_v28  ;;  %2924 = vmatprep.mubr.msk.f32.mxu1 %vm62_vm0, %v333_v59  ;;  %v324_v19 = vadd.f32 %v3796_v23, %v288_v8  ;;  %v336_v39 = vadd.f32 %v3796_v23, %v300_v54  ;;  %v302_v60 = vmul.f32 %v3789_v18, %v266_v9  ;;  %v1000_v59 = vld [vmem:[%s5543_s2 + $0x60] sm:$0xff]  ;;  %v1002_v6 = vld [vmem:[%s5543_s2 + $0x70] sm:$0xff]  ;;  %v1003_v8 = vld [vmem:[%s5543_s2 + $0x78] sm:$0xff] }
  0x7f   :  { %2903 = vmatprep.mubr.msk.f32.mxu0 %vm62_vm0, %v319_v31  ;;  %v325_v40 = vadd.f32 %v3796_v23, %v289_v24  ;;  %v337_v36 = vadd.f32 %v3796_v23, %v301_v26  ;;  %v303_v44 = vmul.f32 %v3789_v18, %v267_v27  ;;  %v292_v22 = vmul.f32 %v3789_v18, %v256_v32  ;;  %v3999_v9 = vld [vmem:[%s5545_s4 + $0x2] ss:$0 sm:$0xff] }
  0x80   :  { %v270_v42 = vsub.f32 %v3715_v53, %v3770_v46  ;;  %v271_v25 = vsub.f32 %v3725_v62, %v3770_v46  ;;  %v326_v2 = vadd.f32 %v3796_v23, %v290_v34  ;;  %v338_v12 = vadd.f32 %v3796_v23, %v302_v60 }
  0x81   :  { %2925 = vmatmul.mubr.msk.f32.gmra.mrb[4].mxu1 %vm62_vm0, %v334_v48  ;;  %v304_v21 = vmul.f32 %v3789_v18, %v268_v37  ;;  %v327_v43 = vadd.f32 %v3796_v23, %v291_v35  ;;  %v339_v53 = vadd.f32 %v3796_v23, %v303_v44  ;;  %v305_v62 = vmul.f32 %v3789_v18, %v269_v16 }
  0x82   :  { %2904 = vmatmul.mubr.msk.f32.gmra.mrb[6].mxu0 %vm62_vm0, %v320_v4  ;;  %2927 = vmatprep.mubr.msk.f32.mxu1 %vm62_vm0, %v335_v15  ;;  %v272_v47 = vsub.f32 %v3735_v10, %v3770_v46  ;;  %v328_v49 = vadd.f32 %v3796_v23, %v292_v22  ;;  %v306_v50 = vmul.f32 %v3789_v18, %v270_v42  ;;  %v995_v4 = vld [vmem:[%s5543_s2 + $0x38] sm:$0xff] }
  0x83   :  { %2906 = vmatprep.mubr.msk.f32.mxu0 %vm62_vm0, %v321_v20  ;;  %v340_v30 = vadd.f32 %v3796_v23, %v304_v21  ;;  %v341_v51 = vadd.f32 %v3796_v23, %v305_v62  ;;  %v307_v38 = vmul.f32 %v3789_v18, %v271_v25  ;;  %v3118_v63 = vpack.c.bf16 %v993_v61, %v992_v57 }
  0x84   :  { %v342_v10 = vadd.f32 %v3796_v23, %v306_v50  ;;  %v308_v46 = vmul.f32 %v3789_v18, %v272_v47  ;;  %v989_v18 = vld [vmem:[%s5543_s2 + $0x8] sm:$0xff]  ;;  %v3122_v5 = vpack.c.bf16 %v995_v4, %v994_v1  ;;  %v3126_v17 = vpack.c.bf16 %v997_v14, %v996_v11 }
  0x85   :  { %2928 = vmatmul.mubr.msk.f32.gmra.mrb[6].mxu1 %vm62_vm0, %v336_v39  ;;  %v343_v28 = vadd.f32 %v3796_v23, %v307_v38  ;;  %v3110_v45 = vpack.c.bf16 %v989_v18, %v988_v55  ;;  %v3130_v20 = vpack.c.bf16 %v999_v41, %v998_v33  ;;  %v3134_v7 = vpack.c.bf16 %v1001_v3, %v1000_v59 }
  0x86   :  { %2907 = vmatmul.mubr.msk.f32.gmra.mrb[8].mxu0 %vm62_vm0, %v322_v13  ;;  %2930 = vmatprep.mubr.msk.f32.mxu1 %vm62_vm0, %v337_v36  ;;  %v344_v31 = vadd.f32 %v3796_v23, %v308_v46  ;;  %v991_v23 = vld [vmem:[%s5543_s2 + $0x18] sm:$0xff]  ;;  %v3138_v24 = vpack.c.bf16 %v1003_v8, %v1002_v6 }
  0x87   :  { %2909 = vmatprep.mubr.msk.f32.mxu0 %vm62_vm0, %v323_v29  ;;  %3111 = vmatprep.subr.bf16.mxu1 %v3110_v45  ;;  %v3114_v56 = vpack.c.bf16 %v991_v23, %v990_v52 }
  0x88   :  { %3113 = vmatpush3.bf16.msra.mxu1 %v3110_v45 }
  0x89   :  { %2931 = vmatmul.mubr.msk.f32.gmra.mrb[8].mxu1 %vm62_vm0, %v338_v12  ;;  %3115 = vmatprep.subr.bf16.mxu1 %v3114_v56 }
  0x8a   :  { %2910 = vmatmul.mubr.msk.f32.gmra.mrb[10].mxu0 %vm62_vm0, %v324_v19  ;;  %2933 = vmatprep.mubr.msk.f32.mxu1 %vm62_vm0, %v339_v53 }
  0x8b   :  { %2912 = vmatprep.mubr.msk.f32.mxu0 %vm62_vm0, %v325_v40 }
  0x8c   :  { %3117 = vmatpush3.bf16.msra.mxu1 %v3114_v56 }
  0x8d   :  { %2934 = vmatmul.mubr.msk.f32.gmra.mrb[10].mxu1 %vm62_vm0, %v340_v30  ;;  %3119 = vmatprep.subr.bf16.mxu1 %v3118_v63 }
  0x8e   :  { %2913 = vmatmul.mubr.msk.f32.gmra.mrb[12].mxu0 %vm62_vm0, %v326_v2  ;;  %2936 = vmatprep.mubr.msk.f32.mxu1 %vm62_vm0, %v341_v51 }
  0x8f   :  { %2915 = vmatprep.mubr.msk.f32.mxu0 %vm62_vm0, %v327_v43 }
  0x90   :  { %3121 = vmatpush3.bf16.msra.mxu1 %v3118_v63 }
  0x91   :  { %2937 = vmatmul.mubr.msk.f32.gmra.mrb[12].mxu1 %vm62_vm0, %v342_v10  ;;  %3123 = vmatprep.subr.bf16.mxu1 %v3122_v5 }
  0x92   :  { %2916 = vmatmul.mubr.msk.f32.gmra.mrb[14].mxu0 %vm62_vm0, %v328_v49  ;;  %2939 = vmatprep.mubr.msk.f32.mxu1 %vm62_vm0, %v343_v28 }
  0x94   :  { %3125 = vmatpush3.bf16.msra.mxu1 %v3122_v5 }
  0x95   :  { %2940 = vmatmul.mubr.msk.f32.gmra.mrb[14].mxu1 %vm62_vm0, %v344_v31  ;;  %3127 = vmatprep.subr.bf16.mxu1 %v3126_v17 }
  0x98   :  { %3129 = vmatpush3.bf16.msra.mxu1 %v3126_v17 }
  0x99   :  { %3131 = vmatprep.subr.bf16.mxu1 %v3130_v20 }
  0x9c   :  { %3133 = vmatpush3.bf16.msra.mxu1 %v3130_v20 }
  0x9d   :  { %3135 = vmatprep.subr.bf16.mxu1 %v3134_v7 }
  0xa0   :  { %3137 = vmatpush3.bf16.msra.mxu1 %v3134_v7 }
  0xa1   :  { %3139 = vmatprep.subr.bf16.mxu1 %v3138_v24 }
  0xa4   :  { %3141 = vmatpush3.bf16.msra.mxu1 %v3138_v24 }
 0x149   :  { %v2896_v27 = vpop.f32.mrb[0].mxu0 }
 0x14a   :  { %v521_v13 = vadd.f32 %v2896_v27, %v3999_v9  ;;  %v515_v48 = vpop.f32.mrb[1].mxu0 }
 0x14b   :  { %v516_v54 = vadd.f32 %v3999_v9, %v515_v48 }
 0x14c   :  { %vm675_vm1 = vcmp.ge.f32.partialorder %v521_v13, 0.0  ;;  %v707_v29 = vmul.f32 0.01, %v521_v13  ;;  %v4013_v44 = vpop.f32.mrb[0].mxu1 }
 0x14d   :  { %vm674_vm2 = vcmp.ge.f32.partialorder %v516_v54, 0.0  ;;  %v706_v15 = vmul.f32 0.01, %v516_v54  ;;  %v2899_v26 = vpop.f32.mrb[2].mxu0  ;;  %v4018_v2 = vpop.f32.mrb[1].mxu1 }
 0x14e   :  { %v4003_v32 = vsel %vm675_vm1, %v521_v13, %v707_v29  ;;  %v531_v34 = vadd.f32 %v2899_v26, %v3999_v9  ;;  %v525_v35 = vpop.f32.mrb[3].mxu0 }
 0x14f   :  { %v808_v37 = vmul.f32 %v4003_v32, %v4003_v32  ;;  %v4008_v16 = vsel %vm674_vm2, %v516_v54, %v706_v15  ;;  %v526_v19 = vadd.f32 %v3999_v9, %v525_v35 }
 0x150   :  { %v807_v39 = vmul.f32 %v4008_v16, %v4008_v16  ;;  %vm677_vm3 = vcmp.ge.f32.partialorder %v531_v34, 0.0  ;;  %v709_v60 = vmul.f32 0.01, %v531_v34  ;;  %v770_v22 = vadd.f32 %v4003_v32, %v4008_v16  ;;  %v4032_v31 = vpop.f32.mrb[2].mxu1 }
 0x151   :  { %vm676_vm4 = vcmp.ge.f32.partialorder %v526_v19, 0.0  ;;  %v708_v40 = vmul.f32 0.01, %v526_v19  ;;  %v2902_v36 = vpop.f32.mrb[4].mxu0  ;;  %v4039_v52 = vpop.f32.mrb[3].mxu1 }
 0x152   :  { %v541_v42 = vadd.f32 %v2902_v36, %v3999_v9  ;;  %v535_v25 = vpop.f32.mrb[5].mxu0  ;;  %v839_v12 = vadd.f32 %v808_v37, %v807_v39  ;;  %v4020_v21 = vsel %vm677_vm3, %v531_v34, %v709_v60 }
 0x153   :  { %v4022_v43 = vsel %vm676_vm4, %v526_v19, %v708_v40  ;;  %v536_v53 = vadd.f32 %v3999_v9, %v535_v25  ;;  %v810_v51 = vmul.f32 %v4020_v21, %v4020_v21 }
 0x154   :  { %v771_v62 = vadd.f32 %v770_v22, %v4022_v43  ;;  %v809_v47 = vmul.f32 %v4022_v43, %v4022_v43  ;;  %vm679_vm5 = vcmp.ge.f32.partialorder %v541_v42, 0.0  ;;  %v711_v49 = vmul.f32 0.01, %v541_v42  ;;  %v4048_v33 = vpop.f32.mrb[4].mxu1 }
 0x155   :  { %vm678_vm6 = vcmp.ge.f32.partialorder %v536_v53, 0.0  ;;  %v710_v30 = vmul.f32 0.01, %v536_v53  ;;  %v2905_v50 = vpop.f32.mrb[6].mxu0  ;;  %v4055_v3 = vpop.f32.mrb[5].mxu1 }
 0x156   :  { %v840_v38 = vadd.f32 %v839_v12, %v809_v47  ;;  %v772_v10 = vadd.f32 %v771_v62, %v4020_v21  ;;  %v551_v46 = vadd.f32 %v2905_v50, %v3999_v9  ;;  %v545_v28 = vpop.f32.mrb[7].mxu0  ;;  %v4034_v55 = vsel %vm679_vm5, %v541_v42, %v711_v49 }
 0x157   :  { %v4036_v18 = vsel %vm678_vm6, %v536_v53, %v710_v30  ;;  %v546_v45 = vadd.f32 %v3999_v9, %v545_v28  ;;  %v812_v4 = vmul.f32 %v4034_v55, %v4034_v55 }
 0x158   :  { %v773_v23 = vadd.f32 %v772_v10, %v4036_v18  ;;  %v811_v56 = vmul.f32 %v4036_v18, %v4036_v18  ;;  %v841_v57 = vadd.f32 %v840_v38, %v810_v51  ;;  %vm681_vm7 = vcmp.ge.f32.partialorder %v551_v46, 0.0  ;;  %v4063_v15 = vpop.f32.mrb[6].mxu1 }
 0x159   :  { %v713_v61 = vmul.f32 0.01, %v551_v46  ;;  %vm680_vm8 = vcmp.ge.f32.partialorder %v546_v45, 0.0  ;;  %v712_v63 = vmul.f32 0.01, %v546_v45  ;;  %v2908_v1 = vpop.f32.mrb[8].mxu0 }
 0x15a   :  { %v842_v5 = vadd.f32 %v841_v57, %v811_v56  ;;  %v774_v11 = vadd.f32 %v773_v23, %v4034_v55  ;;  %v561_v14 = vadd.f32 %v2908_v1, %v3999_v9  ;;  %v555_v17 = vpop.f32.mrb[9].mxu0  ;;  %v4070_v19 = vpop.f32.mrb[7].mxu1 }
 0x15b   :  { %v4050_v41 = vsel %vm681_vm7, %v551_v46, %v713_v61  ;;  %v4052_v20 = vsel %vm680_vm8, %v546_v45, %v712_v63  ;;  %v556_v59 = vadd.f32 %v3999_v9, %v555_v17  ;;  %v596_v17 = vadd.f32 %v3999_v9, %v4018_v2 }
 0x15c   :  { %v775_v6 = vadd.f32 %v774_v11, %v4052_v20  ;;  %v813_v7 = vmul.f32 %v4052_v20, %v4052_v20  ;;  %v843_v8 = vadd.f32 %v842_v5, %v812_v4  ;;  %vm683_vm9 = vcmp.ge.f32.partialorder %v561_v14, 0.0  ;;  %v4078_v12 = vpop.f32.mrb[8].mxu1 }
 0x15d   :  { %v715_v24 = vmul.f32 0.01, %v561_v14  ;;  %vm682_vm10 = vcmp.ge.f32.partialorder %v556_v59, 0.0  ;;  %v714_v27 = vmul.f32 0.01, %v556_v59  ;;  %v814_v13 = vmul.f32 %v4050_v41, %v4050_v41  ;;  %v2911_v29 = vpop.f32.mrb[10].mxu0 }
 0x15e   :  { %v844_v48 = vadd.f32 %v843_v8, %v813_v7  ;;  %v776_v54 = vadd.f32 %v775_v6, %v4050_v41  ;;  %v571_v35 = vadd.f32 %v2911_v29, %v3999_v9  ;;  %v565_v37 = vpop.f32.mrb[11].mxu0  ;;  %v4082_v30 = vpop.f32.mrb[9].mxu1  ;;  %vm690_vm1 = vcmp.ge.f32.partialorder %v596_v17, 0.0 }
 0x15f   :  { %v4065_v26 = vsel %vm683_vm9, %v561_v14, %v715_v24  ;;  %v4067_v34 = vsel %vm682_vm10, %v556_v59, %v714_v27  ;;  %v566_v42 = vadd.f32 %v3999_v9, %v565_v37  ;;  %v601_v14 = vadd.f32 %v4013_v44, %v3999_v9 }
 0x160   :  { %v777_v39 = vadd.f32 %v776_v54, %v4067_v34  ;;  %v815_v60 = vmul.f32 %v4067_v34, %v4067_v34  ;;  %v845_v40 = vadd.f32 %v844_v48, %v814_v13  ;;  %v816_v36 = vmul.f32 %v4065_v26, %v4065_v26  ;;  %v4089_v56 = vpop.f32.mrb[10].mxu1 }
 0x161   :  { %v717_v22 = vmul.f32 0.01, %v571_v35  ;;  %v2914_v25 = vpop.f32.mrb[12].mxu0  ;;  %vm685_vm11 = vcmp.ge.f32.partialorder %v571_v35, 0.0  ;;  %vm684_vm12 = vcmp.ge.f32.partialorder %v566_v42, 0.0  ;;  %v4095_v4 = vpop.f32.mrb[11].mxu1  ;;  %v606_v37 = vadd.f32 %v3999_v9, %v4039_v52 }
 0x162   :  { %v846_v53 = vadd.f32 %v845_v40, %v815_v60  ;;  %v778_v62 = vadd.f32 %v777_v39, %v4065_v26  ;;  %v581_v47 = vadd.f32 %v2914_v25, %v3999_v9  ;;  %v575_v49 = vpop.f32.mrb[13].mxu0  ;;  %v716_v50 = vmul.f32 0.01, %v566_v42 }
 0x163   :  { %v576_v51 = vadd.f32 %v3999_v9, %v575_v49  ;;  %v4085_v46 = vsel %vm685_vm11, %v571_v35, %v717_v22  ;;  %v722_v35 = vmul.f32 0.01, %v596_v17  ;;  %v611_v25 = vadd.f32 %v4032_v31, %v3999_v9 }
 0x164   :  { %v847_v38 = vadd.f32 %v846_v53, %v816_v36  ;;  %v719_v10 = vmul.f32 0.01, %v581_v47  ;;  %v4087_v28 = vsel %vm684_vm12, %v566_v42, %v716_v50  ;;  %vm687_vm14 = vcmp.ge.f32.partialorder %v581_v47, 0.0  ;;  %v4111_v48 = vpop.f32.mrb[12].mxu1 }
 0x165   :  { %vm686_vm13 = vcmp.ge.f32.partialorder %v576_v51, 0.0  ;;  %v718_v45 = vmul.f32 0.01, %v576_v51  ;;  %v2917_v23 = vpop.f32.mrb[14].mxu0  ;;  %v779_v57 = vadd.f32 %v778_v62, %v4087_v28  ;;  %v817_v61 = vmul.f32 %v4087_v28, %v4087_v28  ;;  %v4114_v2 = vpop.f32.mrb[13].mxu1 }
 0x166   :  { %v591_v63 = vadd.f32 %v2917_v23, %v3999_v9  ;;  %v585_v1 = vpop.f32.mrb[15].mxu0  ;;  %v818_v59 = vmul.f32 %v4085_v46, %v4085_v46  ;;  %v4109_v24 = vsel %vm687_vm14, %v581_v47, %v719_v10  ;;  %v723_v42 = vmul.f32 0.01, %v601_v14 }
 0x167   :  { %v4097_v5 = vsel %vm686_vm13, %v576_v51, %v718_v45  ;;  %v586_v11 = vadd.f32 %v3999_v9, %v585_v1  ;;  %v848_v6 = vadd.f32 %v847_v38, %v817_v61  ;;  %v780_v7 = vadd.f32 %v779_v57, %v4085_v46 }
 0x168   :  { %v819_v8 = vmul.f32 %v4097_v5, %v4097_v5  ;;  %v721_v27 = vmul.f32 0.01, %v591_v63  ;;  %vm689_vm0 = vcmp.ge.f32.partialorder %v591_v63, 0.0  ;;  %v820_v39 = vmul.f32 %v4109_v24, %v4109_v24  ;;  %v4129_v53 = vpop.f32.mrb[14].mxu1 }
 0x169   :  { %vm688_vm15 = vcmp.ge.f32.partialorder %v586_v11, 0.0  ;;  %v720_v13 = vmul.f32 0.01, %v586_v11  ;;  %v781_v44 = vadd.f32 %v780_v7, %v4097_v5  ;;  %v849_v54 = vadd.f32 %v848_v6, %v818_v59  ;;  %v4132_v47 = vpop.f32.mrb[15].mxu1 }
 0x16a   :  { %v4125_v22 = vsel %vm689_vm0, %v591_v63, %v721_v27  ;;  %vm691_vm2 = vcmp.ge.f32.partialorder %v601_v14, 0.0  ;;  %v4134_v49 = vsel %vm690_vm1, %v596_v17, %v722_v35  ;;  %v724_v50 = vmul.f32 0.01, %v606_v37 }
 0x16b   :  { %v4116_v29 = vsel %vm688_vm15, %v586_v11, %v720_v13  ;;  %v850_v60 = vadd.f32 %v849_v54, %v819_v8  ;;  %v782_v40 = vadd.f32 %v781_v44, %v4109_v24  ;;  %v616_v51 = vadd.f32 %v3999_v9, %v4055_v3 }
 0x16c   :  { %v821_v36 = vmul.f32 %v4116_v29, %v4116_v29  ;;  %v822_v38 = vmul.f32 %v4125_v22, %v4125_v22  ;;  %vm692_vm3 = vcmp.ge.f32.partialorder %v606_v37, 0.0  ;;  %v4141_v45 = vsel %vm691_vm2, %v601_v14, %v723_v42 }
 0x16d   :  { %v783_v62 = vadd.f32 %v782_v40, %v4116_v29  ;;  %v851_v52 = vadd.f32 %v850_v60, %v820_v39  ;;  %v725_v23 = vmul.f32 0.01, %v611_v25  ;;  %v621_v57 = vadd.f32 %v4048_v33, %v3999_v9 }
 0x16e   :  { %v823_v63 = vmul.f32 %v4134_v49, %v4134_v49  ;;  %vm693_vm4 = vcmp.ge.f32.partialorder %v611_v25, 0.0  ;;  %v4148_v3 = vsel %vm692_vm3, %v606_v37, %v724_v50  ;;  %v726_v11 = vmul.f32 0.01, %v616_v51 }
 0x16f   :  { %v852_v10 = vadd.f32 %v851_v52, %v821_v36  ;;  %v784_v31 = vadd.f32 %v783_v62, %v4125_v22  ;;  %v626_v17 = vadd.f32 %v3999_v9, %v4070_v19  ;;  %v824_v14 = vmul.f32 %v4141_v45, %v4141_v45 }
 0x170   :  { %vm694_vm5 = vcmp.ge.f32.partialorder %v616_v51, 0.0  ;;  %v4155_v33 = vsel %vm693_vm4, %v611_v25, %v725_v23  ;;  %v727_v7 = vmul.f32 0.01, %v621_v57  ;;  %v631_v8 = vadd.f32 %v4063_v15, %v3999_v9 }
 0x171   :  { %v785_v61 = vadd.f32 %v784_v31, %v4134_v49  ;;  %v853_v1 = vadd.f32 %v852_v10, %v822_v38  ;;  %v825_v13 = vmul.f32 %v4148_v3, %v4148_v3  ;;  %vm695_vm6 = vcmp.ge.f32.partialorder %v621_v57, 0.0 }
 0x172   :  { %v4162_v19 = vsel %vm694_vm5, %v616_v51, %v726_v11  ;;  %v728_v54 = vmul.f32 0.01, %v626_v17  ;;  %v636_v35 = vadd.f32 %v3999_v9, %v4082_v30  ;;  %v826_v37 = vmul.f32 %v4155_v33, %v4155_v33 }
 0x173   :  { %v854_v59 = vadd.f32 %v853_v1, %v823_v63  ;;  %v786_v6 = vadd.f32 %v785_v61, %v4141_v45  ;;  %vm696_vm7 = vcmp.ge.f32.partialorder %v626_v17, 0.0  ;;  %v4169_v15 = vsel %vm695_vm6, %v621_v57, %v727_v7 }
 0x174   :  { %v729_v40 = vmul.f32 0.01, %v631_v8  ;;  %v641_v36 = vadd.f32 %v4078_v12, %v3999_v9  ;;  %v827_v25 = vmul.f32 %v4162_v19, %v4162_v19  ;;  %vm697_vm8 = vcmp.ge.f32.partialorder %v631_v8, 0.0 }
 0x175   :  { %v787_v27 = vadd.f32 %v786_v6, %v4148_v3  ;;  %v855_v44 = vadd.f32 %v854_v59, %v824_v14  ;;  %v4176_v30 = vsel %vm696_vm7, %v626_v17, %v728_v54  ;;  %v730_v52 = vmul.f32 0.01, %v636_v35 }
 0x176   :  { %v646_v50 = vadd.f32 %v3999_v9, %v4095_v4  ;;  %v828_v51 = vmul.f32 %v4169_v15, %v4169_v15  ;;  %vm698_vm9 = vcmp.ge.f32.partialorder %v636_v35, 0.0  ;;  %v4183_v12 = vsel %vm697_vm8, %v631_v8, %v729_v40 }
 0x177   :  { %v856_v39 = vadd.f32 %v855_v44, %v825_v13  ;;  %v788_v60 = vadd.f32 %v787_v27, %v4155_v33  ;;  %v731_v31 = vmul.f32 0.01, %v641_v36  ;;  %v651_v23 = vadd.f32 %v4089_v56, %v3999_v9 }
 0x178   :  { %v829_v61 = vmul.f32 %v4176_v30, %v4176_v30  ;;  %vm699_vm10 = vcmp.ge.f32.partialorder %v641_v36, 0.0  ;;  %v4190_v4 = vsel %vm698_vm9, %v636_v35, %v730_v52  ;;  %v732_v1 = vmul.f32 0.01, %v646_v50 }
 0x179   :  { %v789_v42 = vadd.f32 %v788_v60, %v4162_v19  ;;  %v857_v62 = vadd.f32 %v856_v39, %v826_v37  ;;  %v656_v11 = vadd.f32 %v3999_v9, %v4114_v2  ;;  %v830_v17 = vmul.f32 %v4183_v12, %v4183_v12 }
 0x17a   :  { %vm700_vm11 = vcmp.ge.f32.partialorder %v646_v50, 0.0  ;;  %v4197_v56 = vsel %vm699_vm10, %v641_v36, %v731_v31  ;;  %v733_v6 = vmul.f32 0.01, %v651_v23  ;;  %v661_v7 = vadd.f32 %v4111_v48, %v3999_v9 }
 0x17b   :  { %v858_v38 = vadd.f32 %v857_v62, %v827_v25  ;;  %v790_v10 = vadd.f32 %v789_v42, %v4169_v15  ;;  %v831_v27 = vmul.f32 %v4190_v4, %v4190_v4  ;;  %vm701_vm12 = vcmp.ge.f32.partialorder %v651_v23, 0.0 }
 0x17c   :  { %v4204_v2 = vsel %vm700_vm11, %v646_v50, %v732_v1  ;;  %v734_v44 = vmul.f32 0.01, %v656_v11  ;;  %v666_v54 = vadd.f32 %v3999_v9, %v4132_v47  ;;  %v832_v35 = vmul.f32 %v4197_v56, %v4197_v56 }
 0x17d   :  { %v791_v57 = vadd.f32 %v790_v10, %v4176_v30  ;;  %v859_v63 = vadd.f32 %v858_v38, %v828_v51  ;;  %vm702_vm13 = vcmp.ge.f32.partialorder %v656_v11, 0.0  ;;  %v4211_v48 = vsel %vm701_vm12, %v651_v23, %v733_v6 }
 0x17e   :  { %v735_v60 = vmul.f32 0.01, %v661_v7  ;;  %v671_v40 = vadd.f32 %v4129_v53, %v3999_v9  ;;  %v833_v42 = vmul.f32 %v4204_v2, %v4204_v2  ;;  %vm703_vm14 = vcmp.ge.f32.partialorder %v661_v7, 0.0 }
 0x17f   :  { %v860_v14 = vadd.f32 %v859_v63, %v829_v61  ;;  %v792_v59 = vadd.f32 %v791_v57, %v4183_v12  ;;  %v4218_v47 = vsel %vm702_vm13, %v656_v11, %v734_v44  ;;  %v736_v62 = vmul.f32 0.01, %v666_v54 }
 0x180   :  { %v834_v52 = vmul.f32 %v4211_v48, %v4211_v48  ;;  %vm704_vm15 = vcmp.ge.f32.partialorder %v666_v54, 0.0  ;;  %v4223_v38 = vsel %vm703_vm14, %v661_v7, %v735_v60  ;;  %v737_v9 = vmul.f32 0.01, %v671_v40 }
 0x181   :  { %v793_v8 = vadd.f32 %v792_v59, %v4190_v4  ;;  %v861_v13 = vadd.f32 %v860_v14, %v830_v17  ;;  %v835_v10 = vmul.f32 %v4218_v47, %v4218_v47  ;;  %vm705_vm0 = vcmp.ge.f32.partialorder %v671_v40, 0.0 }
 0x182   :  { %v4228_v23 = vsel %vm704_vm15, %v666_v54, %v736_v62  ;;  %v836_v57 = vmul.f32 %v4223_v38, %v4223_v38  ;;  %v4233_v1 = vsel %vm705_vm0, %v671_v40, %v737_v9 }
 0x183   :  { %v862_v37 = vadd.f32 %v861_v13, %v831_v27  ;;  %v794_v39 = vadd.f32 %v793_v8, %v4197_v56  ;;  %v837_v17 = vmul.f32 %v4228_v23, %v4228_v23  ;;  %v838_v59 = vmul.f32 %v4233_v1, %v4233_v1 }
 0x185   :  { %v795_v36 = vadd.f32 %v794_v39, %v4204_v2  ;;  %v863_v25 = vadd.f32 %v862_v37, %v832_v35 }
 0x187   :  { %v864_v50 = vadd.f32 %v863_v25, %v833_v42  ;;  %v796_v51 = vadd.f32 %v795_v36, %v4211_v48 }
 0x189   :  { %v797_v53 = vadd.f32 %v796_v51, %v4218_v47  ;;  %v865_v31 = vadd.f32 %v864_v50, %v834_v52 }
 0x18b   :  { %v866_v61 = vadd.f32 %v865_v31, %v835_v10  ;;  %v798_v63 = vadd.f32 %v797_v53, %v4223_v38 }
 0x18d   :  { %v799_v11 = vadd.f32 %v798_v63, %v4228_v23  ;;  %v867_v14 = vadd.f32 %v866_v61, %v836_v57 }
 0x18f   :  { %v800_v6 = vadd.f32 %v799_v11, %v4233_v1  ;;  %v868_v7 = vadd.f32 %v867_v14, %v837_v17 }
 0x191   :  { %v801_v8 = vrot.slane %v800_v6, 4  ;;  %v869_v27 = vadd.f32 %v868_v7, %v838_v59 }
 0x193   :  { %v802_v13 = vadd.f32 %v801_v8, %v800_v6  ;;  %v870_v44 = vrot.slane %v869_v27, 4  ;;  %v4300_v6 = vld [vmem:[%s5545_s4 + $0x4] ss:$0 sm:$0xff] }
 0x195   :  { %v803_v54 = vrot.slane %v802_v13, 2  ;;  %v871_v35 = vadd.f32 %v870_v44, %v869_v27 }
 0x197   :  { %v804_v37 = vadd.f32 %v803_v54, %v802_v13  ;;  %v872_v39 = vrot.slane %v871_v35, 2 }
 0x199   :  { %v805_v60 = vrot.slane %v804_v37, 1  ;;  %v873_v40 = vadd.f32 %v872_v39, %v871_v35 }
 0x19b   :  { %v806_v36 = vadd.f32 %v805_v60, %v804_v37  ;;  %v874_v42 = vrot.slane %v873_v40, 1 }
 0x19d   :  { %v875_v25 = vadd.f32 %v874_v42, %v873_v40  ;;  %v4241_v62 = vmul.f32 0.00390625, %v806_v36 }
 0x19f   :  { %v877_v52 = vmul.f32 0.00390625, %v875_v25  ;;  %v878_v50 = vmul.f32 %v4241_v62, %v4241_v62  ;;  %v914_v51 = vsub.f32 %v4228_v23, %v4241_v62  ;;  %v894_v53 = vsub.f32 %v4087_v28, %v4241_v62 }
 0x1a0   :  { %v895_v10 = vsub.f32 %v4085_v46, %v4241_v62  ;;  %v896_v57 = vsub.f32 %v4097_v5, %v4241_v62  ;;  %v897_v61 = vsub.f32 %v4109_v24, %v4241_v62  ;;  %v898_v63 = vsub.f32 %v4116_v29, %v4241_v62 }
 0x1a1   :  { %v879_v9 = vsub.f32 %v877_v52, %v878_v50  ;;  %v899_v11 = vsub.f32 %v4125_v22, %v4241_v62  ;;  %v902_v17 = vsub.f32 %v4148_v3, %v4241_v62  ;;  %v903_v46 = vsub.f32 %v4155_v33, %v4241_v62 }
 0x1a2   :  { %v904_v14 = vsub.f32 %v4162_v19, %v4241_v62  ;;  %v905_v5 = vsub.f32 %v4169_v15, %v4241_v62  ;;  %v906_v24 = vsub.f32 %v4176_v30, %v4241_v62  ;;  %v907_v29 = vsub.f32 %v4183_v12, %v4241_v62 }
 0x1a3   :  { %v880_v31 = vmax.f32 %v879_v9, 0.0  ;;  %v908_v22 = vsub.f32 %v4190_v4, %v4241_v62  ;;  %v909_v3 = vsub.f32 %v4197_v56, %v4241_v62  ;;  %v910_v33 = vsub.f32 %v4204_v2, %v4241_v62  ;;  %v24_v4 = vld [vmem:[%s5545_s4 + $0x3] sm:$0x1] }
 0x1a4   :  { %v911_v19 = vsub.f32 %v4211_v48, %v4241_v62  ;;  %v912_v15 = vsub.f32 %v4218_v47, %v4241_v62  ;;  %v913_v30 = vsub.f32 %v4223_v38, %v4241_v62  ;;  %v915_v12 = vsub.f32 %v4233_v1, %v4241_v62 }
 0x1a5   :  { %v881_v28 = vadd.f32 1e-05, %v880_v31  ;;  %v884_v2 = vsub.f32 %v4008_v16, %v4241_v62  ;;  %v885_v47 = vsub.f32 %v4003_v32, %v4241_v62  ;;  %v886_v38 = vsub.f32 %v4022_v43, %v4241_v62 }
 0x1a6   :  { %v887_v1 = vsub.f32 %v4020_v21, %v4241_v62  ;;  %v888_v7 = vsub.f32 %v4036_v18, %v4241_v62  ;;  %v889_v16 = vsub.f32 %v4034_v55, %v4241_v62  ;;  %v890_v32 = vsub.f32 %v4052_v20, %v4241_v62 }
 0x1a7   :  { %3184 = vrsqrt.f32 %v881_v28  ;;  %v891_v43 = vsub.f32 %v4050_v41, %v4241_v62  ;;  %v892_v18 = vsub.f32 %v4067_v34, %v4241_v62  ;;  %v893_v55 = vsub.f32 %v4065_v26, %v4241_v62 }
 0x1a8   :  { %v900_v34 = vsub.f32 %v4134_v49, %v4241_v62  ;;  %v901_v26 = vsub.f32 %v4141_v45, %v4241_v62 }
 0x1b1   :  { %v3185_v56 = vpop.eup %3184 }
 0x1b2   :  { %v883_v59 = vmul.f32 %v3185_v56, %v24_v4 }
 0x1b4   :  { %v919_v48 = vrot.slane %v883_v59, %v3778_v0 }
 0x1b6   :  { %v921_v8 = vmul.f32 %v919_v48, %v885_v47  ;;  %v920_v27 = vmul.f32 %v919_v48, %v884_v2  ;;  %v922_v21 = vmul.f32 %v919_v48, %v886_v38  ;;  %v923_v13 = vmul.f32 %v919_v48, %v887_v1 }
 0x1b7   :  { %v924_v44 = vmul.f32 %v919_v48, %v888_v7  ;;  %v925_v54 = vmul.f32 %v919_v48, %v889_v16  ;;  %v926_v35 = vmul.f32 %v919_v48, %v890_v32  ;;  %v927_v37 = vmul.f32 %v919_v48, %v891_v43 }
 0x1b8   :  { %v957_v39 = vadd.f32 %v4300_v6, %v921_v8  ;;  %v956_v20 = vadd.f32 %v4300_v6, %v920_v27  ;;  %v958_v41 = vadd.f32 %v4300_v6, %v922_v21  ;;  %v928_v60 = vmul.f32 %v919_v48, %v892_v18  ;;  %v1548_v18 = vld [vmem:[%s5544_s3 + $0x8] sm:$0xff] }
 0x1b9   :  { %v929_v40 = vmul.f32 %v919_v48, %v893_v55  ;;  %v930_v36 = vmul.f32 %v919_v48, %v894_v53  ;;  %v931_v42 = vmul.f32 %v919_v48, %v895_v10  ;;  %v932_v25 = vmul.f32 %v919_v48, %v896_v57 }
 0x1ba   :  { %2974 = vmatprep.mubr.f32.mxu1 %v956_v20  ;;  %v933_v52 = vmul.f32 %v919_v48, %v897_v61  ;;  %v934_v50 = vmul.f32 %v919_v48, %v898_v63  ;;  %v935_v9 = vmul.f32 %v919_v48, %v899_v11  ;;  %v959_v31 = vadd.f32 %v4300_v6, %v923_v13 }
 0x1bb   :  { %2975 = vmatmul.mubr.f32.vlgmr.msra.gmra.mrb[16].mxu1 %v957_v39  ;;  %v960_v28 = vadd.f32 %v4300_v6, %v924_v44  ;;  %v936_v4 = vmul.f32 %v919_v48, %v900_v34  ;;  %v937_v56 = vmul.f32 %v919_v48, %v901_v26  ;;  %v938_v53 = vmul.f32 %v919_v48, %v902_v17  ;;  %v1549_v39 = vld [vmem:[%s5544_s3 + $0x10] sm:$0xff]  ;;  %v1558_v26 = vld [vmem:[%s5544_s3 + $0x58] sm:$0xff] }
 0x1bc   :  { %2977 = vmatprep.mubr.f32.mxu1 %v958_v41  ;;  %v939_v10 = vmul.f32 %v919_v48, %v903_v46  ;;  %v940_v57 = vmul.f32 %v919_v48, %v904_v14  ;;  %v941_v61 = vmul.f32 %v919_v48, %v905_v5  ;;  %v942_v63 = vmul.f32 %v919_v48, %v906_v24  ;;  %v1551_v41 = vld [vmem:[%s5544_s3 + $0x20] sm:$0xff]  ;;  %v1557_v34 = vld [vmem:[%s5544_s3 + $0x50] sm:$0xff] }
 0x1bd   :  { %v943_v11 = vmul.f32 %v919_v48, %v907_v29  ;;  %v961_v49 = vadd.f32 %v4300_v6, %v925_v54  ;;  %v962_v59 = vadd.f32 %v4300_v6, %v926_v35  ;;  %v944_v45 = vmul.f32 %v919_v48, %v908_v22 }
 0x1be   :  { %v945_v2 = vmul.f32 %v919_v48, %v909_v3  ;;  %v946_v47 = vmul.f32 %v919_v48, %v910_v33  ;;  %v947_v38 = vmul.f32 %v919_v48, %v911_v19  ;;  %v948_v1 = vmul.f32 %v919_v48, %v912_v15 }
 0x1bf   :  { %2978 = vmatmul.mubr.f32.gmra.mrb[18].mxu1 %v959_v31  ;;  %v949_v7 = vmul.f32 %v919_v48, %v913_v30  ;;  %v950_v17 = vmul.f32 %v919_v48, %v914_v51  ;;  %v951_v46 = vmul.f32 %v919_v48, %v915_v12  ;;  %v963_v14 = vadd.f32 %v4300_v6, %v927_v37  ;;  %v1547_v37 = vld [vmem:[%s5544_s3] sm:$0xff] }
 0x1c0   :  { %2980 = vmatprep.mubr.f32.mxu1 %v960_v28  ;;  %v964_v5 = vadd.f32 %v4300_v6, %v928_v60  ;;  %v965_v24 = vadd.f32 %v4300_v6, %v929_v40  ;;  %v966_v29 = vadd.f32 %v4300_v6, %v930_v36  ;;  %v967_v22 = vadd.f32 %v4300_v6, %v931_v42  ;;  %v1552_v60 = vld [vmem:[%s5544_s3 + $0x28] sm:$0xff]  ;;  %v1553_v36 = vld [vmem:[%s5544_s3 + $0x30] sm:$0xff]  ;;  %v1554_v42 = vld [vmem:[%s5544_s3 + $0x38] sm:$0xff] }
 0x1c1   :  { %v968_v3 = vadd.f32 %v4300_v6, %v932_v25  ;;  %v969_v23 = vadd.f32 %v4300_v6, %v933_v52  ;;  %v970_v62 = vadd.f32 %v4300_v6, %v934_v50  ;;  %v971_v51 = vadd.f32 %v4300_v6, %v935_v9  ;;  %v1555_v52 = vld [vmem:[%s5544_s3 + $0x40] sm:$0xff]  ;;  %v1556_v50 = vld [vmem:[%s5544_s3 + $0x48] sm:$0xff] }
 0x1c2   :  { %v972_v33 = vadd.f32 %v4300_v6, %v936_v4  ;;  %v973_v19 = vadd.f32 %v4300_v6, %v937_v56  ;;  %v974_v15 = vadd.f32 %v4300_v6, %v938_v53  ;;  %v975_v30 = vadd.f32 %v4300_v6, %v939_v10  ;;  %v1559_v28 = vld [vmem:[%s5544_s3 + $0x60] sm:$0xff]  ;;  %v1560_v4 = vld [vmem:[%s5544_s3 + $0x68] sm:$0xff]  ;;  %v1561_v53 = vld [vmem:[%s5544_s3 + $0x70] sm:$0xff] }
 0x1c3   :  { %2981 = vmatmul.mubr.f32.gmra.mrb[20].mxu1 %v961_v49  ;;  %v976_v12 = vadd.f32 %v4300_v6, %v940_v57  ;;  %v977_v48 = vadd.f32 %v4300_v6, %v941_v61  ;;  %v978_v16 = vadd.f32 %v4300_v6, %v942_v63  ;;  %v979_v32 = vadd.f32 %v4300_v6, %v943_v11  ;;  %v1562_v10 = vld [vmem:[%s5544_s3 + $0x78] sm:$0xff]  ;;  %v4404_v61 = vld [vmem:[%s5545_s4 + $0x5] ss:$0 sm:$0xff] }
 0x1c4   :  { %2983 = vmatprep.mubr.f32.mxu1 %v962_v59  ;;  %v980_v43 = vadd.f32 %v4300_v6, %v944_v45  ;;  %v981_v8 = vadd.f32 %v4300_v6, %v945_v2  ;;  %v982_v27 = vadd.f32 %v4300_v6, %v946_v47  ;;  %v983_v21 = vadd.f32 %v4300_v6, %v947_v38 }
 0x1c5   :  { %v984_v13 = vadd.f32 %v4300_v6, %v948_v1  ;;  %v985_v44 = vadd.f32 %v4300_v6, %v949_v7  ;;  %v986_v54 = vadd.f32 %v4300_v6, %v950_v17  ;;  %v987_v35 = vadd.f32 %v4300_v6, %v951_v46  ;;  %v1550_v6 = vld [vmem:[%s5544_s3 + $0x18] sm:$0xff] }
 0x1c6   :  { %v3142_v55 = vpack.c.bf16 %v1548_v18, %v1547_v37  ;;  %v3146_v20 = vpack.c.bf16 %v1550_v6, %v1549_v39  ;;  %v3150_v40 = vpack.c.bf16 %v1552_v60, %v1551_v41  ;;  %v3154_v25 = vpack.c.bf16 %v1554_v42, %v1553_v36 }
 0x1c7   :  { %2984 = vmatmul.mubr.f32.gmra.mrb[22].mxu1 %v963_v14  ;;  %v3158_v9 = vpack.c.bf16 %v1556_v50, %v1555_v52  ;;  %v3162_v31 = vpack.c.bf16 %v1558_v26, %v1557_v34  ;;  %v3166_v56 = vpack.c.bf16 %v1560_v4, %v1559_v28  ;;  %v3170_v57 = vpack.c.bf16 %v1562_v10, %v1561_v53 }
 0x1c8   :  { %2986 = vmatprep.mubr.f32.mxu1 %v964_v5  ;;  %3143 = vmatprep.subr.bf16.mxu0 %v3142_v55 }
 0x1c9   :  { %3145 = vmatpush3.bf16.msra.mxu0 %v3142_v55 }
 0x1ca   :  { %3147 = vmatprep.subr.bf16.mxu0 %v3146_v20 }
 0x1cb   :  { %2987 = vmatmul.mubr.f32.gmra.mrb[24].mxu1 %v965_v24 }
 0x1cc   :  { %2989 = vmatprep.mubr.f32.mxu1 %v966_v29 }
 0x1cd   :  { %3149 = vmatpush3.bf16.msra.mxu0 %v3146_v20 }
 0x1ce   :  { %3151 = vmatprep.subr.bf16.mxu0 %v3150_v40 }
 0x1cf   :  { %2990 = vmatmul.mubr.f32.gmra.mrb[26].mxu1 %v967_v22 }
 0x1d0   :  { %2992 = vmatprep.mubr.f32.mxu1 %v968_v3 }
 0x1d1   :  { %3153 = vmatpush3.bf16.msra.mxu0 %v3150_v40 }
 0x1d2   :  { %3155 = vmatprep.subr.bf16.mxu0 %v3154_v25 }
 0x1d3   :  { %2993 = vmatmul.mubr.f32.gmra.mrb[28].mxu1 %v969_v23 }
 0x1d4   :  { %2995 = vmatprep.mubr.f32.mxu1 %v970_v62 }
 0x1d5   :  { %3157 = vmatpush3.bf16.msra.mxu0 %v3154_v25 }
 0x1d6   :  { %3159 = vmatprep.subr.bf16.mxu0 %v3158_v9 }
 0x1d7   :  { %2996 = vmatmul.mubr.f32.gmra.mrb[30].mxu1 %v971_v51 }
 0x1d8   :  { %2998 = vmatprep.mubr.f32.mxu1 %v972_v33 }
 0x1d9   :  { %3161 = vmatpush3.bf16.msra.mxu0 %v3158_v9 }
 0x1da   :  { %3163 = vmatprep.subr.bf16.mxu0 %v3162_v31 }
 0x1db   :  { %2999 = vmatmul.mubr.f32.gmra.mrb[32].mxu1 %v973_v19 }
 0x1dc   :  { %3001 = vmatprep.mubr.f32.mxu1 %v974_v15 }
 0x1dd   :  { %3165 = vmatpush3.bf16.msra.mxu0 %v3162_v31 }
 0x1de   :  { %3167 = vmatprep.subr.bf16.mxu0 %v3166_v56 }
 0x1df   :  { %3002 = vmatmul.mubr.f32.gmra.mrb[34].mxu1 %v975_v30 }
 0x1e0   :  { %3004 = vmatprep.mubr.f32.mxu1 %v976_v12 }
 0x1e1   :  { %3169 = vmatpush3.bf16.msra.mxu0 %v3166_v56 }
 0x1e2   :  { %3171 = vmatprep.subr.bf16.mxu0 %v3170_v57 }
 0x1e3   :  { %3005 = vmatmul.mubr.f32.gmra.mrb[36].mxu1 %v977_v48 }
 0x1e4   :  { %3007 = vmatprep.mubr.f32.mxu1 %v978_v16 }
 0x1e5   :  { %3173 = vmatpush3.bf16.msra.mxu0 %v3170_v57 }
 0x1e7   :  { %3008 = vmatmul.mubr.f32.gmra.mrb[38].mxu1 %v979_v32 }
 0x1e8   :  { %3010 = vmatprep.mubr.f32.mxu1 %v980_v43 }
 0x1eb   :  { %3011 = vmatmul.mubr.f32.gmra.mrb[40].mxu1 %v981_v8 }
 0x1ec   :  { %3013 = vmatprep.mubr.f32.mxu1 %v982_v27 }
 0x1ef   :  { %3014 = vmatmul.mubr.f32.gmra.mrb[42].mxu1 %v983_v21 }
 0x1f0   :  { %3016 = vmatprep.mubr.f32.mxu1 %v984_v13 }
 0x1f3   :  { %3017 = vmatmul.mubr.f32.gmra.mrb[44].mxu1 %v985_v44 }
 0x1f4   :  { %3019 = vmatprep.mubr.f32.mxu1 %v986_v54 }
 0x1f7   :  { %3020 = vmatmul.mubr.f32.gmra.mrb[46].mxu1 %v987_v35 }
 0x28e   :  { %v2976_v63 = vpop.f32.mrb[16].mxu1 }
 0x28f   :  { %v1080_v11 = vadd.f32 %v2976_v63, %v4404_v61  ;;  %v1074_v49 = vpop.f32.mrb[17].mxu1 }
 0x290   :  { %v1075_v59 = vadd.f32 %v4404_v61, %v1074_v49 }
 0x291   :  { %vm1234_vm1 = vcmp.ge.f32.partialorder %v1080_v11, 0.0  ;;  %v1266_v45 = vmul.f32 0.01, %v1080_v11 }
 0x292   :  { %vm1233_vm2 = vcmp.ge.f32.partialorder %v1075_v59, 0.0  ;;  %v1265_v2 = vmul.f32 0.01, %v1075_v59  ;;  %v2979_v47 = vpop.f32.mrb[18].mxu1 }
 0x293   :  { %v4408_v38 = vsel %vm1234_vm1, %v1080_v11, %v1266_v45  ;;  %v1090_v1 = vadd.f32 %v2979_v47, %v4404_v61  ;;  %v1084_v7 = vpop.f32.mrb[19].mxu1 }
 0x294   :  { %v1367_v17 = vmul.f32 %v4408_v38, %v4408_v38  ;;  %v4413_v46 = vsel %vm1233_vm2, %v1075_v59, %v1265_v2  ;;  %v1085_v14 = vadd.f32 %v4404_v61, %v1084_v7 }
 0x295   :  { %v1366_v5 = vmul.f32 %v4413_v46, %v4413_v46  ;;  %vm1236_vm3 = vcmp.ge.f32.partialorder %v1090_v1, 0.0  ;;  %v1268_v24 = vmul.f32 0.01, %v1090_v1  ;;  %v1329_v3 = vadd.f32 %v4408_v38, %v4413_v46 }
 0x296   :  { %vm1235_vm4 = vcmp.ge.f32.partialorder %v1085_v14, 0.0  ;;  %v1267_v29 = vmul.f32 0.01, %v1085_v14  ;;  %v2982_v22 = vpop.f32.mrb[20].mxu1 }
 0x297   :  { %v1100_v23 = vadd.f32 %v2982_v22, %v4404_v61  ;;  %v1094_v62 = vpop.f32.mrb[21].mxu1  ;;  %v1398_v51 = vadd.f32 %v1367_v17, %v1366_v5  ;;  %v4421_v33 = vsel %vm1236_vm3, %v1090_v1, %v1268_v24 }
 0x298   :  { %v4423_v19 = vsel %vm1235_vm4, %v1085_v14, %v1267_v29  ;;  %v1095_v15 = vadd.f32 %v4404_v61, %v1094_v62  ;;  %v1369_v43 = vmul.f32 %v4421_v33, %v4421_v33 }
 0x299   :  { %v1330_v30 = vadd.f32 %v1329_v3, %v4423_v19  ;;  %v1368_v12 = vmul.f32 %v4423_v19, %v4423_v19  ;;  %vm1238_vm5 = vcmp.ge.f32.partialorder %v1100_v23, 0.0  ;;  %v1270_v48 = vmul.f32 0.01, %v1100_v23 }
 0x29a   :  { %vm1237_vm6 = vcmp.ge.f32.partialorder %v1095_v15, 0.0  ;;  %v1269_v16 = vmul.f32 0.01, %v1095_v15  ;;  %v2985_v32 = vpop.f32.mrb[22].mxu1 }
 0x29b   :  { %v1399_v8 = vadd.f32 %v1398_v51, %v1368_v12  ;;  %v1331_v27 = vadd.f32 %v1330_v30, %v4421_v33  ;;  %v1110_v21 = vadd.f32 %v2985_v32, %v4404_v61  ;;  %v1104_v13 = vpop.f32.mrb[23].mxu1  ;;  %v4433_v44 = vsel %vm1238_vm5, %v1100_v23, %v1270_v48 }
 0x29c   :  { %v4435_v54 = vsel %vm1237_vm6, %v1095_v15, %v1269_v16  ;;  %v1105_v35 = vadd.f32 %v4404_v61, %v1104_v13  ;;  %v1371_v41 = vmul.f32 %v4433_v44, %v4433_v44 }
 0x29d   :  { %v1332_v37 = vadd.f32 %v1331_v27, %v4435_v54  ;;  %v1370_v18 = vmul.f32 %v4435_v54, %v4435_v54  ;;  %v1400_v55 = vadd.f32 %v1399_v8, %v1369_v43  ;;  %vm1240_vm7 = vcmp.ge.f32.partialorder %v1110_v21, 0.0 }
 0x29e   :  { %v1272_v39 = vmul.f32 0.01, %v1110_v21  ;;  %vm1239_vm8 = vcmp.ge.f32.partialorder %v1105_v35, 0.0  ;;  %v1271_v6 = vmul.f32 0.01, %v1105_v35  ;;  %v2988_v20 = vpop.f32.mrb[24].mxu1 }
 0x29f   :  { %v1401_v60 = vadd.f32 %v1400_v55, %v1370_v18  ;;  %v1333_v40 = vadd.f32 %v1332_v37, %v4433_v44  ;;  %v1120_v36 = vadd.f32 %v2988_v20, %v4404_v61  ;;  %v1114_v42 = vpop.f32.mrb[25].mxu1 }
 0x2a0   :  { %v4445_v25 = vsel %vm1240_vm7, %v1110_v21, %v1272_v39  ;;  %v4447_v52 = vsel %vm1239_vm8, %v1105_v35, %v1271_v6  ;;  %v1115_v50 = vadd.f32 %v4404_v61, %v1114_v42 }
 0x2a1   :  { %v1334_v9 = vadd.f32 %v1333_v40, %v4447_v52  ;;  %v1372_v34 = vmul.f32 %v4447_v52, %v4447_v52  ;;  %v1402_v26 = vadd.f32 %v1401_v60, %v1371_v41  ;;  %vm1242_vm9 = vcmp.ge.f32.partialorder %v1120_v36, 0.0 }
 0x2a2   :  { %v1274_v31 = vmul.f32 0.01, %v1120_v36  ;;  %vm1241_vm10 = vcmp.ge.f32.partialorder %v1115_v50, 0.0  ;;  %v1273_v28 = vmul.f32 0.01, %v1115_v50  ;;  %v1373_v4 = vmul.f32 %v4445_v25, %v4445_v25  ;;  %v2991_v10 = vpop.f32.mrb[26].mxu1 }
 0x2a3   :  { %v1403_v56 = vadd.f32 %v1402_v26, %v1372_v34  ;;  %v1335_v53 = vadd.f32 %v1334_v9, %v4445_v25  ;;  %v1130_v11 = vadd.f32 %v2991_v10, %v4404_v61  ;;  %v1124_v49 = vpop.f32.mrb[27].mxu1 }
 0x2a4   :  { %v4456_v57 = vsel %vm1242_vm9, %v1120_v36, %v1274_v31  ;;  %v4458_v63 = vsel %vm1241_vm10, %v1115_v50, %v1273_v28  ;;  %v1125_v1 = vadd.f32 %v4404_v61, %v1124_v49 }
 0x2a5   :  { %v1336_v59 = vadd.f32 %v1335_v53, %v4458_v63  ;;  %v1374_v45 = vmul.f32 %v4458_v63, %v4458_v63  ;;  %v1404_v2 = vadd.f32 %v1403_v56, %v1373_v4  ;;  %vm1244_vm11 = vcmp.ge.f32.partialorder %v1130_v11, 0.0 }
 0x2a6   :  { %v1276_v47 = vmul.f32 0.01, %v1130_v11  ;;  %v2994_v7 = vpop.f32.mrb[28].mxu1  ;;  %v1375_v17 = vmul.f32 %v4456_v57, %v4456_v57  ;;  %vm1243_vm12 = vcmp.ge.f32.partialorder %v1125_v1, 0.0  ;;  %v1275_v22 = vmul.f32 0.01, %v1125_v1 }
 0x2a7   :  { %v1405_v14 = vadd.f32 %v1404_v2, %v1374_v45  ;;  %v1337_v5 = vadd.f32 %v1336_v59, %v4456_v57  ;;  %v1140_v24 = vadd.f32 %v2994_v7, %v4404_v61  ;;  %v1134_v29 = vpop.f32.mrb[29].mxu1 }
 0x2a8   :  { %v1135_v3 = vadd.f32 %v4404_v61, %v1134_v29  ;;  %v4470_v23 = vsel %vm1244_vm11, %v1130_v11, %v1276_v47  ;;  %v4472_v15 = vsel %vm1243_vm12, %v1125_v1, %v1275_v22 }
 0x2a9   :  { %v1406_v62 = vadd.f32 %v1405_v14, %v1375_v17  ;;  %vm1246_vm13 = vcmp.ge.f32.partialorder %v1140_v24, 0.0  ;;  %v1278_v51 = vmul.f32 0.01, %v1140_v24  ;;  %v1338_v48 = vadd.f32 %v1337_v5, %v4472_v15 }
 0x2aa   :  { %vm1245_vm14 = vcmp.ge.f32.partialorder %v1135_v3, 0.0  ;;  %v1277_v30 = vmul.f32 0.01, %v1135_v3  ;;  %v2997_v12 = vpop.f32.mrb[30].mxu1  ;;  %v1376_v16 = vmul.f32 %v4472_v15, %v4472_v15  ;;  %v1377_v8 = vmul.f32 %v4470_v23, %v4470_v23 }
 0x2ab   :  { %v1150_v32 = vadd.f32 %v2997_v12, %v4404_v61  ;;  %v1144_v43 = vpop.f32.mrb[31].mxu1  ;;  %v4480_v27 = vsel %vm1246_vm13, %v1140_v24, %v1278_v51  ;;  %v1339_v37 = vadd.f32 %v1338_v48, %v4470_v23 }
 0x2ac   :  { %v4482_v21 = vsel %vm1245_vm14, %v1135_v3, %v1277_v30  ;;  %v1145_v13 = vadd.f32 %v4404_v61, %v1144_v43  ;;  %v1407_v35 = vadd.f32 %v1406_v62, %v1376_v16  ;;  %v1379_v36 = vmul.f32 %v4480_v27, %v4480_v27 }
 0x2ad   :  { %v1378_v18 = vmul.f32 %v4482_v21, %v4482_v21  ;;  %vm1248_vm15 = vcmp.ge.f32.partialorder %v1150_v32, 0.0  ;;  %v1280_v55 = vmul.f32 0.01, %v1150_v32  ;;  %v1340_v20 = vadd.f32 %v1339_v37, %v4482_v21 }
 0x2ae   :  { %vm1247_vm0 = vcmp.ge.f32.partialorder %v1145_v13, 0.0  ;;  %v1279_v39 = vmul.f32 0.01, %v1145_v13  ;;  %v3000_v6 = vpop.f32.mrb[32].mxu1  ;;  %v1408_v41 = vadd.f32 %v1407_v35, %v1377_v8 }
 0x2af   :  { %v1160_v60 = vadd.f32 %v3000_v6, %v4404_v61  ;;  %v1154_v40 = vpop.f32.mrb[33].mxu1  ;;  %v4495_v34 = vsel %vm1248_vm15, %v1150_v32, %v1280_v55  ;;  %v1341_v26 = vadd.f32 %v1340_v20, %v4480_v27 }
 0x2b0   :  { %v4492_v42 = vsel %vm1247_vm0, %v1145_v13, %v1279_v39  ;;  %v1155_v50 = vadd.f32 %v4404_v61, %v1154_v40  ;;  %v1409_v9 = vadd.f32 %v1408_v41, %v1378_v18  ;;  %v1381_v11 = vmul.f32 %v4495_v34, %v4495_v34 }
 0x2b1   :  { %v1380_v31 = vmul.f32 %v4492_v42, %v4492_v42  ;;  %vm1250_vm1 = vcmp.ge.f32.partialorder %v1160_v60, 0.0  ;;  %v1282_v28 = vmul.f32 0.01, %v1160_v60  ;;  %v1342_v56 = vadd.f32 %v1341_v26, %v4492_v42 }
 0x2b2   :  { %vm1249_vm2 = vcmp.ge.f32.partialorder %v1155_v50, 0.0  ;;  %v1281_v4 = vmul.f32 0.01, %v1155_v50  ;;  %v1410_v53 = vadd.f32 %v1409_v9, %v1379_v36  ;;  %v3003_v10 = vpop.f32.mrb[34].mxu1 }
 0x2b3   :  { %v1170_v59 = vadd.f32 %v3003_v10, %v4404_v61  ;;  %v1164_v45 = vpop.f32.mrb[35].mxu1  ;;  %v4506_v47 = vsel %vm1250_vm1, %v1160_v60, %v1282_v28  ;;  %v1343_v1 = vadd.f32 %v1342_v56, %v4495_v34 }
 0x2b4   :  { %v4503_v49 = vsel %vm1249_vm2, %v1155_v50, %v1281_v4  ;;  %v1411_v2 = vadd.f32 %v1410_v53, %v1380_v31  ;;  %v1165_v14 = vadd.f32 %v4404_v61, %v1164_v45  ;;  %v1383_v62 = vmul.f32 %v4506_v47, %v4506_v47 }
 0x2b5   :  { %v1382_v7 = vmul.f32 %v4503_v49, %v4503_v49  ;;  %vm1252_vm3 = vcmp.ge.f32.partialorder %v1170_v59, 0.0  ;;  %v1284_v17 = vmul.f32 0.01, %v1170_v59  ;;  %v1344_v24 = vadd.f32 %v1343_v1, %v4503_v49 }
 0x2b6   :  { %v3006_v5 = vpop.f32.mrb[36].mxu1  ;;  %v1412_v29 = vadd.f32 %v1411_v2, %v1381_v11  ;;  %vm1251_vm4 = vcmp.ge.f32.partialorder %v1165_v14, 0.0  ;;  %v1283_v51 = vmul.f32 0.01, %v1165_v14 }
 0x2b7   :  { %v1180_v22 = vadd.f32 %v3006_v5, %v4404_v61  ;;  %v1174_v3 = vpop.f32.mrb[37].mxu1  ;;  %v4517_v48 = vsel %vm1252_vm3, %v1170_v59, %v1284_v17  ;;  %v1345_v16 = vadd.f32 %v1344_v24, %v4506_v47  ;;  %vm3404_vm3 = vmmov 1  }
 0x2b8   :  { %v1175_v30 = vadd.f32 %v4404_v61, %v1174_v3  ;;  %v1413_v12 = vadd.f32 %v1412_v29, %v1382_v7  ;;  %v4520_v32 = vsel %vm1251_vm4, %v1165_v14, %v1283_v51  ;;  %v1385_v6 = vmul.f32 %v4517_v48, %v4517_v48 }
 0x2b9   :  { %vm1254_vm5 = vcmp.ge.f32.partialorder %v1180_v22, 0.0  ;;  %v1286_v43 = vmul.f32 0.01, %v1180_v22  ;;  %v1346_v35 = vadd.f32 %v1345_v16, %v4520_v32  ;;  %v1384_v37 = vmul.f32 %v4520_v32, %v4520_v32 }
 0x2ba   :  { %vm1253_vm6 = vcmp.ge.f32.partialorder %v1175_v30, 0.0  ;;  %v1285_v8 = vmul.f32 0.01, %v1175_v30  ;;  %v3009_v13 = vpop.f32.mrb[38].mxu1  ;;  %v1414_v18 = vadd.f32 %v1413_v12, %v1383_v62 }
 0x2bb   :  { %v1190_v55 = vadd.f32 %v3009_v13, %v4404_v61  ;;  %v1184_v39 = vpop.f32.mrb[39].mxu1  ;;  %v4531_v40 = vsel %vm1254_vm5, %v1180_v22, %v1286_v43  ;;  %v1347_v36 = vadd.f32 %v1346_v35, %v4517_v48 }
 0x2bc   :  { %v4528_v20 = vsel %vm1253_vm6, %v1175_v30, %v1285_v8  ;;  %v1185_v41 = vadd.f32 %v4404_v61, %v1184_v39  ;;  %v1415_v60 = vadd.f32 %v1414_v18, %v1384_v37  ;;  %v1387_v56 = vmul.f32 %v4531_v40, %v4531_v40 }
 0x2bd   :  { %v1386_v50 = vmul.f32 %v4528_v20, %v4528_v20  ;;  %vm1256_vm7 = vcmp.ge.f32.partialorder %v1190_v55, 0.0  ;;  %v1288_v9 = vmul.f32 0.01, %v1190_v55  ;;  %v1348_v31 = vadd.f32 %v1347_v36, %v4528_v20 }
 0x2be   :  { %vm1255_vm8 = vcmp.ge.f32.partialorder %v1185_v41, 0.0  ;;  %v1287_v26 = vmul.f32 0.01, %v1185_v41  ;;  %v1416_v28 = vadd.f32 %v1415_v60, %v1385_v6  ;;  %v3012_v4 = vpop.f32.mrb[40].mxu1 }
 0x2bf   :  { %v1200_v10 = vadd.f32 %v3012_v4, %v4404_v61  ;;  %v1194_v11 = vpop.f32.mrb[41].mxu1  ;;  %v4542_v45 = vsel %vm1256_vm7, %v1190_v55, %v1288_v9  ;;  %v1349_v2 = vadd.f32 %v1348_v31, %v4531_v40 }
 0x2c0   :  { %v4539_v53 = vsel %vm1255_vm8, %v1185_v41, %v1287_v26  ;;  %v1417_v59 = vadd.f32 %v1416_v28, %v1386_v50  ;;  %v1195_v17 = vadd.f32 %v4404_v61, %v1194_v11  ;;  %v1389_v3 = vmul.f32 %v4542_v45, %v4542_v45 }
 0x2c1   :  { %v1388_v1 = vmul.f32 %v4539_v53, %v4539_v53  ;;  %vm1258_vm9 = vcmp.ge.f32.partialorder %v1200_v10, 0.0  ;;  %v1290_v7 = vmul.f32 0.01, %v1200_v10  ;;  %v1350_v5 = vadd.f32 %v1349_v2, %v4539_v53 }
 0x2c2   :  { %v3015_v14 = vpop.f32.mrb[42].mxu1  ;;  %v1418_v24 = vadd.f32 %v1417_v59, %v1387_v56  ;;  %vm1257_vm10 = vcmp.ge.f32.partialorder %v1195_v17, 0.0  ;;  %v1289_v62 = vmul.f32 0.01, %v1195_v17 }
 0x2c3   :  { %v1210_v29 = vadd.f32 %v3015_v14, %v4404_v61  ;;  %v1204_v22 = vpop.f32.mrb[43].mxu1  ;;  %v4553_v12 = vsel %vm1258_vm9, %v1200_v10, %v1290_v7  ;;  %v1351_v16 = vadd.f32 %v1350_v5, %v4542_v45 }
 0x2c4   :  { %v1205_v51 = vadd.f32 %v4404_v61, %v1204_v22  ;;  %v1419_v30 = vadd.f32 %v1418_v24, %v1388_v1  ;;  %v4556_v43 = vsel %vm1257_vm10, %v1195_v17, %v1289_v62  ;;  %v1391_v36 = vmul.f32 %v4553_v12, %v4553_v12 }
 0x2c5   :  { %vm1260_vm11 = vcmp.ge.f32.partialorder %v1210_v29, 0.0  ;;  %v1292_v8 = vmul.f32 0.01, %v1210_v29  ;;  %v1352_v37 = vadd.f32 %v1351_v16, %v4556_v43  ;;  %v1390_v18 = vmul.f32 %v4556_v43, %v4556_v43 }
 0x2c6   :  { %vm1259_vm12 = vcmp.ge.f32.partialorder %v1205_v51, 0.0  ;;  %v1291_v13 = vmul.f32 0.01, %v1205_v51  ;;  %v3018_v35 = vpop.f32.mrb[44].mxu1  ;;  %v1420_v55 = vadd.f32 %v1419_v30, %v1389_v3 }
 0x2c7   :  { %v1220_v39 = vadd.f32 %v3018_v35, %v4404_v61  ;;  %v1214_v6 = vpop.f32.mrb[45].mxu1  ;;  %v1353_v9 = vadd.f32 %v1352_v37, %v4553_v12  ;;  %v4571_v31 = vsel %vm1260_vm11, %v1210_v29, %v1292_v8 }
 0x2c8   :  { %v4562_v41 = vsel %vm1259_vm12, %v1205_v51, %v1291_v13  ;;  %v1215_v60 = vadd.f32 %v4404_v61, %v1214_v6  ;;  %v1421_v50 = vadd.f32 %v1420_v55, %v1390_v18  ;;  %v1393_v7 = vmul.f32 %v4571_v31, %v4571_v31 }
 0x2c9   :  { %v1392_v26 = vmul.f32 %v4562_v41, %v4562_v41  ;;  %v1294_v28 = vmul.f32 0.01, %v1220_v39  ;;  %v1354_v56 = vadd.f32 %v1353_v9, %v4562_v41  ;;  %vm1262_vm14 = vcmp.ge.f32.partialorder %v1220_v39, 0.0 }
 0x2ca   :  { %vm1261_vm13 = vcmp.ge.f32.partialorder %v1215_v60, 0.0  ;;  %v1293_v4 = vmul.f32 0.01, %v1215_v60  ;;  %v1422_v10 = vadd.f32 %v1421_v50, %v1391_v36  ;;  %v3021_v11 = vpop.f32.mrb[46].mxu1 }
 0x2cb   :  { %v1230_v2 = vadd.f32 %v3021_v11, %v4404_v61  ;;  %v1224_v1 = vpop.f32.mrb[47].mxu1  ;;  %v1355_v14 = vadd.f32 %v1354_v56, %v4571_v31  ;;  %v4582_v24 = vsel %vm1262_vm14, %v1220_v39, %v1294_v28 }
 0x2cc   :  { %v4574_v59 = vsel %vm1261_vm13, %v1215_v60, %v1293_v4  ;;  %v1423_v17 = vadd.f32 %v1422_v10, %v1392_v26  ;;  %v1225_v22 = vadd.f32 %v4404_v61, %v1224_v1  ;;  %v1395_v30 = vmul.f32 %v4582_v24, %v4582_v24 }
 0x2cd   :  { %v1394_v5 = vmul.f32 %v4574_v59, %v4574_v59  ;;  %v1296_v29 = vmul.f32 0.01, %v1230_v2  ;;  %v1356_v3 = vadd.f32 %v1355_v14, %v4574_v59  ;;  %vm1264_vm15 = vcmp.ge.f32.partialorder %v1230_v2, 0.0 }
 0x2ce   :  { %v1424_v62 = vadd.f32 %v1423_v17, %v1393_v7  ;;  %vm1263_vm0 = vcmp.ge.f32.partialorder %v1225_v22, 0.0  ;;  %v1295_v51 = vmul.f32 0.01, %v1225_v22 }
 0x2cf   :  { %v1357_v8 = vadd.f32 %v1356_v3, %v4582_v24  ;;  %v4589_v13 = vsel %vm1264_vm15, %v1230_v2, %v1296_v29 }
 0x2d0   :  { %v1425_v16 = vadd.f32 %v1424_v62, %v1394_v5  ;;  %v4591_v35 = vsel %vm1263_vm0, %v1225_v22, %v1295_v51  ;;  %v1397_v55 = vmul.f32 %v4589_v13, %v4589_v13 }
 0x2d1   :  { %v1358_v37 = vadd.f32 %v1357_v8, %v4591_v35  ;;  %v1396_v61 = vmul.f32 %v4591_v35, %v4591_v35 }
 0x2d2   :  { %v1426_v18 = vadd.f32 %v1425_v16, %v1395_v30 }
 0x2d3   :  { %v1359_v39 = vadd.f32 %v1358_v37, %v4589_v13 }
 0x2d4   :  { %v1427_v6 = vadd.f32 %v1426_v18, %v1396_v61 }
 0x2d5   :  { %v1360_v60 = vrot.slane %v1359_v39, 4 }
 0x2d6   :  { %v1428_v36 = vadd.f32 %v1427_v6, %v1397_v55 }
 0x2d7   :  { %v1361_v50 = vadd.f32 %v1360_v60, %v1359_v39  ;;  %v4662_v39 = vld [vmem:[%s5545_s4 + $0x7] ss:$0 sm:$0xff] }
 0x2d8   :  { %v1429_v9 = vrot.slane %v1428_v36, 4 }
 0x2d9   :  { %v1362_v26 = vrot.slane %v1361_v50, 2 }
 0x2da   :  { %v1430_v28 = vadd.f32 %v1429_v9, %v1428_v36 }
 0x2db   :  { %v1363_v4 = vadd.f32 %v1362_v26, %v1361_v50 }
 0x2dc   :  { %v1431_v56 = vrot.slane %v1430_v28, 2 }
 0x2dd   :  { %v1364_v10 = vrot.slane %v1363_v4, 1 }
 0x2de   :  { %v1432_v11 = vadd.f32 %v1431_v56, %v1430_v28 }
 0x2df   :  { %v1365_v2 = vadd.f32 %v1364_v10, %v1363_v4 }
 0x2e0   :  { %v1433_v1 = vrot.slane %v1432_v11, 1 }
 0x2e1   :  { %v4599_v17 = vmul.f32 0.00390625, %v1365_v2 }
 0x2e2   :  { %v1434_v7 = vadd.f32 %v1433_v1, %v1432_v11 }
 0x2e3   :  { %v1437_v5 = vmul.f32 %v4599_v17, %v4599_v17  ;;  %v1473_v29 = vsub.f32 %v4591_v35, %v4599_v17  ;;  %v1453_v3 = vsub.f32 %v4472_v15, %v4599_v17  ;;  %v1454_v62 = vsub.f32 %v4470_v23, %v4599_v17 }
 0x2e4   :  { %v1436_v14 = vmul.f32 0.00390625, %v1434_v7  ;;  %v1455_v30 = vsub.f32 %v4482_v21, %v4599_v17  ;;  %v1456_v16 = vsub.f32 %v4480_v27, %v4599_v17  ;;  %v1457_v8 = vsub.f32 %v4492_v42, %v4599_v17 }
 0x2e5   :  { %v1458_v37 = vsub.f32 %v4495_v34, %v4599_v17  ;;  %v1459_v61 = vsub.f32 %v4503_v49, %v4599_v17  ;;  %v1460_v15 = vsub.f32 %v4506_v47, %v4599_v17  ;;  %v1461_v23 = vsub.f32 %v4520_v32, %v4599_v17 }
 0x2e6   :  { %v1438_v22 = vsub.f32 %v1436_v14, %v1437_v5  ;;  %v1462_v21 = vsub.f32 %v4517_v48, %v4599_v17  ;;  %v1463_v27 = vsub.f32 %v4528_v20, %v4599_v17  ;;  %v1464_v42 = vsub.f32 %v4531_v40, %v4599_v17 }
 0x2e7   :  { %v1465_v34 = vsub.f32 %v4539_v53, %v4599_v17  ;;  %v1466_v49 = vsub.f32 %v4542_v45, %v4599_v17  ;;  %v1467_v47 = vsub.f32 %v4556_v43, %v4599_v17  ;;  %v1468_v32 = vsub.f32 %v4553_v12, %v4599_v17  ;;  %v27_v12 = vld [vmem:[%s5545_s4 + $0x6] sm:$0x1] }
 0x2e8   :  { %v1439_v51 = vmax.f32 %v1438_v22, 0.0  ;;  %v1469_v48 = vsub.f32 %v4562_v41, %v4599_v17  ;;  %v1470_v20 = vsub.f32 %v4571_v31, %v4599_v17  ;;  %v1471_v40 = vsub.f32 %v4574_v59, %v4599_v17 }
 0x2e9   :  { %v1472_v53 = vsub.f32 %v4582_v24, %v4599_v17  ;;  %v1474_v45 = vsub.f32 %v4589_v13, %v4599_v17  ;;  %v1443_v41 = vsub.f32 %v4413_v46, %v4599_v17  ;;  %v1444_v59 = vsub.f32 %v4408_v38, %v4599_v17 }
 0x2ea   :  { %v1440_v18 = vadd.f32 1e-05, %v1439_v51  ;;  %v1445_v24 = vsub.f32 %v4423_v19, %v4599_v17  ;;  %v1446_v13 = vsub.f32 %v4421_v33, %v4599_v17  ;;  %v1447_v6 = vsub.f32 %v4435_v54, %v4599_v17 }
 0x2eb   :  { %v1449_v38 = vsub.f32 %v4447_v52, %v4599_v17  ;;  %v1450_v46 = vsub.f32 %v4445_v25, %v4599_v17  ;;  %v1451_v54 = vsub.f32 %v4458_v63, %v4599_v17 }
 0x2ec   :  { %3186 = vrsqrt.f32 %v1440_v18 }
 0x2f6   :  { %v3187_v43 = vpop.eup %3186 }
 0x2f7   :  { %v1442_v55 = vmul.f32 %v3187_v43, %v27_v12 }
 0x2f9   :  { %v1478_v31 = vrot.slane %v1442_v55, %v3778_v0  ;;  %v1448_v0 = vsub.f32 %v4433_v44, %v4599_v17  ;;  %v1452_v44 = vsub.f32 %v4456_v57, %v4599_v17 }
 0x2fb   :  { %v1480_v19 = vmul.f32 %v1478_v31, %v1444_v59  ;;  %v1479_v60 = vmul.f32 %v1478_v31, %v1443_v41  ;;  %v1481_v33 = vmul.f32 %v1478_v31, %v1445_v24  ;;  %v1482_v36 = vmul.f32 %v1478_v31, %v1446_v13 }
 0x2fc   :  { %v1483_v50 = vmul.f32 %v1478_v31, %v1447_v6  ;;  %v1484_v9 = vmul.f32 %v1478_v31, %v1448_v0  ;;  %v1485_v26 = vmul.f32 %v1478_v31, %v1449_v38  ;;  %v1486_v28 = vmul.f32 %v1478_v31, %v1450_v46 }
 0x2fd   :  { %v1516_v4 = vadd.f32 %v4662_v39, %v1480_v19  ;;  %v1515_v52 = vadd.f32 %v4662_v39, %v1479_v60  ;;  %v1517_v25 = vadd.f32 %v4662_v39, %v1481_v33  ;;  %v1487_v56 = vmul.f32 %v1478_v31, %v1451_v54 }
 0x2fe   :  { %v1488_v10 = vmul.f32 %v1478_v31, %v1452_v44  ;;  %v1489_v11 = vmul.f32 %v1478_v31, %v1453_v3  ;;  %v1490_v2 = vmul.f32 %v1478_v31, %v1454_v62  ;;  %v1491_v1 = vmul.f32 %v1478_v31, %v1455_v30 }
 0x2ff   :  { %3054 = vmatprep.mubr.f32.mxu0 %v1515_v52  ;;  %v1492_v7 = vmul.f32 %v1478_v31, %v1456_v16  ;;  %v1493_v14 = vmul.f32 %v1478_v31, %v1457_v8  ;;  %v1494_v5 = vmul.f32 %v1478_v31, %v1458_v37  ;;  %v1518_v63 = vadd.f32 %v4662_v39, %v1482_v36 }
 0x300   :  { %3055 = vmatmul.mubr.f32.vlgmr.msra.gmra.mrb[16].mxu0 %v1516_v4  ;;  %v1519_v57 = vadd.f32 %v4662_v39, %v1483_v50  ;;  %v1495_v22 = vmul.f32 %v1478_v31, %v1459_v61  ;;  %v1496_v51 = vmul.f32 %v1478_v31, %v1460_v15  ;;  %v1497_v18 = vmul.f32 %v1478_v31, %v1461_v23 }
 0x301   :  { %3057 = vmatprep.mubr.f32.mxu0 %v1517_v25  ;;  %v1498_v12 = vmul.f32 %v1478_v31, %v1462_v21  ;;  %v1499_v43 = vmul.f32 %v1478_v31, %v1463_v27  ;;  %v1500_v55 = vmul.f32 %v1478_v31, %v1464_v42  ;;  %v1501_v41 = vmul.f32 %v1478_v31, %v1465_v34 }
 0x302   :  { %v1502_v3 = vmul.f32 %v1478_v31, %v1466_v49  ;;  %v1520_v62 = vadd.f32 %v4662_v39, %v1484_v9  ;;  %v1521_v30 = vadd.f32 %v4662_v39, %v1485_v26  ;;  %v1503_v16 = vmul.f32 %v1478_v31, %v1467_v47  ;;  %v4721_v9 = vld [vmem:[%s5545_s4 + $0x8] ss:$0 sm:$0xff]  ;;  %s3405_s4 = smov [#allocation2]  }
 0x303   :  { %v1504_v8 = vmul.f32 %v1478_v31, %v1468_v32  ;;  %v1505_v37 = vmul.f32 %v1478_v31, %v1469_v48  ;;  %v1506_v59 = vmul.f32 %v1478_v31, %v1470_v20  ;;  %v1507_v24 = vmul.f32 %v1478_v31, %v1471_v40  ;;  %s2705_s10 = sshll.u32 %s3405_s4, 4  ;;  %s2706_s10 = int_to_ptr.vmem [resolvable:$true] %s2705_s10 }
 0x304   :  { %3058 = vmatmul.mubr.f32.gmra.mrb[18].mxu0 %v1518_v63  ;;  %v1508_v61 = vmul.f32 %v1478_v31, %v1472_v53  ;;  %v1509_v15 = vmul.f32 %v1478_v31, %v1473_v29  ;;  %v1510_v23 = vmul.f32 %v1478_v31, %v1474_v45  ;;  %v1522_v21 = vadd.f32 %v4662_v39, %v1486_v28  ;;  %s3380_s11 = scalar_lea.vmem %s2706_s10, 4096  ;;  %p3385_p1 = scmp.lt.s32.totalorder %s2706_s10, %s2706_s10 }
 0x305   :  { %3060 = vmatprep.mubr.f32.mxu0 %v1519_v57  ;;  %v1523_v27 = vadd.f32 %v4662_v39, %v1487_v56  ;;  %v1524_v42 = vadd.f32 %v4662_v39, %v1488_v10  ;;  %v1525_v34 = vadd.f32 %v4662_v39, %v1489_v11  ;;  %v1526_v49 = vadd.f32 %v4662_v39, %v1490_v2  ;;  %p3381_p0 = scmp.ne.s32.totalorder %s2706_s10, %s3380_s11  ;;  %p3386_p2 = scmp.lt.s32.totalorder %s3380_s11, %s3380_s11 }
 0x306   :  { %v1527_v47 = vadd.f32 %v4662_v39, %v1491_v1  ;;  %v1528_v35 = vadd.f32 %v4662_v39, %v1492_v7  ;;  %v1529_v17 = vadd.f32 %v4662_v39, %v1493_v14  ;;  %v1530_v29 = vadd.f32 %v4662_v39, %v1494_v5 }
 0x307   :  { %v1531_v32 = vadd.f32 %v4662_v39, %v1495_v22  ;;  %v1532_v48 = vadd.f32 %v4662_v39, %v1496_v51  ;;  %v1533_v20 = vadd.f32 %v4662_v39, %v1497_v18  ;;  %v1534_v40 = vadd.f32 %v4662_v39, %v1498_v12  ;;  %p3387_p3 = por %p3386_p2, %p3385_p1 }
 0x308   :  { %3061 = vmatmul.mubr.f32.gmra.mrb[20].mxu0 %v1520_v62  ;;  %v1535_v53 = vadd.f32 %v4662_v39, %v1499_v43  ;;  %v1536_v45 = vadd.f32 %v4662_v39, %v1500_v55  ;;  %v1537_v31 = vadd.f32 %v4662_v39, %v1501_v41  ;;  %v1538_v13 = vadd.f32 %v4662_v39, %v1502_v3 }
 0x309   :  { %3063 = vmatprep.mubr.f32.mxu0 %v1521_v30  ;;  %v1539_v6 = vadd.f32 %v4662_v39, %v1503_v16  ;;  %v1540_v0 = vadd.f32 %v4662_v39, %v1504_v8  ;;  %v1541_v38 = vadd.f32 %v4662_v39, %v1505_v37  ;;  %v1542_v46 = vadd.f32 %v4662_v39, %v1506_v59  ;;  %p3388_p4 = pnand %p3387_p3, %p3381_p0 }
 0x30a   :  { %v1543_v19 = vadd.f32 %v4662_v39, %v1507_v24  ;;  %v1544_v60 = vadd.f32 %v4662_v39, %v1508_v61  ;;  %v1545_v33 = vadd.f32 %v4662_v39, %v1509_v15  ;;  %v1546_v36 = vadd.f32 %v4662_v39, %v1510_v23 }
 0x30b   :  { %v4712_v50 = vand.u32 127, %v273_v58 }
 0x30c   :  { %3064 = vmatmul.mubr.f32.gmra.mrb[22].mxu0 %v1522_v21 }
 0x30d   :  { %3066 = vmatprep.mubr.f32.mxu0 %v1523_v27  ;;  %vm1794_vm1 = vcmp.lt.s32.totalorder %v4712_v50, 4  ;;  %vm1795_vm2 = vcmp.lt.s32.totalorder %v4712_v50, 20 }
 0x30e   :  { %vm1796_vm4 = vmxor %vm1794_vm1, %vm3404_vm3 }
 0x30f   :  { %vm4725_vm5 = vmand %vm1795_vm2, %vm1796_vm4 }
 0x310   :  { %3067 = vmatmul.mubr.f32.gmra.mrb[24].mxu0 %v1524_v42 }
 0x311   :  { %3069 = vmatprep.mubr.f32.mxu0 %v1525_v34 }
 0x314   :  { %3070 = vmatmul.mubr.f32.gmra.mrb[26].mxu0 %v1526_v49 }
 0x315   :  { %3072 = vmatprep.mubr.f32.mxu0 %v1527_v47 }
 0x318   :  { %3073 = vmatmul.mubr.f32.gmra.mrb[28].mxu0 %v1528_v35 }
 0x319   :  { %3075 = vmatprep.mubr.f32.mxu0 %v1529_v17 }
 0x31c   :  { %3076 = vmatmul.mubr.f32.gmra.mrb[30].mxu0 %v1530_v29 }
 0x31d   :  { %3078 = vmatprep.mubr.f32.mxu0 %v1531_v32 }
 0x320   :  { %3079 = vmatmul.mubr.f32.gmra.mrb[32].mxu0 %v1532_v48 }
 0x321   :  { %3081 = vmatprep.mubr.f32.mxu0 %v1533_v20 }
 0x324   :  { %3082 = vmatmul.mubr.f32.gmra.mrb[34].mxu0 %v1534_v40 }
 0x325   :  { %3084 = vmatprep.mubr.f32.mxu0 %v1535_v53 }
 0x328   :  { %3085 = vmatmul.mubr.f32.gmra.mrb[36].mxu0 %v1536_v45 }
 0x329   :  { %3087 = vmatprep.mubr.f32.mxu0 %v1537_v31 }
 0x32c   :  { %3088 = vmatmul.mubr.f32.gmra.mrb[38].mxu0 %v1538_v13 }
 0x32d   :  { %3090 = vmatprep.mubr.f32.mxu0 %v1539_v6 }
 0x330   :  { %3091 = vmatmul.mubr.f32.gmra.mrb[40].mxu0 %v1540_v0 }
 0x331   :  { %3093 = vmatprep.mubr.f32.mxu0 %v1541_v38 }
 0x334   :  { %3094 = vmatmul.mubr.f32.gmra.mrb[42].mxu0 %v1542_v46 }
 0x335   :  { %3096 = vmatprep.mubr.f32.mxu0 %v1543_v19 }
 0x338   :  { %3097 = vmatmul.mubr.f32.gmra.mrb[44].mxu0 %v1544_v60 }
 0x339   :  { %3099 = vmatprep.mubr.f32.mxu0 %v1545_v33 }
 0x33c   :  { %3100 = vmatmul.mubr.f32.gmra.mrb[46].mxu0 %v1546_v36 }
 0x3d3   :  { %v3056_v26 = vpop.f32.mrb[16].mxu0 }
 0x3d4   :  { %v4730_v58 = vadd.f32 %v3056_v26, %v4721_v9  ;;  %v1633_v28 = vpop.f32.mrb[17].mxu0 }
 0x3d5   :  { %v4733_v54 = vadd.f32 %v4721_v9, %v1633_v28 }
 0x3d6   :  { %v1899_v44 = vsel %vm4725_vm5, %v4730_v58, -1e+30  ;;  %v1801_v4 = vsel %vm1794_vm1, %v4730_v58, -1e+30 }
 0x3d7   :  { %1932 = vmax.xlane.f32.xlu1 %v1899_v44  ;;  %1834 = vmax.xlane.f32.xlu0 %v1801_v4  ;;  %v3059_v52 = vpop.f32.mrb[18].mxu0  ;;  %v1800_v11 = vsel %vm1794_vm1, %v4733_v54, -1e+30  ;;  %v1898_v5 = vsel %vm4725_vm5, %v4733_v54, -1e+30 }
 0x3d8   :  { %v4742_v25 = vadd.f32 %v3059_v52, %v4721_v9  ;;  %v1643_v56 = vpop.f32.mrb[19].mxu0 }
 0x3d9   :  { %v4751_v7 = vadd.f32 %v4721_v9, %v1643_v56 }
 0x3da   :  { %v1803_v10 = vsel %vm1794_vm1, %v4742_v25, -1e+30  ;;  %v1901_v14 = vsel %vm4725_vm5, %v4742_v25, -1e+30 }
 0x3db   :  { %1838 = vmax.xlane.f32.xlu1 %v1803_v10  ;;  %v3062_v2 = vpop.f32.mrb[20].mxu0  ;;  %1832 = vmax.xlane.f32.xlu0 %v1800_v11  ;;  %v1802_v18 = vsel %vm1794_vm1, %v4751_v7, -1e+30  ;;  %v1900_v12 = vsel %vm4725_vm5, %v4751_v7, -1e+30 }
 0x3dc   :  { %v1653_v1 = vpop.f32.mrb[21].mxu0  ;;  %v4760_v22 = vadd.f32 %v3062_v2, %v4721_v9 }
 0x3dd   :  { %v4763_v51 = vadd.f32 %v4721_v9, %v1653_v1 }
 0x3de   :  { %v1805_v41 = vsel %vm1794_vm1, %v4760_v22, -1e+30  ;;  %v1903_v37 = vsel %vm4725_vm5, %v4760_v22, -1e+30 }
 0x3df   :  { %1936 = vmax.xlane.f32.xlu1 %v1901_v14  ;;  %v3065_v63 = vpop.f32.mrb[22].mxu0  ;;  %1930 = vmax.xlane.f32.xlu0 %v1898_v5  ;;  %v1804_v3 = vsel %vm1794_vm1, %v4763_v51, -1e+30  ;;  %v1902_v59 = vsel %vm4725_vm5, %v4763_v51, -1e+30 }
 0x3e0   :  { %v1663_v57 = vpop.f32.mrb[23].mxu0  ;;  %v4778_v16 = vadd.f32 %v3065_v63, %v4721_v9 }
 0x3e1   :  { %v4781_v8 = vadd.f32 %v4721_v9, %v1663_v57 }
 0x3e2   :  { %v1807_v15 = vsel %vm1794_vm1, %v4778_v16, -1e+30  ;;  %v1905_v49 = vsel %vm4725_vm5, %v4778_v16, -1e+30 }
 0x3e3   :  { %v3068_v43 = vpop.f32.mrb[24].mxu0  ;;  %1836 = vmax.xlane.f32.xlu1 %v1802_v18  ;;  %1934 = vmax.xlane.f32.xlu0 %v1900_v12  ;;  %v1806_v23 = vsel %vm1794_vm1, %v4781_v8, -1e+30  ;;  %v1904_v47 = vsel %vm4725_vm5, %v4781_v8, -1e+30 }
 0x3e4   :  { %v1673_v55 = vpop.f32.mrb[25].mxu0  ;;  %v4796_v42 = vadd.f32 %v3068_v43, %v4721_v9 }
 0x3e5   :  { %v4799_v34 = vadd.f32 %v4721_v9, %v1673_v55 }
 0x3e6   :  { %v1809_v48 = vsel %vm1794_vm1, %v4796_v42, -1e+30  ;;  %v1907_v0 = vsel %vm4725_vm5, %v4796_v42, -1e+30 }
 0x3e7   :  { %v3071_v62 = vpop.f32.mrb[26].mxu0  ;;  %1842 = vmax.xlane.f32.xlu1 %v1805_v41  ;;  %1840 = vmax.xlane.f32.xlu0 %v1804_v3  ;;  %v1808_v20 = vsel %vm1794_vm1, %v4799_v34, -1e+30  ;;  %v1906_v38 = vsel %vm4725_vm5, %v4799_v34, -1e+30 }
 0x3e8   :  { %v1683_v30 = vpop.f32.mrb[27].mxu0  ;;  %v4826_v13 = vadd.f32 %v3071_v62, %v4721_v9 }
 0x3e9   :  { %v4829_v6 = vadd.f32 %v4721_v9, %v1683_v30 }
 0x3ea   :  { %v1811_v36 = vsel %vm1794_vm1, %v4826_v13, -1e+30  ;;  %v1909_v11 = vsel %vm4725_vm5, %v4826_v13, -1e+30 }
 0x3eb   :  { %v3074_v24 = vpop.f32.mrb[28].mxu0  ;;  %1940 = vmax.xlane.f32.xlu1 %v1903_v37  ;;  %1938 = vmax.xlane.f32.xlu0 %v1902_v59  ;;  %v1810_v26 = vsel %vm1794_vm1, %v4829_v6, -1e+30  ;;  %v1908_v2 = vsel %vm4725_vm5, %v4829_v6, -1e+30 }
 0x3ec   :  { %v1693_v61 = vpop.f32.mrb[29].mxu0  ;;  %v4856_v56 = vadd.f32 %v3074_v24, %v4721_v9 }
 0x3ed   :  { %v4859_v10 = vadd.f32 %v4721_v9, %v1693_v61 }
 0x3ee   :  { %v1813_v57 = vsel %vm1794_vm1, %v4856_v56, -1e+30  ;;  %v1911_v30 = vsel %vm4725_vm5, %v4856_v56, -1e+30 }
 0x3ef   :  { %v3077_v21 = vpop.f32.mrb[30].mxu0  ;;  %1846 = vmax.xlane.f32.xlu1 %v1807_v15  ;;  %1844 = vmax.xlane.f32.xlu0 %v1806_v23  ;;  %v1812_v18 = vsel %vm1794_vm1, %v4859_v10, -1e+30  ;;  %v1910_v37 = vsel %vm4725_vm5, %v4859_v10, -1e+30 }
 0x3f0   :  { %v1703_v27 = vpop.f32.mrb[31].mxu0  ;;  %v4886_v3 = vadd.f32 %v3077_v21, %v4721_v9 }
 0x3f1   :  { %v4889_v62 = vadd.f32 %v4721_v9, %v1703_v27 }
 0x3f2   :  { %v1815_v23 = vsel %vm1794_vm1, %v4886_v3, -1e+30 }
 0x3f3   :  { %v3080_v35 = vpop.f32.mrb[32].mxu0  ;;  %1944 = vmax.xlane.f32.xlu1 %v1905_v49  ;;  %1942 = vmax.xlane.f32.xlu0 %v1904_v47  ;;  %v1814_v21 = vsel %vm1794_vm1, %v4889_v62, -1e+30 }
 0x3f4   :  { %v4808_v17 = vadd.f32 %v3080_v35, %v4721_v9  ;;  %v1713_v29 = vpop.f32.mrb[33].mxu0 }
 0x3f5   :  { %v4811_v32 = vadd.f32 %v4721_v9, %v1713_v29  ;;  %v1913_v29 = vsel %vm4725_vm5, %v4886_v3, -1e+30 }
 0x3f7   :  { %v3083_v40 = vpop.f32.mrb[34].mxu0  ;;  %1850 = vmax.xlane.f32.xlu1 %v1809_v48  ;;  %1848 = vmax.xlane.f32.xlu0 %v1808_v20  ;;  %v1912_v48 = vsel %vm4725_vm5, %v4889_v62, -1e+30  ;;  %v1817_v20 = vsel %vm1794_vm1, %v4808_v17, -1e+30 }
 0x3f8   :  { %v4820_v53 = vadd.f32 %v3083_v40, %v4721_v9  ;;  %v1723_v45 = vpop.f32.mrb[35].mxu0  ;;  %v1816_v40 = vsel %vm1794_vm1, %v4811_v32, -1e+30 }
 0x3f9   :  { %v4823_v31 = vadd.f32 %v4721_v9, %v1723_v45  ;;  %v1914_v45 = vsel %vm4725_vm5, %v4811_v32, -1e+30 }
 0x3fb   :  { %v3086_v46 = vpop.f32.mrb[36].mxu0  ;;  %1948 = vmax.xlane.f32.xlu1 %v1907_v0  ;;  %1946 = vmax.xlane.f32.xlu0 %v1906_v38  ;;  %v1819_v0 = vsel %vm1794_vm1, %v4820_v53, -1e+30  ;;  %v1818_v38 = vsel %vm1794_vm1, %v4823_v31, -1e+30 }
 0x3fc   :  { %v4838_v19 = vadd.f32 %v3086_v46, %v4721_v9  ;;  %v1733_v60 = vpop.f32.mrb[37].mxu0  ;;  %v1917_v46 = vsel %vm4725_vm5, %v4820_v53, -1e+30 }
 0x3fd   :  { %v4841_v33 = vadd.f32 %v4721_v9, %v1733_v60  ;;  %v1916_v60 = vsel %vm4725_vm5, %v4823_v31, -1e+30 }
 0x3ff   :  { %v3089_v28 = vpop.f32.mrb[38].mxu0  ;;  %1854 = vmax.xlane.f32.xlu1 %v1811_v36  ;;  %1852 = vmax.xlane.f32.xlu0 %v1810_v26  ;;  %v1821_v36 = vsel %vm1794_vm1, %v4838_v19, -1e+30  ;;  %v1820_v26 = vsel %vm1794_vm1, %v4841_v33, -1e+30 }
 0x400   :  { %v4850_v44 = vadd.f32 %v3089_v28, %v4721_v9  ;;  %v1743_v4 = vpop.f32.mrb[39].mxu0  ;;  %v1919_v28 = vsel %vm4725_vm5, %v4838_v19, -1e+30 }
 0x401   :  { %v4853_v52 = vadd.f32 %v4721_v9, %v1743_v4  ;;  %v1918_v4 = vsel %vm4725_vm5, %v4841_v33, -1e+30 }
 0x403   :  { %v3092_v1 = vpop.f32.mrb[40].mxu0  ;;  %1952 = vmax.xlane.f32.xlu1 %v1909_v11  ;;  %1950 = vmax.xlane.f32.xlu0 %v1908_v2  ;;  %v1823_v11 = vsel %vm1794_vm1, %v4850_v44, -1e+30  ;;  %v1822_v2 = vsel %vm1794_vm1, %v4853_v52, -1e+30 }
 0x404   :  { %v4868_v14 = vadd.f32 %v3092_v1, %v4721_v9  ;;  %v1753_v5 = vpop.f32.mrb[41].mxu0  ;;  %v1921_v1 = vsel %vm4725_vm5, %v4850_v44, -1e+30 }
 0x405   :  { %v4871_v63 = vadd.f32 %v4721_v9, %v1753_v5  ;;  %v1920_v5 = vsel %vm4725_vm5, %v4853_v52, -1e+30 }
 0x407   :  { %v3095_v12 = vpop.f32.mrb[42].mxu0  ;;  %1858 = vmax.xlane.f32.xlu1 %v1813_v57  ;;  %1856 = vmax.xlane.f32.xlu0 %v1812_v18  ;;  %v1825_v57 = vsel %vm1794_vm1, %v4868_v14, -1e+30  ;;  %v1824_v18 = vsel %vm1794_vm1, %v4871_v63, -1e+30 }
 0x408   :  { %v4880_v43 = vadd.f32 %v3095_v12, %v4721_v9  ;;  %v1763_v55 = vpop.f32.mrb[43].mxu0  ;;  %v1923_v12 = vsel %vm4725_vm5, %v4868_v14, -1e+30 }
 0x409   :  { %v4883_v41 = vadd.f32 %v4721_v9, %v1763_v55  ;;  %v1922_v55 = vsel %vm4725_vm5, %v4871_v63, -1e+30 }
 0x40b   :  { %v3098_v59 = vpop.f32.mrb[44].mxu0  ;;  %1956 = vmax.xlane.f32.xlu1 %v1911_v30  ;;  %1954 = vmax.xlane.f32.xlu0 %v1910_v37  ;;  %v1827_v30 = vsel %vm1794_vm1, %v4880_v43, -1e+30  ;;  %v1826_v37 = vsel %vm1794_vm1, %v4883_v41, -1e+30 }
 0x40c   :  { %v4898_v24 = vadd.f32 %v3098_v59, %v4721_v9  ;;  %v1773_v61 = vpop.f32.mrb[45].mxu0  ;;  %v1925_v59 = vsel %vm4725_vm5, %v4880_v43, -1e+30 }
 0x40d   :  { %v4901_v15 = vadd.f32 %v4721_v9, %v1773_v61  ;;  %v1924_v61 = vsel %vm4725_vm5, %v4883_v41, -1e+30 }
 0x40f   :  { %v3101_v27 = vpop.f32.mrb[46].mxu0  ;;  %1862 = vmax.xlane.f32.xlu1 %v1815_v23  ;;  %1860 = vmax.xlane.f32.xlu0 %v1814_v21  ;;  %v1829_v23 = vsel %vm1794_vm1, %v4898_v24, -1e+30  ;;  %v1828_v21 = vsel %vm1794_vm1, %v4901_v15, -1e+30 }
 0x410   :  { %v4910_v49 = vadd.f32 %v3101_v27, %v4721_v9  ;;  %v1783_v47 = vpop.f32.mrb[47].mxu0  ;;  %v1927_v27 = vsel %vm4725_vm5, %v4898_v24, -1e+30 }
 0x411   :  { %v4913_v35 = vadd.f32 %v4721_v9, %v1783_v47  ;;  %v1915_v9 = vsel %vm4725_vm5, %v4808_v17, -1e+30  ;;  %v1926_v47 = vsel %vm4725_vm5, %v4901_v15, -1e+30 }
 0x413   :  { %1960 = vmax.xlane.f32.xlu1 %v1913_v29  ;;  %1958 = vmax.xlane.f32.xlu0 %v1912_v48  ;;  %v1831_v29 = vsel %vm1794_vm1, %v4910_v49, -1e+30  ;;  %v1830_v48 = vsel %vm1794_vm1, %v4913_v35, -1e+30 }
 0x417   :  { %1866 = vmax.xlane.f32.xlu1 %v1817_v20  ;;  %1864 = vmax.xlane.f32.xlu0 %v1816_v40  ;;  %v1929_v20 = vsel %vm4725_vm5, %v4910_v49, -1e+30  ;;  %v1928_v40 = vsel %vm4725_vm5, %v4913_v35, -1e+30 }
 0x41b   :  { %1964 = vmax.xlane.f32.xlu1 %v1915_v9  ;;  %1962 = vmax.xlane.f32.xlu0 %v1914_v45 }
 0x41f   :  { %1870 = vmax.xlane.f32.xlu1 %v1819_v0  ;;  %1868 = vmax.xlane.f32.xlu0 %v1818_v38 }
 0x423   :  { %1968 = vmax.xlane.f32.xlu1 %v1917_v46  ;;  %1966 = vmax.xlane.f32.xlu0 %v1916_v60 }
 0x427   :  { %1874 = vmax.xlane.f32.xlu1 %v1821_v36  ;;  %1872 = vmax.xlane.f32.xlu0 %v1820_v26 }
 0x42b   :  { %1972 = vmax.xlane.f32.xlu1 %v1919_v28  ;;  %1970 = vmax.xlane.f32.xlu0 %v1918_v4 }
 0x42f   :  { %1878 = vmax.xlane.f32.xlu1 %v1823_v11  ;;  %1876 = vmax.xlane.f32.xlu0 %v1822_v2 }
 0x433   :  { %1976 = vmax.xlane.f32.xlu1 %v1921_v1  ;;  %1974 = vmax.xlane.f32.xlu0 %v1920_v5 }
 0x437   :  { %1882 = vmax.xlane.f32.xlu1 %v1825_v57  ;;  %1880 = vmax.xlane.f32.xlu0 %v1824_v18 }
 0x43b   :  { %1980 = vmax.xlane.f32.xlu1 %v1923_v12  ;;  %1978 = vmax.xlane.f32.xlu0 %v1922_v55 }
 0x43f   :  { %1886 = vmax.xlane.f32.xlu1 %v1827_v30  ;;  %1884 = vmax.xlane.f32.xlu0 %v1826_v37 }
 0x443   :  { %1984 = vmax.xlane.f32.xlu1 %v1925_v59  ;;  %1982 = vmax.xlane.f32.xlu0 %v1924_v61 }
 0x447   :  { %1890 = vmax.xlane.f32.xlu1 %v1829_v23  ;;  %1888 = vmax.xlane.f32.xlu0 %v1828_v21 }
 0x44b   :  { %1988 = vmax.xlane.f32.xlu1 %v1927_v27  ;;  %1986 = vmax.xlane.f32.xlu0 %v1926_v47 }
 0x44f   :  { %1894 = vmax.xlane.f32.xlu1 %v1831_v29  ;;  %1892 = vmax.xlane.f32.xlu0 %v1830_v48 }
 0x453   :  { %1992 = vmax.xlane.f32.xlu1 %v1929_v20  ;;  %1990 = vmax.xlane.f32.xlu0 %v1928_v40 }
 0x464   :  { %v1933_v9 = vpop.xlane.xlu1 %1932  ;;  %v1835_v45 = vpop.xlane.xlu0 %1834 }
 0x465   :  { %v1995_v0 = vsel %vm1794_vm1, %v1835_v45, %v1933_v9 }
 0x466   :  { %v2027_v38 = vsub.f32 %v4730_v58, %v1995_v0 }
 0x468   :  { %v2061_v46 = vsel %vm1795_vm2, %v2027_v38, -1e+30  ;;  %v1839_v60 = vpop.xlane.xlu1 %1838  ;;  %v1833_v36 = vpop.xlane.xlu0 %1832 }
 0x469   :  { %v2094_v26 = vmul.f32 1.442695, %v2061_v46 }
 0x46b   :  { %3188 = vpow2.f32 %v2094_v26 }
 0x46c   :  { %v1937_v28 = vpop.xlane.xlu1 %1936  ;;  %v1931_v4 = vpop.xlane.xlu0 %1930 }
 0x46d   :  { %v1997_v11 = vsel %vm1794_vm1, %v1839_v60, %v1937_v28  ;;  %v1994_v2 = vsel %vm1794_vm1, %v1833_v36, %v1931_v4 }
 0x46e   :  { %v2029_v1 = vsub.f32 %v4742_v25, %v1997_v11  ;;  %v2026_v5 = vsub.f32 %v4733_v54, %v1994_v2 }
 0x470   :  { %v2063_v58 = vsel %vm1795_vm2, %v2029_v1, -1e+30  ;;  %v2060_v57 = vsel %vm1795_vm2, %v2026_v5, -1e+30  ;;  %v1837_v18 = vpop.xlane.xlu1 %1836  ;;  %v1935_v12 = vpop.xlane.xlu0 %1934 }
 0x471   :  { %v2098_v55 = vmul.f32 1.442695, %v2063_v58  ;;  %v2092_v30 = vmul.f32 1.442695, %v2060_v57  ;;  %v1996_v37 = vsel %vm1794_vm1, %v1837_v18, %v1935_v12 }
 0x472   :  { %v2028_v59 = vsub.f32 %v4751_v7, %v1996_v37 }
 0x473   :  { %3190 = vpow2.f32 %v2098_v55 }
 0x474   :  { %3192 = vpow2.f32 %v2092_v30  ;;  %v2062_v54 = vsel %vm1795_vm2, %v2028_v59, -1e+30  ;;  %v1843_v25 = vpop.xlane.xlu1 %1842  ;;  %v1841_v61 = vpop.xlane.xlu0 %1840 }
 0x475   :  { %v5037_v23 = vpop.eup %3188  ;;  %v2096_v21 = vmul.f32 1.442695, %v2062_v54 }
 0x476   :  { %v2157_v27 = vsel %vm1794_vm1, %v5037_v23, 0.0  ;;  %v2253_v9 = vsel %vm4725_vm5, %v5037_v23, 0.0 }
 0x477   :  { %2190 = vadd.xlane.f32.xlu1 %v2157_v27  ;;  %3194 = vpow2.f32 %v2096_v21 }
 0x478   :  { %v1941_v47 = vpop.xlane.xlu1 %1940  ;;  %v1939_v29 = vpop.xlane.xlu0 %1938 }
 0x479   :  { %v1999_v7 = vsel %vm1794_vm1, %v1843_v25, %v1941_v47  ;;  %v1998_v48 = vsel %vm1794_vm1, %v1841_v61, %v1939_v29 }
 0x47a   :  { %v2031_v20 = vsub.f32 %v4760_v22, %v1999_v7  ;;  %v2030_v40 = vsub.f32 %v4763_v51, %v1998_v48 }
 0x47b   :  { %2286 = vadd.xlane.f32.xlu1 %v2253_v9 }
 0x47c   :  { %v2065_v45 = vsel %vm1795_vm2, %v2031_v20, -1e+30  ;;  %v2064_v0 = vsel %vm1795_vm2, %v2030_v40, -1e+30  ;;  %v1847_v38 = vpop.xlane.xlu1 %1846  ;;  %v1845_v46 = vpop.xlane.xlu0 %1844 }
 0x47d   :  { %v5055_v60 = vpop.eup %3190  ;;  %v2102_v36 = vmul.f32 1.442695, %v2065_v45  ;;  %v2100_v22 = vmul.f32 1.442695, %v2064_v0 }
 0x47e   :  { %v5057_v26 = vpop.eup %3192  ;;  %v2159_v51 = vsel %vm1794_vm1, %v5055_v60, 0.0  ;;  %v2255_v57 = vsel %vm4725_vm5, %v5055_v60, 0.0 }
 0x47f   :  { %3196 = vpow2.f32 %v2102_v36  ;;  %2194 = vadd.xlane.f32.xlu1 %v2159_v51  ;;  %v2156_v28 = vsel %vm1794_vm1, %v5057_v26, 0.0  ;;  %v2252_v18 = vsel %vm4725_vm5, %v5057_v26, 0.0 }
 0x480   :  { %2188 = vadd.xlane.f32.xlu0 %v2156_v28  ;;  %v1945_v4 = vpop.xlane.xlu1 %1944  ;;  %v1943_v11 = vpop.xlane.xlu0 %1942  ;;  %3198 = vpow2.f32 %v2100_v22 }
 0x481   :  { %v2001_v2 = vsel %vm1794_vm1, %v1847_v38, %v1945_v4  ;;  %v2000_v1 = vsel %vm1794_vm1, %v1845_v46, %v1943_v11  ;;  %v5077_v12 = vpop.eup %3194 }
 0x482   :  { %v2033_v5 = vsub.f32 %v4778_v16, %v2001_v2  ;;  %v2032_v58 = vsub.f32 %v4781_v8, %v2000_v1  ;;  %v2158_v54 = vsel %vm1794_vm1, %v5077_v12, 0.0  ;;  %v2254_v20 = vsel %vm4725_vm5, %v5077_v12, 0.0 }
 0x483   :  { %2290 = vadd.xlane.f32.xlu1 %v2255_v57 }
 0x484   :  { %v2067_v55 = vsel %vm1795_vm2, %v2033_v5, -1e+30  ;;  %v2066_v30 = vsel %vm1795_vm2, %v2032_v58, -1e+30  ;;  %2284 = vadd.xlane.f32.xlu0 %v2252_v18  ;;  %v1851_v16 = vpop.xlane.xlu1 %1850  ;;  %v1849_v8 = vpop.xlane.xlu0 %1848 }
 0x485   :  { %v2106_v37 = vmul.f32 1.442695, %v2067_v55  ;;  %v2104_v59 = vmul.f32 1.442695, %v2066_v30 }
 0x487   :  { %3200 = vpow2.f32 %v2106_v37 }
 0x488   :  { %2192 = vadd.xlane.f32.xlu0 %v2158_v54  ;;  %v1949_v25 = vpop.xlane.xlu1 %1948  ;;  %v1947_v61 = vpop.xlane.xlu0 %1946  ;;  %3202 = vpow2.f32 %v2104_v59 }
 0x489   :  { %v5086_v21 = vpop.eup %3196  ;;  %v2003_v27 = vsel %vm1794_vm1, %v1851_v16, %v1949_v25  ;;  %v2002_v47 = vsel %vm1794_vm1, %v1849_v8, %v1947_v61 }
 0x48a   :  { %v2035_v29 = vsub.f32 %v4796_v42, %v2003_v27  ;;  %v2034_v7 = vsub.f32 %v4799_v34, %v2002_v47  ;;  %v2161_v48 = vsel %vm1794_vm1, %v5086_v21, 0.0  ;;  %v5100_v40 = vpop.eup %3198  ;;  %v2257_v46 = vsel %vm4725_vm5, %v5086_v21, 0.0 }
 0x48b   :  { %2198 = vadd.xlane.f32.xlu1 %v2161_v48  ;;  %v2160_v36 = vsel %vm1794_vm1, %v5100_v40, 0.0  ;;  %v2256_v58 = vsel %vm4725_vm5, %v5100_v40, 0.0 }
 0x48c   :  { %v2069_v9 = vsel %vm1795_vm2, %v2035_v29, -1e+30  ;;  %v2068_v45 = vsel %vm1795_vm2, %v2034_v7, -1e+30  ;;  %2288 = vadd.xlane.f32.xlu0 %v2254_v20  ;;  %v1855_v42 = vpop.xlane.xlu1 %1854  ;;  %v1853_v34 = vpop.xlane.xlu0 %1852 }
 0x48d   :  { %v2110_v0 = vmul.f32 1.442695, %v2069_v9  ;;  %v2108_v38 = vmul.f32 1.442695, %v2068_v45 }
 0x48f   :  { %3204 = vpow2.f32 %v2110_v0  ;;  %2294 = vadd.xlane.f32.xlu1 %v2257_v46 }
 0x490   :  { %2196 = vadd.xlane.f32.xlu0 %v2160_v36  ;;  %v1953_v22 = vpop.xlane.xlu1 %1952  ;;  %v1951_v51 = vpop.xlane.xlu0 %1950  ;;  %3206 = vpow2.f32 %v2108_v38 }
 0x491   :  { %v5112_v28 = vpop.eup %3200  ;;  %v2005_v4 = vsel %vm1794_vm1, %v1855_v42, %v1953_v22  ;;  %v2004_v11 = vsel %vm1794_vm1, %v1853_v34, %v1951_v51 }
 0x492   :  { %v2037_v2 = vsub.f32 %v4826_v13, %v2005_v4  ;;  %v2036_v1 = vsub.f32 %v4829_v6, %v2004_v11  ;;  %v2163_v5 = vsel %vm1794_vm1, %v5112_v28, 0.0  ;;  %v5126_v57 = vpop.eup %3202  ;;  %v2259_v8 = vsel %vm4725_vm5, %v5112_v28, 0.0 }
 0x493   :  { %2202 = vadd.xlane.f32.xlu1 %v2163_v5  ;;  %v2162_v37 = vsel %vm1794_vm1, %v5126_v57, 0.0  ;;  %v2258_v48 = vsel %vm4725_vm5, %v5126_v57, 0.0 }
 0x494   :  { %v2071_v18 = vsel %vm1795_vm2, %v2037_v2, -1e+30  ;;  %v2070_v55 = vsel %vm1795_vm2, %v2036_v1, -1e+30  ;;  %2292 = vadd.xlane.f32.xlu0 %v2256_v58  ;;  %v1859_v13 = vpop.xlane.xlu1 %1858  ;;  %v1857_v6 = vpop.xlane.xlu0 %1856 }
 0x495   :  { %v2114_v30 = vmul.f32 1.442695, %v2071_v18  ;;  %v2112_v16 = vmul.f32 1.442695, %v2070_v55 }
 0x497   :  { %3208 = vpow2.f32 %v2114_v30  ;;  %2298 = vadd.xlane.f32.xlu1 %v2259_v8 }
 0x498   :  { %2200 = vadd.xlane.f32.xlu0 %v2162_v37  ;;  %v1957_v59 = vpop.xlane.xlu1 %1956  ;;  %v1955_v54 = vpop.xlane.xlu0 %1954  ;;  %3210 = vpow2.f32 %v2112_v16 }
 0x499   :  { %v5138_v25 = vpop.eup %3204  ;;  %v2007_v61 = vsel %vm1794_vm1, %v1859_v13, %v1957_v59  ;;  %v2006_v27 = vsel %vm1794_vm1, %v1857_v6, %v1955_v54 }
 0x49a   :  { %v2039_v47 = vsub.f32 %v4856_v56, %v2007_v61  ;;  %v2038_v29 = vsub.f32 %v4859_v10, %v2006_v27  ;;  %v2165_v7 = vsel %vm1794_vm1, %v5138_v25, 0.0  ;;  %v5152_v20 = vpop.eup %3206  ;;  %v2261_v0 = vsel %vm4725_vm5, %v5138_v25, 0.0 }
 0x49b   :  { %2206 = vadd.xlane.f32.xlu1 %v2165_v7  ;;  %v2164_v38 = vsel %vm1794_vm1, %v5152_v20, 0.0  ;;  %v2260_v5 = vsel %vm4725_vm5, %v5152_v20, 0.0 }
 0x49c   :  { %v2073_v9 = vsel %vm1795_vm2, %v2039_v47, -1e+30  ;;  %v2072_v45 = vsel %vm1795_vm2, %v2038_v29, -1e+30  ;;  %2296 = vadd.xlane.f32.xlu0 %v2258_v48  ;;  %v1863_v56 = vpop.xlane.xlu1 %1862  ;;  %v1861_v10 = vpop.xlane.xlu0 %1860 }
 0x49d   :  { %v2118_v42 = vmul.f32 1.442695, %v2073_v9  ;;  %v2116_v34 = vmul.f32 1.442695, %v2072_v45 }
 0x49f   :  { %3212 = vpow2.f32 %v2118_v42  ;;  %2302 = vadd.xlane.f32.xlu1 %v2261_v0 }
 0x4a0   :  { %2204 = vadd.xlane.f32.xlu0 %v2164_v38  ;;  %v1961_v46 = vpop.xlane.xlu1 %1960  ;;  %v1959_v36 = vpop.xlane.xlu0 %1958  ;;  %3214 = vpow2.f32 %v2116_v34 }
 0x4a1   :  { %v5164_v22 = vpop.eup %3208  ;;  %v2009_v51 = vsel %vm1794_vm1, %v1863_v56, %v1961_v46  ;;  %v2008_v4 = vsel %vm1794_vm1, %v1861_v10, %v1959_v36 }
 0x4a2   :  { %v2041_v11 = vsub.f32 %v4886_v3, %v2009_v51  ;;  %v2040_v2 = vsub.f32 %v4889_v62, %v2008_v4  ;;  %v2167_v1 = vsel %vm1794_vm1, %v5164_v22, 0.0  ;;  %v5178_v58 = vpop.eup %3210  ;;  %v2263_v30 = vsel %vm4725_vm5, %v5164_v22, 0.0 }
 0x4a3   :  { %2210 = vadd.xlane.f32.xlu1 %v2167_v1  ;;  %v2166_v16 = vsel %vm1794_vm1, %v5178_v58, 0.0  ;;  %v2262_v7 = vsel %vm4725_vm5, %v5178_v58, 0.0 }
 0x4a4   :  { %v2075_v18 = vsel %vm1795_vm2, %v2041_v11, -1e+30  ;;  %v2074_v55 = vsel %vm1795_vm2, %v2040_v2, -1e+30  ;;  %2300 = vadd.xlane.f32.xlu0 %v2260_v5  ;;  %v1867_v3 = vpop.xlane.xlu1 %1866  ;;  %v1865_v62 = vpop.xlane.xlu0 %1864 }
 0x4a5   :  { %v2122_v13 = vmul.f32 1.442695, %v2075_v18  ;;  %v2120_v6 = vmul.f32 1.442695, %v2074_v55 }
 0x4a7   :  { %3216 = vpow2.f32 %v2122_v13  ;;  %2306 = vadd.xlane.f32.xlu1 %v2263_v30 }
 0x4a8   :  { %2208 = vadd.xlane.f32.xlu0 %v2166_v16  ;;  %v1965_v8 = vpop.xlane.xlu1 %1964  ;;  %v1963_v37 = vpop.xlane.xlu0 %1962  ;;  %3218 = vpow2.f32 %v2120_v6 }
 0x4a9   :  { %v5190_v59 = vpop.eup %3212  ;;  %v2011_v54 = vsel %vm1794_vm1, %v1867_v3, %v1965_v8  ;;  %v2010_v61 = vsel %vm1794_vm1, %v1865_v62, %v1963_v37 }
 0x4aa   :  { %v2043_v27 = vsub.f32 %v4808_v17, %v2011_v54  ;;  %v2042_v47 = vsub.f32 %v4811_v32, %v2010_v61  ;;  %v2169_v29 = vsel %vm1794_vm1, %v5190_v59, 0.0  ;;  %v5204_v48 = vpop.eup %3214  ;;  %v2265_v42 = vsel %vm4725_vm5, %v5190_v59, 0.0 }
 0x4ab   :  { %2214 = vadd.xlane.f32.xlu1 %v2169_v29  ;;  %v2168_v34 = vsel %vm1794_vm1, %v5204_v48, 0.0  ;;  %v2264_v1 = vsel %vm4725_vm5, %v5204_v48, 0.0 }
 0x4ac   :  { %v2077_v9 = vsel %vm1795_vm2, %v2043_v27, -1e+30  ;;  %v2076_v45 = vsel %vm1795_vm2, %v2042_v47, -1e+30  ;;  %2304 = vadd.xlane.f32.xlu0 %v2262_v7  ;;  %v1871_v17 = vpop.xlane.xlu1 %1870  ;;  %v1869_v32 = vpop.xlane.xlu0 %1868 }
 0x4ad   :  { %v2126_v56 = vmul.f32 1.442695, %v2077_v9  ;;  %v2124_v10 = vmul.f32 1.442695, %v2076_v45 }
 0x4af   :  { %3220 = vpow2.f32 %v2126_v56  ;;  %2310 = vadd.xlane.f32.xlu1 %v2265_v42 }
 0x4b0   :  { %2212 = vadd.xlane.f32.xlu0 %v2168_v34  ;;  %v1969_v0 = vpop.xlane.xlu1 %1968  ;;  %v1967_v38 = vpop.xlane.xlu0 %1966  ;;  %3222 = vpow2.f32 %v2124_v10 }
 0x4b1   :  { %v5216_v46 = vpop.eup %3216  ;;  %v2013_v36 = vsel %vm1794_vm1, %v1871_v17, %v1969_v0  ;;  %v2012_v51 = vsel %vm1794_vm1, %v1869_v32, %v1967_v38 }
 0x4b2   :  { %v2045_v4 = vsub.f32 %v4820_v53, %v2013_v36  ;;  %v2044_v11 = vsub.f32 %v4823_v31, %v2012_v51  ;;  %v2171_v2 = vsel %vm1794_vm1, %v5216_v46, 0.0  ;;  %v5230_v5 = vpop.eup %3218  ;;  %v2267_v13 = vsel %vm4725_vm5, %v5216_v46, 0.0 }
 0x4b3   :  { %2218 = vadd.xlane.f32.xlu1 %v2171_v2  ;;  %v2170_v6 = vsel %vm1794_vm1, %v5230_v5, 0.0  ;;  %v2266_v29 = vsel %vm4725_vm5, %v5230_v5, 0.0 }
 0x4b4   :  { %v2079_v18 = vsel %vm1795_vm2, %v2045_v4, -1e+30  ;;  %v2078_v55 = vsel %vm1795_vm2, %v2044_v11, -1e+30  ;;  %2308 = vadd.xlane.f32.xlu0 %v2264_v1  ;;  %v1875_v53 = vpop.xlane.xlu1 %1874  ;;  %v1873_v31 = vpop.xlane.xlu0 %1872 }
 0x4b5   :  { %v2130_v3 = vmul.f32 1.442695, %v2079_v18  ;;  %v2128_v62 = vmul.f32 1.442695, %v2078_v55 }
 0x4b7   :  { %3224 = vpow2.f32 %v2130_v3  ;;  %2314 = vadd.xlane.f32.xlu1 %v2267_v13 }
 0x4b8   :  { %2216 = vadd.xlane.f32.xlu0 %v2170_v6  ;;  %v1973_v30 = vpop.xlane.xlu1 %1972  ;;  %v1971_v16 = vpop.xlane.xlu0 %1970  ;;  %3226 = vpow2.f32 %v2128_v62 }
 0x4b9   :  { %v5242_v8 = vpop.eup %3220  ;;  %v2015_v37 = vsel %vm1794_vm1, %v1875_v53, %v1973_v30  ;;  %v2014_v54 = vsel %vm1794_vm1, %v1873_v31, %v1971_v16 }
 0x4ba   :  { %v2047_v61 = vsub.f32 %v4838_v19, %v2015_v37  ;;  %v2046_v27 = vsub.f32 %v4841_v33, %v2014_v54  ;;  %v2173_v47 = vsel %vm1794_vm1, %v5242_v8, 0.0  ;;  %v5256_v7 = vpop.eup %3222  ;;  %v2269_v56 = vsel %vm4725_vm5, %v5242_v8, 0.0 }
 0x4bb   :  { %2222 = vadd.xlane.f32.xlu1 %v2173_v47  ;;  %v2172_v10 = vsel %vm1794_vm1, %v5256_v7, 0.0  ;;  %v2268_v2 = vsel %vm4725_vm5, %v5256_v7, 0.0 }
 0x4bc   :  { %v2081_v9 = vsel %vm1795_vm2, %v2047_v61, -1e+30  ;;  %v2080_v45 = vsel %vm1795_vm2, %v2046_v27, -1e+30  ;;  %2312 = vadd.xlane.f32.xlu0 %v2266_v29  ;;  %v1879_v19 = vpop.xlane.xlu1 %1878  ;;  %v1877_v33 = vpop.xlane.xlu0 %1876 }
 0x4bd   :  { %v2134_v17 = vmul.f32 1.442695, %v2081_v9  ;;  %v2132_v32 = vmul.f32 1.442695, %v2080_v45 }
 0x4bf   :  { %3228 = vpow2.f32 %v2134_v17  ;;  %2318 = vadd.xlane.f32.xlu1 %v2269_v56 }
 0x4c0   :  { %2220 = vadd.xlane.f32.xlu0 %v2172_v10  ;;  %v1977_v42 = vpop.xlane.xlu1 %1976  ;;  %v1975_v34 = vpop.xlane.xlu0 %1974  ;;  %3230 = vpow2.f32 %v2132_v32 }
 0x4c1   :  { %v5268_v0 = vpop.eup %3224  ;;  %v2017_v38 = vsel %vm1794_vm1, %v1879_v19, %v1977_v42  ;;  %v2016_v36 = vsel %vm1794_vm1, %v1877_v33, %v1975_v34 }
 0x4c2   :  { %v2049_v51 = vsub.f32 %v4850_v44, %v2017_v38  ;;  %v2048_v4 = vsub.f32 %v4853_v52, %v2016_v36  ;;  %v2175_v11 = vsel %vm1794_vm1, %v5268_v0, 0.0  ;;  %v5282_v1 = vpop.eup %3226  ;;  %v2271_v3 = vsel %vm4725_vm5, %v5268_v0, 0.0 }
 0x4c3   :  { %2226 = vadd.xlane.f32.xlu1 %v2175_v11  ;;  %v2174_v62 = vsel %vm1794_vm1, %v5282_v1, 0.0  ;;  %v2270_v47 = vsel %vm4725_vm5, %v5282_v1, 0.0 }
 0x4c4   :  { %v2083_v18 = vsel %vm1795_vm2, %v2049_v51, -1e+30  ;;  %v2082_v55 = vsel %vm1795_vm2, %v2048_v4, -1e+30  ;;  %2316 = vadd.xlane.f32.xlu0 %v2268_v2  ;;  %v1883_v44 = vpop.xlane.xlu1 %1882  ;;  %v1881_v52 = vpop.xlane.xlu0 %1880 }
 0x4c5   :  { %v2138_v53 = vmul.f32 1.442695, %v2083_v18  ;;  %v2136_v31 = vmul.f32 1.442695, %v2082_v55 }
 0x4c7   :  { %3232 = vpow2.f32 %v2138_v53  ;;  %2322 = vadd.xlane.f32.xlu1 %v2271_v3 }
 0x4c8   :  { %2224 = vadd.xlane.f32.xlu0 %v2174_v62  ;;  %v1981_v13 = vpop.xlane.xlu1 %1980  ;;  %v1979_v6 = vpop.xlane.xlu0 %1978  ;;  %3234 = vpow2.f32 %v2136_v31 }
 0x4c9   :  { %v5294_v30 = vpop.eup %3228  ;;  %v2019_v16 = vsel %vm1794_vm1, %v1883_v44, %v1981_v13  ;;  %v2018_v37 = vsel %vm1794_vm1, %v1881_v52, %v1979_v6 }
 0x4ca   :  { %v2051_v54 = vsub.f32 %v4868_v14, %v2019_v16  ;;  %v2050_v61 = vsub.f32 %v4871_v63, %v2018_v37  ;;  %v2177_v27 = vsel %vm1794_vm1, %v5294_v30, 0.0  ;;  %v5308_v29 = vpop.eup %3230  ;;  %v2273_v17 = vsel %vm4725_vm5, %v5294_v30, 0.0 }
 0x4cb   :  { %2230 = vadd.xlane.f32.xlu1 %v2177_v27  ;;  %v2176_v32 = vsel %vm1794_vm1, %v5308_v29, 0.0  ;;  %v2272_v11 = vsel %vm4725_vm5, %v5308_v29, 0.0 }
 0x4cc   :  { %v2085_v9 = vsel %vm1795_vm2, %v2051_v54, -1e+30  ;;  %v2084_v45 = vsel %vm1795_vm2, %v2050_v61, -1e+30  ;;  %2320 = vadd.xlane.f32.xlu0 %v2270_v47  ;;  %v1887_v14 = vpop.xlane.xlu1 %1886  ;;  %v1885_v63 = vpop.xlane.xlu0 %1884 }
 0x4cd   :  { %v2142_v19 = vmul.f32 1.442695, %v2085_v9  ;;  %v2140_v33 = vmul.f32 1.442695, %v2084_v45 }
 0x4cf   :  { %3236 = vpow2.f32 %v2142_v19  ;;  %2326 = vadd.xlane.f32.xlu1 %v2273_v17 }
 0x4d0   :  { %2228 = vadd.xlane.f32.xlu0 %v2176_v32  ;;  %v1985_v56 = vpop.xlane.xlu1 %1984  ;;  %v1983_v10 = vpop.xlane.xlu0 %1982  ;;  %3238 = vpow2.f32 %v2140_v33 }
 0x4d1   :  { %v5320_v42 = vpop.eup %3232  ;;  %v2021_v34 = vsel %vm1794_vm1, %v1887_v14, %v1985_v56  ;;  %v2020_v38 = vsel %vm1794_vm1, %v1885_v63, %v1983_v10 }
 0x4d2   :  { %v2053_v36 = vsub.f32 %v4880_v43, %v2021_v34  ;;  %v2052_v51 = vsub.f32 %v4883_v41, %v2020_v38  ;;  %v2179_v4 = vsel %vm1794_vm1, %v5320_v42, 0.0  ;;  %v5334_v2 = vpop.eup %3234  ;;  %v2275_v53 = vsel %vm4725_vm5, %v5320_v42, 0.0 }
 0x4d3   :  { %2234 = vadd.xlane.f32.xlu1 %v2179_v4  ;;  %v2178_v31 = vsel %vm1794_vm1, %v5334_v2, 0.0  ;;  %v2274_v27 = vsel %vm4725_vm5, %v5334_v2, 0.0 }
 0x4d4   :  { %v2087_v18 = vsel %vm1795_vm2, %v2053_v36, -1e+30  ;;  %v2086_v55 = vsel %vm1795_vm2, %v2052_v51, -1e+30  ;;  %2324 = vadd.xlane.f32.xlu0 %v2272_v11  ;;  %v1891_v43 = vpop.xlane.xlu1 %1890  ;;  %v1889_v41 = vpop.xlane.xlu0 %1888 }
 0x4d5   :  { %v2146_v44 = vmul.f32 1.442695, %v2087_v18  ;;  %v2144_v52 = vmul.f32 1.442695, %v2086_v55 }
 0x4d7   :  { %3240 = vpow2.f32 %v2146_v44  ;;  %2330 = vadd.xlane.f32.xlu1 %v2275_v53 }
 0x4d8   :  { %2232 = vadd.xlane.f32.xlu0 %v2178_v31  ;;  %v1989_v3 = vpop.xlane.xlu1 %1988  ;;  %v1987_v62 = vpop.xlane.xlu0 %1986  ;;  %3242 = vpow2.f32 %v2144_v52 }
 0x4d9   :  { %v5346_v13 = vpop.eup %3236  ;;  %v2023_v6 = vsel %vm1794_vm1, %v1891_v43, %v1989_v3  ;;  %v2022_v16 = vsel %vm1794_vm1, %v1889_v41, %v1987_v62 }
 0x4da   :  { %v2055_v37 = vsub.f32 %v4898_v24, %v2023_v6  ;;  %v2054_v54 = vsub.f32 %v4901_v15, %v2022_v16  ;;  %v2181_v61 = vsel %vm1794_vm1, %v5346_v13, 0.0  ;;  %v5360_v47 = vpop.eup %3238  ;;  %v2277_v19 = vsel %vm4725_vm5, %v5346_v13, 0.0 }
 0x4db   :  { %2238 = vadd.xlane.f32.xlu1 %v2181_v61  ;;  %v2180_v33 = vsel %vm1794_vm1, %v5360_v47, 0.0  ;;  %v2276_v4 = vsel %vm4725_vm5, %v5360_v47, 0.0 }
 0x4dc   :  { %v2089_v9 = vsel %vm1795_vm2, %v2055_v37, -1e+30  ;;  %v2088_v45 = vsel %vm1795_vm2, %v2054_v54, -1e+30  ;;  %2328 = vadd.xlane.f32.xlu0 %v2274_v27  ;;  %v1895_v24 = vpop.xlane.xlu1 %1894  ;;  %v1893_v15 = vpop.xlane.xlu0 %1892 }
 0x4dd   :  { %v2150_v14 = vmul.f32 1.442695, %v2089_v9  ;;  %v2148_v63 = vmul.f32 1.442695, %v2088_v45 }
 0x4df   :  { %3244 = vpow2.f32 %v2150_v14  ;;  %2334 = vadd.xlane.f32.xlu1 %v2277_v19 }
 0x4e0   :  { %2236 = vadd.xlane.f32.xlu0 %v2180_v33  ;;  %v1993_v17 = vpop.xlane.xlu1 %1992  ;;  %v1991_v32 = vpop.xlane.xlu0 %1990  ;;  %3246 = vpow2.f32 %v2148_v63 }
 0x4e1   :  { %v5372_v56 = vpop.eup %3240  ;;  %v2025_v10 = vsel %vm1794_vm1, %v1895_v24, %v1993_v17  ;;  %v2024_v34 = vsel %vm1794_vm1, %v1893_v15, %v1991_v32 }
 0x4e2   :  { %v2057_v38 = vsub.f32 %v4910_v49, %v2025_v10  ;;  %v2056_v36 = vsub.f32 %v4913_v35, %v2024_v34  ;;  %v2183_v51 = vsel %vm1794_vm1, %v5372_v56, 0.0  ;;  %v5386_v11 = vpop.eup %3242  ;;  %v2279_v43 = vsel %vm4725_vm5, %v5372_v56, 0.0 }
 0x4e3   :  { %2242 = vadd.xlane.f32.xlu1 %v2183_v51  ;;  %v2182_v41 = vsel %vm1794_vm1, %v5386_v11, 0.0  ;;  %v2278_v53 = vsel %vm4725_vm5, %v5386_v11, 0.0 }
 0x4e4   :  { %v2091_v18 = vsel %vm1795_vm2, %v2057_v38, -1e+30  ;;  %v2090_v55 = vsel %vm1795_vm2, %v2056_v36, -1e+30  ;;  %2332 = vadd.xlane.f32.xlu0 %v2276_v4 }
 0x4e5   :  { %v2154_v49 = vmul.f32 1.442695, %v2091_v18  ;;  %v2152_v35 = vmul.f32 1.442695, %v2090_v55 }
 0x4e7   :  { %3248 = vpow2.f32 %v2154_v49  ;;  %2338 = vadd.xlane.f32.xlu1 %v2279_v43 }
 0x4e8   :  { %2240 = vadd.xlane.f32.xlu0 %v2182_v41  ;;  %3250 = vpow2.f32 %v2152_v35 }
 0x4e9   :  { %v5398_v44 = vpop.eup %3244 }
 0x4ea   :  { %v2185_v52 = vsel %vm1794_vm1, %v5398_v44, 0.0  ;;  %v5406_v31 = vpop.eup %3246  ;;  %v2281_v3 = vsel %vm4725_vm5, %v5398_v44, 0.0 }
 0x4eb   :  { %2246 = vadd.xlane.f32.xlu1 %v2185_v52  ;;  %v2184_v62 = vsel %vm1794_vm1, %v5406_v31, 0.0  ;;  %v2280_v37 = vsel %vm4725_vm5, %v5406_v31, 0.0 }
 0x4ec   :  { %2336 = vadd.xlane.f32.xlu0 %v2278_v53 }
 0x4ef   :  { %2342 = vadd.xlane.f32.xlu1 %v2281_v3 }
 0x4f0   :  { %2244 = vadd.xlane.f32.xlu0 %v2184_v62 }
 0x4f1   :  { %v5414_v6 = vpop.eup %3248 }
 0x4f2   :  { %v2187_v16 = vsel %vm1794_vm1, %v5414_v6, 0.0  ;;  %v5422_v54 = vpop.eup %3250  ;;  %v2283_v61 = vsel %vm4725_vm5, %v5414_v6, 0.0 }
 0x4f3   :  { %2250 = vadd.xlane.f32.xlu1 %v2187_v16  ;;  %v2186_v27 = vsel %vm1794_vm1, %v5422_v54, 0.0  ;;  %v2282_v9 = vsel %vm4725_vm5, %v5422_v54, 0.0 }
 0x4f4   :  { %2340 = vadd.xlane.f32.xlu0 %v2280_v37 }
 0x4f7   :  { %2346 = vadd.xlane.f32.xlu1 %v2283_v61 }
 0x4f8   :  { %2248 = vadd.xlane.f32.xlu0 %v2186_v27 }
 0x4fc   :  { %2344 = vadd.xlane.f32.xlu0 %v2282_v9 }
 0x504   :  { %v2191_v45 = vpop.xlane.xlu1 %2190 }
 0x505   :  { %3252 = vrcp.f32 %v2191_v45 }
 0x508   :  { %v2287_v24 = vpop.xlane.xlu1 %2286 }
 0x509   :  { %3254 = vrcp.f32 %v2287_v24 }
 0x50c   :  { %v2195_v15 = vpop.xlane.xlu1 %2194 }
 0x50d   :  { %3256 = vrcp.f32 %v2195_v15  ;;  %v2189_v14 = vpop.xlane.xlu0 %2188 }
 0x50e   :  { %3258 = vrcp.f32 %v2189_v14 }
 0x50f   :  { %v3253_v63 = vpop.eup %3252 }
 0x510   :  { %v2381_v19 = vmul.f32 %v3253_v63, %v2191_v45  ;;  %v2291_v33 = vpop.xlane.xlu1 %2290 }
 0x511   :  { %3260 = vrcp.f32 %v2291_v33  ;;  %v2285_v17 = vpop.xlane.xlu0 %2284 }
 0x512   :  { %3262 = vrcp.f32 %v2285_v17  ;;  %v2413_v10 = vsub.f32 2.0, %v2381_v19 }
 0x513   :  { %v3255_v32 = vpop.eup %3254 }
 0x514   :  { %v2509_v34 = vmul.f32 %v3255_v32, %v2287_v24  ;;  %v2445_v4 = vmul.f32 %v3253_v63, %v2413_v10 }
 0x515   :  { %v2193_v39 = vpop.xlane.xlu0 %2192 }
 0x516   :  { %v2541_v38 = vsub.f32 2.0, %v2509_v34  ;;  %3264 = vrcp.f32 %v2193_v39 }
 0x517   :  { %v3257_v36 = vpop.eup %3256 }
 0x518   :  { %v3259_v51 = vpop.eup %3258  ;;  %v2573_v18 = vmul.f32 %v3255_v32, %v2541_v38  ;;  %v2383_v55 = vmul.f32 %v3257_v36, %v2195_v15  ;;  %v2199_v49 = vpop.xlane.xlu1 %2198 }
 0x519   :  { %v2380_v35 = vmul.f32 %v3259_v51, %v2189_v14  ;;  %3266 = vrcp.f32 %v2199_v49  ;;  %v2289_v43 = vpop.xlane.xlu0 %2288 }
 0x51a   :  { %v2605_v41 = vsel %vm1794_vm1, %v2445_v4, %v2573_v18  ;;  %3268 = vrcp.f32 %v2289_v43  ;;  %v2415_v62 = vsub.f32 2.0, %v2383_v55 }
 0x51b   :  { %v3261_v52 = vpop.eup %3260  ;;  %v2637_v53 = vmul.f32 %v5037_v23, %v2605_v41  ;;  %v2412_v61 = vsub.f32 2.0, %v2380_v35 }
 0x51c   :  { %v3263_v3 = vpop.eup %3262  ;;  %v2511_v16 = vmul.f32 %v3261_v52, %v2291_v33  ;;  %v2295_v37 = vpop.xlane.xlu1 %2294  ;;  %v2447_v14 = vmul.f32 %v3257_v36, %v2415_v62 }
 0x51d   :  { %2669 = vst [vmem:[#allocation2 + $0x8] sm:$0xff] %v2637_v53  ;;  %v2508_v27 = vmul.f32 %v3263_v3, %v2285_v17  ;;  %3270 = vrcp.f32 %v2295_v37  ;;  %v2197_v9 = vpop.xlane.xlu0 %2196  ;;  %v2444_v32 = vmul.f32 %v3259_v51, %v2412_v61 }
 0x51e   :  { %v2543_v45 = vsub.f32 2.0, %v2511_v16  ;;  %3272 = vrcp.f32 %v2197_v9 }
 0x51f   :  { %v2540_v24 = vsub.f32 2.0, %v2508_v27 }
 0x520   :  { %v3265_v15 = vpop.eup %3264  ;;  %v2575_v63 = vmul.f32 %v3261_v52, %v2543_v45  ;;  %v2203_v19 = vpop.xlane.xlu1 %2202 }
 0x521   :  { %v2572_v10 = vmul.f32 %v3263_v3, %v2540_v24  ;;  %v2382_v34 = vmul.f32 %v3265_v15, %v2193_v39  ;;  %3274 = vrcp.f32 %v2203_v19  ;;  %v2293_v23 = vpop.xlane.xlu0 %2292 }
 0x522   :  { %v2607_v33 = vsel %vm1794_vm1, %v2447_v14, %v2575_v63  ;;  %3276 = vrcp.f32 %v2293_v23 }
 0x523   :  { %v3267_v38 = vpop.eup %3266  ;;  %v2639_v17 = vmul.f32 %v5055_v60, %v2607_v33  ;;  %v2604_v4 = vsel %vm1794_vm1, %v2444_v32, %v2572_v10  ;;  %v2414_v51 = vsub.f32 2.0, %v2382_v34 }
 0x524   :  { %v3269_v18 = vpop.eup %3268  ;;  %v2636_v36 = vmul.f32 %v5057_v26, %v2604_v4  ;;  %v2385_v55 = vmul.f32 %v3267_v38, %v2199_v49  ;;  %v2299_v35 = vpop.xlane.xlu1 %2298 }
 0x525   :  { %2671 = vst [vmem:[#allocation2 + $0x18] sm:$0xff] %v2639_v17  ;;  %v2510_v39 = vmul.f32 %v3269_v18, %v2289_v43  ;;  %3278 = vrcp.f32 %v2299_v35  ;;  %v2201_v41 = vpop.xlane.xlu0 %2200  ;;  %v2446_v61 = vmul.f32 %v3265_v15, %v2414_v51 }
 0x526   :  { %2668 = vst [vmem:[#allocation2] sm:$0xff] %v2636_v36  ;;  %3280 = vrcp.f32 %v2201_v41  ;;  %v2417_v62 = vsub.f32 2.0, %v2385_v55 }
 0x527   :  { %v3271_v52 = vpop.eup %3270  ;;  %v2542_v53 = vsub.f32 2.0, %v2510_v39 }
 0x528   :  { %v3273_v3 = vpop.eup %3272  ;;  %v2513_v60 = vmul.f32 %v3271_v52, %v2295_v37  ;;  %v2207_v16 = vpop.xlane.xlu1 %2206  ;;  %v2449_v63 = vmul.f32 %v3267_v38, %v2417_v62 }
 0x529   :  { %v2574_v27 = vmul.f32 %v3269_v18, %v2542_v53  ;;  %v2384_v45 = vmul.f32 %v3273_v3, %v2197_v9  ;;  %3282 = vrcp.f32 %v2207_v16  ;;  %v2297_v26 = vpop.xlane.xlu0 %2296 }
 0x52a   :  { %v2545_v49 = vsub.f32 2.0, %v2513_v60  ;;  %3284 = vrcp.f32 %v2297_v26 }
 0x52b   :  { %v3275_v24 = vpop.eup %3274  ;;  %v2606_v43 = vsel %vm1794_vm1, %v2446_v61, %v2574_v27  ;;  %v2416_v37 = vsub.f32 2.0, %v2384_v45 }
 0x52c   :  { %v3277_v14 = vpop.eup %3276  ;;  %v2638_v32 = vmul.f32 %v5077_v12, %v2606_v43  ;;  %v2577_v10 = vmul.f32 %v3271_v52, %v2545_v49  ;;  %v2387_v34 = vmul.f32 %v3275_v24, %v2203_v19  ;;  %v2303_v33 = vpop.xlane.xlu1 %2302 }
 0x52d   :  { %v2512_v17 = vmul.f32 %v3277_v14, %v2293_v23  ;;  %3286 = vrcp.f32 %v2303_v33  ;;  %v2205_v15 = vpop.xlane.xlu0 %2204  ;;  %v2448_v19 = vmul.f32 %v3273_v3, %v2416_v37 }
 0x52e   :  { %2670 = vst [vmem:[#allocation2 + $0x10] sm:$0xff] %v2638_v32  ;;  %v2609_v9 = vsel %vm1794_vm1, %v2449_v63, %v2577_v10  ;;  %3288 = vrcp.f32 %v2205_v15  ;;  %v2419_v38 = vsub.f32 2.0, %v2387_v34 }
 0x52f   :  { %v3279_v4 = vpop.eup %3278  ;;  %v2641_v18 = vmul.f32 %v5086_v21, %v2609_v9  ;;  %v2544_v36 = vsub.f32 2.0, %v2512_v17 }
 0x530   :  { %v3281_v55 = vpop.eup %3280  ;;  %v2515_v51 = vmul.f32 %v3279_v4, %v2299_v35  ;;  %v2211_v12 = vpop.xlane.xlu1 %2210  ;;  %v2451_v27 = vmul.f32 %v3275_v24, %v2419_v38 }
 0x531   :  { %2673 = vst [vmem:[#allocation2 + $0x28] sm:$0xff] %v2641_v18  ;;  %v2576_v39 = vmul.f32 %v3277_v14, %v2544_v36  ;;  %v2386_v52 = vmul.f32 %v3281_v55, %v2201_v41  ;;  %3290 = vrcp.f32 %v2211_v12  ;;  %v2301_v23 = vpop.xlane.xlu0 %2300 }
 0x532   :  { %v2547_v53 = vsub.f32 2.0, %v2515_v51  ;;  %3292 = vrcp.f32 %v2301_v23 }
 0x533   :  { %v3283_v62 = vpop.eup %3282  ;;  %v2608_v60 = vsel %vm1794_vm1, %v2448_v19, %v2576_v39  ;;  %v2418_v43 = vsub.f32 2.0, %v2386_v52 }
 0x534   :  { %v3285_v61 = vpop.eup %3284  ;;  %v2640_v21 = vmul.f32 %v5100_v40, %v2608_v60  ;;  %v2579_v45 = vmul.f32 %v3279_v4, %v2547_v53  ;;  %v2389_v49 = vmul.f32 %v3283_v62, %v2207_v16  ;;  %v2307_v35 = vpop.xlane.xlu1 %2306 }
 0x535   :  { %v2514_v63 = vmul.f32 %v3285_v61, %v2297_v26  ;;  %3294 = vrcp.f32 %v2307_v35  ;;  %v2209_v3 = vpop.xlane.xlu0 %2208  ;;  %v2450_v16 = vmul.f32 %v3281_v55, %v2418_v43 }
 0x536   :  { %2672 = vst [vmem:[#allocation2 + $0x20] sm:$0xff] %v2640_v21  ;;  %v2611_v41 = vsel %vm1794_vm1, %v2451_v27, %v2579_v45  ;;  %3296 = vrcp.f32 %v2209_v3  ;;  %v2421_v24 = vsub.f32 2.0, %v2389_v49 }
 0x537   :  { %v3287_v14 = vpop.eup %3286  ;;  %v2643_v32 = vmul.f32 %v5112_v28, %v2611_v41  ;;  %v2546_v10 = vsub.f32 2.0, %v2514_v63 }
 0x538   :  { %v3289_v34 = vpop.eup %3288  ;;  %v2517_v37 = vmul.f32 %v3287_v14, %v2303_v33  ;;  %v2215_v40 = vpop.xlane.xlu1 %2214  ;;  %v2453_v51 = vmul.f32 %v3283_v62, %v2421_v24 }
 0x539   :  { %2675 = vst [vmem:[#allocation2 + $0x38] sm:$0xff] %v2643_v32  ;;  %v2578_v17 = vmul.f32 %v3285_v61, %v2546_v10  ;;  %v2388_v9 = vmul.f32 %v3289_v34, %v2205_v15  ;;  %3298 = vrcp.f32 %v2215_v40  ;;  %v2305_v26 = vpop.xlane.xlu0 %2304 }
 0x53a   :  { %v2549_v4 = vsub.f32 2.0, %v2517_v37  ;;  %3300 = vrcp.f32 %v2305_v26 }
 0x53b   :  { %v3291_v18 = vpop.eup %3290  ;;  %v2610_v36 = vsel %vm1794_vm1, %v2450_v16, %v2578_v17  ;;  %v2420_v52 = vsub.f32 2.0, %v2388_v9 }
 0x53c   :  { %v3293_v38 = vpop.eup %3292  ;;  %v2642_v28 = vmul.f32 %v5126_v57, %v2610_v36  ;;  %v2581_v19 = vmul.f32 %v3287_v14, %v2549_v4  ;;  %v2391_v39 = vmul.f32 %v3291_v18, %v2211_v12  ;;  %v2311_v33 = vpop.xlane.xlu1 %2310 }
 0x53d   :  { %v2516_v53 = vmul.f32 %v3293_v38, %v2301_v23  ;;  %3302 = vrcp.f32 %v2311_v33  ;;  %v2213_v55 = vpop.xlane.xlu0 %2212  ;;  %v2452_v12 = vmul.f32 %v3289_v34, %v2420_v52 }
 0x53e   :  { %2674 = vst [vmem:[#allocation2 + $0x30] sm:$0xff] %v2642_v28  ;;  %v2613_v15 = vsel %vm1794_vm1, %v2453_v51, %v2581_v19  ;;  %3304 = vrcp.f32 %v2213_v55  ;;  %v2423_v62 = vsub.f32 2.0, %v2391_v39 }
 0x53f   :  { %v3295_v60 = vpop.eup %3294  ;;  %v2645_v61 = vmul.f32 %v5138_v25, %v2613_v15  ;;  %v2548_v27 = vsub.f32 2.0, %v2516_v53 }
 0x540   :  { %v3297_v21 = vpop.eup %3296  ;;  %v2519_v45 = vmul.f32 %v3295_v60, %v2307_v35  ;;  %v2219_v57 = vpop.xlane.xlu1 %2218  ;;  %v2455_v10 = vmul.f32 %v3291_v18, %v2423_v62 }
 0x541   :  { %2677 = vst [vmem:[#allocation2 + $0x48] sm:$0xff] %v2645_v61  ;;  %v2580_v49 = vmul.f32 %v3293_v38, %v2548_v27  ;;  %v2390_v43 = vmul.f32 %v3297_v21, %v2209_v3  ;;  %3306 = vrcp.f32 %v2219_v57  ;;  %v2309_v23 = vpop.xlane.xlu0 %2308 }
 0x542   :  { %v2551_v63 = vsub.f32 2.0, %v2519_v45  ;;  %3308 = vrcp.f32 %v2309_v23 }
 0x543   :  { %v3299_v41 = vpop.eup %3298  ;;  %v2612_v14 = vsel %vm1794_vm1, %v2452_v12, %v2580_v49  ;;  %v2422_v16 = vsub.f32 2.0, %v2390_v43 }
 0x544   :  { %v3301_v32 = vpop.eup %3300  ;;  %v2644_v25 = vmul.f32 %v5152_v20, %v2612_v14  ;;  %v2583_v24 = vmul.f32 %v3295_v60, %v2551_v63  ;;  %v2393_v37 = vmul.f32 %v3299_v41, %v2215_v40  ;;  %v2315_v35 = vpop.xlane.xlu1 %2314 }
 0x545   :  { %v2518_v17 = vmul.f32 %v3301_v32, %v2305_v26  ;;  %3310 = vrcp.f32 %v2315_v35  ;;  %v2217_v34 = vpop.xlane.xlu0 %2216  ;;  %v2454_v40 = vmul.f32 %v3297_v21, %v2422_v16 }
 0x546   :  { %2676 = vst [vmem:[#allocation2 + $0x40] sm:$0xff] %v2644_v25  ;;  %v2615_v3 = vsel %vm1794_vm1, %v2455_v10, %v2583_v24  ;;  %3312 = vrcp.f32 %v2217_v34  ;;  %v2425_v18 = vsub.f32 2.0, %v2393_v37 }
 0x547   :  { %v3303_v9 = vpop.eup %3302  ;;  %v2647_v4 = vmul.f32 %v5164_v22, %v2615_v3  ;;  %v2550_v36 = vsub.f32 2.0, %v2518_v17 }
 0x548   :  { %v3305_v38 = vpop.eup %3304  ;;  %v2521_v51 = vmul.f32 %v3303_v9, %v2311_v33  ;;  %v2223_v20 = vpop.xlane.xlu1 %2222  ;;  %v2457_v60 = vmul.f32 %v3299_v41, %v2425_v18 }
 0x549   :  { %2679 = vst [vmem:[#allocation2 + $0x58] sm:$0xff] %v2647_v4  ;;  %v2582_v28 = vmul.f32 %v3301_v32, %v2550_v36  ;;  %v2392_v19 = vmul.f32 %v3305_v38, %v2213_v55  ;;  %3314 = vrcp.f32 %v2223_v20  ;;  %v2313_v26 = vpop.xlane.xlu0 %2312 }
 0x54a   :  { %v2553_v39 = vsub.f32 2.0, %v2521_v51  ;;  %3316 = vrcp.f32 %v2313_v26 }
 0x54b   :  { %v3307_v52 = vpop.eup %3306  ;;  %v2614_v53 = vsel %vm1794_vm1, %v2454_v40, %v2582_v28  ;;  %v2424_v62 = vsub.f32 2.0, %v2392_v19 }
 0x54c   :  { %v3309_v15 = vpop.eup %3308  ;;  %v2646_v22 = vmul.f32 %v5178_v58, %v2614_v53  ;;  %v2585_v61 = vmul.f32 %v3303_v9, %v2553_v39  ;;  %v2395_v27 = vmul.f32 %v3307_v52, %v2219_v57  ;;  %v2319_v33 = vpop.xlane.xlu1 %2318 }
 0x54d   :  { %v2520_v45 = vmul.f32 %v3309_v15, %v2309_v23  ;;  %3318 = vrcp.f32 %v2319_v33  ;;  %v2221_v21 = vpop.xlane.xlu0 %2220  ;;  %v2456_v57 = vmul.f32 %v3305_v38, %v2424_v62 }
 0x54e   :  { %2678 = vst [vmem:[#allocation2 + $0x50] sm:$0xff] %v2646_v22  ;;  %v2617_v55 = vsel %vm1794_vm1, %v2457_v60, %v2585_v61  ;;  %3320 = vrcp.f32 %v2221_v21  ;;  %v2427_v41 = vsub.f32 2.0, %v2395_v27 }
 0x54f   :  { %v3311_v12 = vpop.eup %3310  ;;  %v2649_v49 = vmul.f32 %v5190_v59, %v2617_v55  ;;  %v2552_v43 = vsub.f32 2.0, %v2520_v45 }
 0x550   :  { %v3313_v63 = vpop.eup %3312  ;;  %v2523_v14 = vmul.f32 %v3311_v12, %v2315_v35  ;;  %v2227_v58 = vpop.xlane.xlu1 %2226  ;;  %v2459_v17 = vmul.f32 %v3307_v52, %v2427_v41 }
 0x551   :  { %2681 = vst [vmem:[#allocation2 + $0x68] sm:$0xff] %v2649_v49  ;;  %v2584_v32 = vmul.f32 %v3309_v15, %v2552_v43  ;;  %v2394_v10 = vmul.f32 %v3313_v63, %v2217_v34  ;;  %3322 = vrcp.f32 %v2227_v58  ;;  %v2317_v23 = vpop.xlane.xlu0 %2316 }
 0x552   :  { %v2555_v25 = vsub.f32 2.0, %v2523_v14  ;;  %3324 = vrcp.f32 %v2317_v23 }
 0x553   :  { %v3315_v24 = vpop.eup %3314  ;;  %v2616_v37 = vsel %vm1794_vm1, %v2456_v57, %v2584_v32  ;;  %v2426_v4 = vsub.f32 2.0, %v2394_v10 }
 0x554   :  { %v3317_v16 = vpop.eup %3316  ;;  %v2648_v59 = vmul.f32 %v5204_v48, %v2616_v37  ;;  %v2587_v3 = vmul.f32 %v3311_v12, %v2555_v25  ;;  %v2397_v9 = vmul.f32 %v3315_v24, %v2223_v20  ;;  %v2323_v35 = vpop.xlane.xlu1 %2322 }
 0x555   :  { %v2522_v36 = vmul.f32 %v3317_v16, %v2313_v26  ;;  %3326 = vrcp.f32 %v2323_v35  ;;  %v2225_v38 = vpop.xlane.xlu0 %2224  ;;  %v2458_v20 = vmul.f32 %v3313_v63, %v2426_v4 }
 0x556   :  { %2680 = vst [vmem:[#allocation2 + $0x60] sm:$0xff] %v2648_v59  ;;  %v2619_v34 = vsel %vm1794_vm1, %v2459_v17, %v2587_v3  ;;  %3328 = vrcp.f32 %v2225_v38  ;;  %v2429_v19 = vsub.f32 2.0, %v2397_v9 }
 0x557   :  { %v3319_v18 = vpop.eup %3318  ;;  %v2651_v51 = vmul.f32 %v5216_v46, %v2619_v34  ;;  %v2554_v40 = vsub.f32 2.0, %v2522_v36 }
 0x558   :  { %v3321_v28 = vpop.eup %3320  ;;  %v2525_v39 = vmul.f32 %v3319_v18, %v2319_v33  ;;  %v2231_v48 = vpop.xlane.xlu1 %2230  ;;  %v2461_v27 = vmul.f32 %v3315_v24, %v2429_v19 }
 0x559   :  { %2683 = vst [vmem:[#allocation2 + $0x78] sm:$0xff] %v2651_v51  ;;  %v2586_v52 = vmul.f32 %v3317_v16, %v2554_v40  ;;  %v2396_v53 = vmul.f32 %v3321_v28, %v2221_v21  ;;  %3330 = vrcp.f32 %v2231_v48  ;;  %v2321_v26 = vpop.xlane.xlu0 %2320 }
 0x55a   :  { %v2557_v15 = vsub.f32 2.0, %v2525_v39  ;;  %3332 = vrcp.f32 %v2321_v26 }
 0x55b   :  { %v3323_v60 = vpop.eup %3322  ;;  %v2618_v22 = vsel %vm1794_vm1, %v2458_v20, %v2586_v52  ;;  %v2428_v55 = vsub.f32 2.0, %v2396_v53 }
 0x55c   :  { %v3325_v61 = vpop.eup %3324  ;;  %v2650_v46 = vmul.f32 %v5230_v5, %v2618_v22  ;;  %v2589_v62 = vmul.f32 %v3319_v18, %v2557_v15  ;;  %v2399_v45 = vmul.f32 %v3323_v60, %v2227_v58  ;;  %v2327_v33 = vpop.xlane.xlu1 %2326 }
 0x55d   :  { %v2524_v12 = vmul.f32 %v3325_v61, %v2317_v23  ;;  %3334 = vrcp.f32 %v2327_v33  ;;  %v2229_v49 = vpop.xlane.xlu0 %2228  ;;  %v2460_v58 = vmul.f32 %v3321_v28, %v2428_v55 }
 0x55e   :  { %2682 = vst [vmem:[#allocation2 + $0x70] sm:$0xff] %v2650_v46  ;;  %v2621_v21 = vsel %vm1794_vm1, %v2461_v27, %v2589_v62  ;;  %3336 = vrcp.f32 %v2229_v49  ;;  %v2431_v57 = vsub.f32 2.0, %v2399_v45 }
 0x55f   :  { %v3327_v43 = vpop.eup %3326  ;;  %v2653_v63 = vmul.f32 %v5242_v8, %v2621_v21  ;;  %v2556_v41 = vsub.f32 2.0, %v2524_v12 }
 0x560   :  { %v3329_v14 = vpop.eup %3328  ;;  %v2527_v32 = vmul.f32 %v3327_v43, %v2323_v35  ;;  %v2235_v5 = vpop.xlane.xlu1 %2234  ;;  %v2463_v59 = vmul.f32 %v3323_v60, %v2431_v57 }
 0x561   :  { %2685 = vst [vmem:[#allocation2 + $0x88] sm:$0xff] %v2653_v63  ;;  %v2588_v10 = vmul.f32 %v3325_v61, %v2556_v41  ;;  %v2398_v25 = vmul.f32 %v3329_v14, %v2225_v38  ;;  %3338 = vrcp.f32 %v2235_v5  ;;  %v2325_v23 = vpop.xlane.xlu0 %2324 }
 0x562   :  { %v2559_v24 = vsub.f32 2.0, %v2527_v32  ;;  %3340 = vrcp.f32 %v2325_v23 }
 0x563   :  { %v3331_v37 = vpop.eup %3330  ;;  %v2620_v16 = vsel %vm1794_vm1, %v2460_v58, %v2588_v10  ;;  %v2430_v4 = vsub.f32 2.0, %v2398_v25 }
 0x564   :  { %v3333_v17 = vpop.eup %3332  ;;  %v2652_v8 = vmul.f32 %v5256_v7, %v2620_v16  ;;  %v2591_v3 = vmul.f32 %v3327_v43, %v2559_v24  ;;  %v2401_v9 = vmul.f32 %v3331_v37, %v2231_v48  ;;  %v2331_v35 = vpop.xlane.xlu1 %2330 }
 0x565   :  { %v2526_v36 = vmul.f32 %v3333_v17, %v2321_v26  ;;  %3342 = vrcp.f32 %v2331_v35  ;;  %v2233_v34 = vpop.xlane.xlu0 %2232  ;;  %v2462_v48 = vmul.f32 %v3329_v14, %v2430_v4 }
 0x566   :  { %2684 = vst [vmem:[#allocation2 + $0x80] sm:$0xff] %v2652_v8  ;;  %v2623_v38 = vsel %vm1794_vm1, %v2463_v59, %v2591_v3  ;;  %3344 = vrcp.f32 %v2233_v34  ;;  %v2433_v19 = vsub.f32 2.0, %v2401_v9 }
 0x567   :  { %v3335_v18 = vpop.eup %3334  ;;  %v2655_v51 = vmul.f32 %v5268_v0, %v2623_v38  ;;  %v2558_v40 = vsub.f32 2.0, %v2526_v36 }
 0x568   :  { %v3337_v28 = vpop.eup %3336  ;;  %v2529_v39 = vmul.f32 %v3335_v18, %v2327_v33  ;;  %v2239_v7 = vpop.xlane.xlu1 %2238  ;;  %v2465_v61 = vmul.f32 %v3331_v37, %v2433_v19 }
 0x569   :  { %2687 = vst [vmem:[#allocation2 + $0x98] sm:$0xff] %v2655_v51  ;;  %v2590_v20 = vmul.f32 %v3333_v17, %v2558_v40  ;;  %v2400_v52 = vmul.f32 %v3337_v28, %v2229_v49  ;;  %3346 = vrcp.f32 %v2239_v7  ;;  %v2329_v53 = vpop.xlane.xlu0 %2328 }
 0x56a   :  { %v2561_v26 = vsub.f32 2.0, %v2529_v39  ;;  %3348 = vrcp.f32 %v2329_v53 }
 0x56b   :  { %v3339_v15 = vpop.eup %3338  ;;  %v2622_v60 = vsel %vm1794_vm1, %v2462_v48, %v2590_v20  ;;  %v2432_v45 = vsub.f32 2.0, %v2400_v52 }
 0x56c   :  { %v3341_v22 = vpop.eup %3340  ;;  %v2654_v0 = vmul.f32 %v5282_v1, %v2622_v60  ;;  %v2593_v27 = vmul.f32 %v3335_v18, %v2561_v26  ;;  %v2403_v46 = vmul.f32 %v3339_v15, %v2235_v5  ;;  %v2335_v62 = vpop.xlane.xlu1 %2334 }
 0x56d   :  { %v2528_v33 = vmul.f32 %v3341_v22, %v2325_v23  ;;  %3350 = vrcp.f32 %v2335_v62  ;;  %v2237_v55 = vpop.xlane.xlu0 %2236  ;;  %v2464_v57 = vmul.f32 %v3337_v28, %v2432_v45 }
 0x56e   :  { %2686 = vst [vmem:[#allocation2 + $0x90] sm:$0xff] %v2654_v0  ;;  %v2625_v12 = vsel %vm1794_vm1, %v2465_v61, %v2593_v27  ;;  %3352 = vrcp.f32 %v2237_v55  ;;  %v2435_v41 = vsub.f32 2.0, %v2403_v46 }
 0x56f   :  { %v3343_v49 = vpop.eup %3342  ;;  %v2657_v21 = vmul.f32 %v5294_v30, %v2625_v12  ;;  %v2560_v43 = vsub.f32 2.0, %v2528_v33 }
 0x570   :  { %v3345_v63 = vpop.eup %3344  ;;  %v2531_v14 = vmul.f32 %v3343_v49, %v2331_v35  ;;  %v2243_v1 = vpop.xlane.xlu1 %2242  ;;  %v2467_v37 = vmul.f32 %v3339_v15, %v2435_v41 }
 0x571   :  { %2689 = vst [vmem:[#allocation2 + $0xa8] sm:$0xff] %v2657_v21  ;;  %v2592_v32 = vmul.f32 %v3341_v22, %v2560_v43  ;;  %v2402_v5 = vmul.f32 %v3345_v63, %v2233_v34  ;;  %3354 = vrcp.f32 %v2243_v1  ;;  %v2333_v58 = vpop.xlane.xlu0 %2332 }
 0x572   :  { %v2563_v10 = vsub.f32 2.0, %v2531_v14  ;;  %3356 = vrcp.f32 %v2333_v58 }
 0x573   :  { %v3347_v25 = vpop.eup %3346  ;;  %v2624_v23 = vsel %vm1794_vm1, %v2464_v57, %v2592_v32  ;;  %v2434_v8 = vsub.f32 2.0, %v2402_v5 }
 0x574   :  { %v3349_v24 = vpop.eup %3348  ;;  %v2656_v30 = vmul.f32 %v5308_v29, %v2624_v23  ;;  %v2595_v16 = vmul.f32 %v3343_v49, %v2563_v10  ;;  %v2405_v17 = vmul.f32 %v3347_v25, %v2239_v7  ;;  %v2339_v59 = vpop.xlane.xlu1 %2338 }
 0x575   :  { %v2530_v3 = vmul.f32 %v3349_v24, %v2329_v53  ;;  %3358 = vrcp.f32 %v2339_v59  ;;  %v2241_v9 = vpop.xlane.xlu0 %2240  ;;  %v2466_v40 = vmul.f32 %v3345_v63, %v2434_v8 }
 0x576   :  { %2688 = vst [vmem:[#allocation2 + $0xa0] sm:$0xff] %v2656_v30  ;;  %v2627_v35 = vsel %vm1794_vm1, %v2467_v37, %v2595_v16  ;;  %3360 = vrcp.f32 %v2241_v9  ;;  %v2437_v18 = vsub.f32 2.0, %v2405_v17 }
 0x577   :  { %v3351_v4 = vpop.eup %3350  ;;  %v2659_v36 = vmul.f32 %v5320_v42, %v2627_v35  ;;  %v2562_v34 = vsub.f32 2.0, %v2530_v3 }
 0x578   :  { %v3353_v38 = vpop.eup %3352  ;;  %v2533_v51 = vmul.f32 %v3351_v4, %v2335_v62  ;;  %v2247_v29 = vpop.xlane.xlu1 %2246  ;;  %v2469_v53 = vmul.f32 %v3347_v25, %v2437_v18 }
 0x579   :  { %2691 = vst [vmem:[#allocation2 + $0xb8] sm:$0xff] %v2659_v36  ;;  %v2594_v28 = vmul.f32 %v3349_v24, %v2562_v34  ;;  %v2404_v19 = vmul.f32 %v3353_v38, %v2237_v55  ;;  %3362 = vrcp.f32 %v2247_v29  ;;  %v2337_v39 = vpop.xlane.xlu0 %2336 }
 0x57a   :  { %v2565_v7 = vsub.f32 2.0, %v2533_v51  ;;  %3364 = vrcp.f32 %v2337_v39 }
 0x57b   :  { %v3355_v48 = vpop.eup %3354  ;;  %v2626_v20 = vsel %vm1794_vm1, %v2466_v40, %v2594_v28  ;;  %v2436_v22 = vsub.f32 2.0, %v2404_v19 }
 0x57c   :  { %v3357_v52 = vpop.eup %3356  ;;  %v2658_v42 = vmul.f32 %v5334_v2, %v2626_v20  ;;  %v2597_v26 = vmul.f32 %v3351_v4, %v2565_v7  ;;  %v2407_v15 = vmul.f32 %v3355_v48, %v2243_v1  ;;  %v2343_v60 = vpop.xlane.xlu1 %2342 }
 0x57d   :  { %v2532_v61 = vmul.f32 %v3357_v52, %v2333_v58  ;;  %3366 = vrcp.f32 %v2343_v60  ;;  %v2245_v0 = vpop.xlane.xlu0 %2244  ;;  %v2468_v49 = vmul.f32 %v3353_v38, %v2436_v22 }
 0x57e   :  { %2690 = vst [vmem:[#allocation2 + $0xb0] sm:$0xff] %v2658_v42  ;;  %v2629_v27 = vsel %vm1794_vm1, %v2469_v53, %v2597_v26  ;;  %3368 = vrcp.f32 %v2245_v0  ;;  %v2439_v55 = vsub.f32 2.0, %v2407_v15 }
 0x57f   :  { %v3359_v46 = vpop.eup %3358  ;;  %v2661_v62 = vmul.f32 %v5346_v13, %v2629_v27  ;;  %v2564_v45 = vsub.f32 2.0, %v2532_v61 }
 0x580   :  { %v3361_v33 = vpop.eup %3360  ;;  %v2535_v12 = vmul.f32 %v3359_v46, %v2339_v59  ;;  %v2251_v2 = vpop.xlane.xlu1 %2250  ;;  %v2471_v32 = vmul.f32 %v3355_v48, %v2439_v55 }
 0x581   :  { %2693 = vst [vmem:[#allocation2 + $0xc8] sm:$0xff] %v2661_v62  ;;  %v2596_v21 = vmul.f32 %v3357_v52, %v2564_v45  ;;  %v2406_v43 = vmul.f32 %v3361_v33, %v2241_v9  ;;  %3370 = vrcp.f32 %v2251_v2  ;;  %v2341_v63 = vpop.xlane.xlu0 %2340 }
 0x582   :  { %v2567_v41 = vsub.f32 2.0, %v2535_v12  ;;  %3372 = vrcp.f32 %v2341_v63 }
 0x583   :  { %v3363_v14 = vpop.eup %3362  ;;  %v2628_v1 = vsel %vm1794_vm1, %v2468_v49, %v2596_v21  ;;  %v2438_v25 = vsub.f32 2.0, %v2406_v43 }
 0x584   :  { %v3365_v57 = vpop.eup %3364  ;;  %v2660_v13 = vmul.f32 %v5360_v47, %v2628_v1  ;;  %v2599_v5 = vmul.f32 %v3359_v46, %v2567_v41  ;;  %v2409_v58 = vmul.f32 %v3363_v14, %v2247_v29  ;;  %v2347_v10 = vpop.xlane.xlu1 %2346 }
 0x585   :  { %v2534_v23 = vmul.f32 %v3365_v57, %v2337_v39  ;;  %3374 = vrcp.f32 %v2347_v10  ;;  %v2249_v24 = vpop.xlane.xlu0 %2248  ;;  %v2470_v47 = vmul.f32 %v3361_v33, %v2438_v25 }
 0x586   :  { %2692 = vst [vmem:[#allocation2 + $0xc0] sm:$0xff] %v2660_v13  ;;  %v2631_v37 = vsel %vm1794_vm1, %v2471_v32, %v2599_v5  ;;  %3376 = vrcp.f32 %v2249_v24  ;;  %v2441_v8 = vsub.f32 2.0, %v2409_v58 }
 0x587   :  { %v3367_v30 = vpop.eup %3366  ;;  %v2663_v16 = vmul.f32 %v5372_v56, %v2631_v37  ;;  %v2566_v17 = vsub.f32 2.0, %v2534_v23 }
 0x588   :  { %v3369_v59 = vpop.eup %3368  ;;  %v2537_v3 = vmul.f32 %v3367_v30, %v2343_v60  ;;  %v2473_v51 = vmul.f32 %v3363_v14, %v2441_v8 }
 0x589   :  { %2695 = vst [vmem:[#allocation2 + $0xd8] sm:$0xff] %v2663_v16  ;;  %v2598_v9 = vmul.f32 %v3365_v57, %v2566_v17  ;;  %v2408_v35 = vmul.f32 %v3369_v59, %v2245_v0  ;;  %v2345_v4 = vpop.xlane.xlu0 %2344 }
 0x58a   :  { %v2569_v36 = vsub.f32 2.0, %v2537_v3  ;;  %3378 = vrcp.f32 %v2345_v4 }
 0x58b   :  { %v3371_v34 = vpop.eup %3370  ;;  %v2630_v38 = vsel %vm1794_vm1, %v2470_v47, %v2598_v9  ;;  %v2440_v28 = vsub.f32 2.0, %v2408_v35 }
 0x58c   :  { %v3373_v18 = vpop.eup %3372  ;;  %v2662_v29 = vmul.f32 %v5386_v11, %v2630_v38  ;;  %v2601_v56 = vmul.f32 %v3367_v30, %v2569_v36  ;;  %v2411_v40 = vmul.f32 %v3371_v34, %v2251_v2 }
 0x58d   :  { %v2536_v19 = vmul.f32 %v3373_v18, %v2341_v63  ;;  %v2472_v26 = vmul.f32 %v3369_v59, %v2440_v28 }
 0x58e   :  { %2694 = vst [vmem:[#allocation2 + $0xd0] sm:$0xff] %v2662_v29  ;;  %v2633_v39 = vsel %vm1794_vm1, %v2473_v51, %v2601_v56  ;;  %v2443_v53 = vsub.f32 2.0, %v2411_v40 }
 0x58f   :  { %v3375_v7 = vpop.eup %3374  ;;  %v2665_v48 = vmul.f32 %v5398_v44, %v2633_v39  ;;  %v2568_v20 = vsub.f32 2.0, %v2536_v19 }
 0x590   :  { %v3377_v52 = vpop.eup %3376  ;;  %v2539_v42 = vmul.f32 %v3375_v7, %v2347_v10  ;;  %v2475_v0 = vmul.f32 %v3371_v34, %v2443_v53 }
 0x591   :  { %2697 = vst [vmem:[#allocation2 + $0xe8] sm:$0xff] %v2665_v48  ;;  %v2600_v15 = vmul.f32 %v3373_v18, %v2568_v20  ;;  %v2410_v60 = vmul.f32 %v3377_v52, %v2249_v24 }
 0x592   :  { %v2571_v11 = vsub.f32 2.0, %v2539_v42 }
 0x593   :  { %v2632_v22 = vsel %vm1794_vm1, %v2472_v26, %v2600_v15  ;;  %v2442_v62 = vsub.f32 2.0, %v2410_v60 }
 0x594   :  { %v3379_v61 = vpop.eup %3378  ;;  %v2664_v27 = vmul.f32 %v5406_v31, %v2632_v22  ;;  %v2603_v46 = vmul.f32 %v3375_v7, %v2571_v11 }
 0x595   :  { %v2538_v45 = vmul.f32 %v3379_v61, %v2345_v4  ;;  %v2474_v12 = vmul.f32 %v3377_v52, %v2442_v62 }
 0x596   :  { %2696 = vst [vmem:[#allocation2 + $0xe0] sm:$0xff] %v2664_v27  ;;  %v2635_v44 = vsel %vm1794_vm1, %v2475_v0, %v2603_v46 }
 0x597   :  { %v2667_v33 = vmul.f32 %v5414_v6, %v2635_v44  ;;  %v2570_v55 = vsub.f32 2.0, %v2538_v45 }
 0x599   :  { %2699 = vst [vmem:[#allocation2 + $0xf8] sm:$0xff] %v2667_v33  ;;  %v2602_v2 = vmul.f32 %v3379_v61, %v2570_v55 }
 0x59b   :  { %v2634_v49 = vsel %vm1794_vm1, %v2474_v12, %v2602_v2 }
 0x59c   :  { %v2666_v31 = vmul.f32 %v5422_v54, %v2634_v49 }
 0x59e   :  { %2698 = vst [vmem:[#allocation2 + $0xf0] sm:$0xff] %v2666_v31 }
 0x59f   :  { %3391 = shalt.err (!%p3388_p4)
}
 0x5a0   :  { %s3392_s13 = scalar_lea.hbm %s5546_s5, 4096 }
 0x5a1   :  { %p3393_p5 = scmp.ne.s32.totalorder %s5546_s5, %s3392_s13  ;;  %p3396_p6 = scmp.lt.u32.totalorder %s3392_s13, %s5546_s5 }
 0x5a3   :  { %p3398_p7 = pnand %p3396_p6, %p3393_p5 }
 0x5a5   :  { %3401 = shalt.err (!%p3398_p7)
}
 0x5a6   :  { %s3406_s18 = smov 128   ;;  %s3407_s19 = smov 8  }
 0x5a7   :  { %2711 = dma.vmem_to_hbm [thread:$0]  %s2706_s10, 4096, %s5546_s5, [#allocation3], %s3406_s18, %s3406_s18, %s3407_s19  }
 0x5a8   :  { %3402 = dma.done.wait [#allocation3], 4096  }
 0x5a9   :  { %3403 = vsyncadd [#allocation3], 4294963200 }
 0x5aa   :  { %2715 = vsyncpa [#allocation3], 1 }

</bundles_post_ra>
